<compile_context>
chip_gen: v7x
topology: tpu7x:2x2x1
jax: 0.10.0
libtpu: 0.0.40
codegen_flags: <defaults>
</compile_context>

<pallas_src>
import functools

import jax
import jax.numpy as jnp
from jax import lax
from jax.experimental import pallas as pl
from jax.experimental.pallas import tpu as pltpu

# Plain Python float (a jnp scalar here would be captured as a kernel constant and
# rejected by pallas_call). Finite "minus infinity" avoids inf - inf -> nan in exp().
_NEG = -1e30


def _clip_loss_kernel(scale_ref, img_ref, txt_ref, out_ref,
                      img_s, m_row, l_row, m_col, l_col, s_diag, s_row, s_col,
                      *, n_valid, tile, n_pad, txt_resident):
    i = pl.program_id(0)          # row-tile index (outer)
    j = pl.program_id(1)          # col-tile index (inner / fastest)
    ni = pl.num_programs(0)
    nj = pl.num_programs(1)
    T = tile
    padded = n_pad != n_valid     # static python bool; mask code emitted only if needed

    # ---- very first grid step: zero global accumulators, init all column LSE state ----
    @pl.when((i == 0) & (j == 0))
    def _():
        s_diag[...] = jnp.zeros_like(s_diag)
        s_row[...] = jnp.zeros_like(s_row)
        s_col[...] = jnp.zeros_like(s_col)
        m_col[...] = jnp.full_like(m_col, _NEG)
        l_col[...] = jnp.zeros_like(l_col)

    # ---- start of each row sweep: reset row LSE state, fold logit_scale ONCE ----
    @pl.when(j == 0)
    def _():
        m_row[...] = jnp.full_like(m_row, _NEG)
        l_row[...] = jnp.zeros_like(l_row)
        scale = scale_ref[0, 0]
        # O(T*D) per row sweep instead of per tile; result reused for all g column steps.
        img_s[...] = (img_ref[...].astype(jnp.float32) * scale).astype(img_s.dtype)

    img_t = img_s[...]                                   # (T, D) scaled image row block i
    if txt_resident:
        # Whole text matrix resident in VMEM (fetched once); slice the column tile.
        txt_t = txt_ref[pl.ds(pl.multiple_of(j * T, T), T), :]
    else:
        txt_t = txt_ref[...]                             # (T, D) streamed column tile

    # (T, T) logits tile on the MXU; bf16 x bf16 -> f32 fast path for bf16 inputs.
    logits = lax.dot_general(img_t, txt_t, (((1,), (1,)), ((), ())),
                             preferred_element_type=jnp.float32)

    if padded:
        # Additive 0 / -1e30 bias vectors: O(T) construction + 2*T^2 adds
        # (replaces the 2x (T,T) iota / compare / where masks).
        rid = i * T + lax.broadcasted_iota(jnp.int32, (T, 1), 0)
        cid = j * T + lax.broadcasted_iota(jnp.int32, (1, T), 1)
        row_ok = rid < n_valid                           # (T, 1)
        col_ok = cid < n_valid                           # (1, T)
        row_bias = jnp.where(row_ok, 0.0, _NEG)
        col_bias = jnp.where(col_ok, 0.0, _NEG)
        logits = logits + row_bias + col_bias

    # ---- diagonal (labels == arange(N)): only diagonal tiles contribute ----
    @pl.when(i == j)
    def _():
        d = jnp.sum(img_t.astype(jnp.float32) * txt_t.astype(jnp.float32),
                    axis=-1, keepdims=True)              # (T, 1) == logits[r, r]
        if padded:
            d = jnp.where(row_ok, d, 0.0)
        s_diag[...] = s_diag[...] + jnp.sum(d)

    # ---- row direction (image -> text CE): streaming logsumexp ----
    m_prev = m_row[...]                                                    # (T, 1)
    m_new = jnp.maximum(m_prev, jnp.max(logits, axis=1, keepdims=True))
    p_row = jnp.exp(logits - m_new)                                        # (T, T)
    l_row[...] = l_row[...] * jnp.exp(m_prev - m_new) + jnp.sum(p_row, axis=1, keepdims=True)
    m_row[...] = m_new

    # ---- column direction (text -> image CE): streaming logsumexp ----
    # NOTE: a second exp per tile is deliberate; reusing p_row via a rank-1 rescale can
    # produce inf * 0 -> nan when the within-tile logit range exceeds ~88 (reachable,
    # since logit_scale is clamped at 100 in CLIP).
    mc_prev = m_col[j]                                                     # (1, T)
    mc_new = jnp.maximum(mc_prev, jnp.max(logits, axis=0, keepdims=True))
    p_col = jnp.exp(logits - mc_new)                                       # (T, T)
    l_col[j] = l_col[j] * jnp.exp(mc_prev - mc_new) + jnp.sum(p_col, axis=0, keepdims=True)
    m_col[j] = mc_new

    # ---- finalize this row block after its last column tile ----
    @pl.when(j == nj - 1)
    def _():
        lse_r = m_row[...] + jnp.log(l_row[...])                           # (T, 1)
        if padded:
            lse_r = jnp.where(row_ok, lse_r, 0.0)
        s_row[...] = s_row[...] + jnp.sum(lse_r)

    # ---- finalize column block j once the last row tile has contributed ----
    @pl.when(i == ni - 1)
    def _():
        lse_c = m_col[j] + jnp.log(l_col[j])                               # (1, T)
        if padded:
            lse_c = jnp.where(col_ok, lse_c, 0.0)
        s_col[...] = s_col[...] + jnp.sum(lse_c)

    # ---- emit the scalar loss on the very last grid step ----
    @pl.when((i == ni - 1) & (j == nj - 1))
    def _():
        out_ref[...] = (0.5 * (s_row[...] + s_col[...]) - s_diag[...]) * (1.0 / n_valid)


def _choose_tile(n, block):
    """Pick the logits tile edge: multiple of 128; single tile for small problems."""
    block = max(128, -(-int(block) // 128) * 128)
    n128 = -(-n // 128) * 128
    if n128 <= max(block, 512):      # small problem -> one tile, grid=(1,1)
        return n128
    return block


def clip_loss(image_features, text_features, logit_scale, *, block=256):
    """CLIP contrastive loss (world_size == 1) via a tiled streaming Pallas kernel.

    block: logits tile edge (default 256: full-width MXU passes on v6e/v7x; sweep
    256 vs 512 for large N, re-checking the VMEM budget on v7x's 64 MiB).
    """
    N, D = image_features.shape
    assert text_features.shape == (N, D)
    T = _choose_tile(N, block)
    n_pad = -(-N // T) * T            # round N up to a multiple of the tile
    if n_pad != N:                    # padded rows/cols are masked inside the kernel
        image_features = jnp.pad(image_features, ((0, n_pad - N), (0, 0)))
        text_features = jnp.pad(text_features, ((0, n_pad - N), (0, 0)))
    g = n_pad // T

    # Keep the entire text matrix resident in VMEM (constant block index -> fetched
    # once) when it fits; otherwise stream (T, D) column tiles (re-streamed per row
    # sweep). 8 MiB threshold keeps double-buffered copies + (T,T) f32 temporaries
    # well under the 32 MiB budget on every generation (incl. v7x's 64 MiB physical).
    txt_resident = n_pad * D * text_features.dtype.itemsize <= 8 * 1024 * 1024
    if txt_resident:
        txt_spec = pl.BlockSpec((n_pad, D), lambda i, j: (0, 0))
    else:
        # TODO(synk): add a row-panel level (several row tiles per text pass) to cut
        #             the remaining g-fold text re-stream when N*D exceeds VMEM.
        txt_spec = pl.BlockSpec((T, D), lambda i, j: (j, 0))

    scale = jnp.asarray(logit_scale, jnp.float32).reshape(1, 1)
    kernel = functools.partial(_clip_loss_kernel, n_valid=N, tile=T, n_pad=n_pad,
                               txt_resident=txt_resident)

    out = pl.pallas_call(
        kernel,
        out_shape=jax.ShapeDtypeStruct((1, 1), jnp.float32),
        grid=(g, g),
        in_specs=[
            pl.BlockSpec(memory_space=pltpu.MemorySpace.SMEM),   # logit_scale (1, 1)
            pl.BlockSpec((T, D), lambda i, j: (i, 0)),           # image row tile
            txt_spec,                                            # text (resident or tile)
        ],
        out_specs=pl.BlockSpec((1, 1), lambda i, j: (0, 0)),
        scratch_shapes=[
            pltpu.VMEM((T, D), image_features.dtype),  # img_s: scale-folded image tile
            pltpu.VMEM((T, 1), jnp.float32),           # m_row: running row max
            pltpu.VMEM((T, 1), jnp.float32),           # l_row: running row sum-exp
            pltpu.VMEM((g, 1, T), jnp.float32),        # m_col: running col max (all blocks)
            pltpu.VMEM((g, 1, T), jnp.float32),        # l_col: running col sum-exp
            pltpu.VMEM((1, 1), jnp.float32),           # sum of diagonal logits
            pltpu.VMEM((1, 1), jnp.float32),           # sum of row logsumexp
            pltpu.VMEM((1, 1), jnp.float32),           # sum of col logsumexp
        ],
        compiler_params=pltpu.CompilerParams(
            # Both grid axes carry reductions (rows reduce over j, columns over i) and
            # share resident accumulators -> "arbitrary". See v7x core-parallel TODO.
            dimension_semantics=("arbitrary", "arbitrary"),
            vmem_limit_bytes=32 * 1024 * 1024,         # fits v5e/v6e/v7x comfortably
        ),
    )(scale, image_features, text_features)
    return out[0, 0]


def clip_loss_ref(image_features, text_features, logit_scale):
    img = image_features.astype(jnp.float32)
    txt = text_features.astype(jnp.float32)
    logits = logit_scale * (img @ txt.T)
    lse_r = jax.scipy.special.logsumexp(logits, axis=1)
    lse_c = jax.scipy.special.logsumexp(logits, axis=0)
    diag = jnp.diagonal(logits)
    return 0.5 * (jnp.mean(lse_r - diag) + jnp.mean(lse_c - diag))


if __name__ == "__main__":
    key = jax.random.PRNGKey(0)
    k1, k2 = jax.random.split(key)
    N, D = 256, 64
    img = jax.random.normal(k1, (N, D), dtype=jnp.float32)
    txt = jax.random.normal(k2, (N, D), dtype=jnp.float32)
    # L2-normalize like CLIP and keep features in bf16 (fast MXU path).
    img = (img / jnp.linalg.norm(img, axis=-1, keepdims=True)).astype(jnp.bfloat16)
    txt = (txt / jnp.linalg.norm(txt, axis=-1, keepdims=True)).astype(jnp.bfloat16)
    logit_scale = jnp.float32(1.0 / 0.07)

    loss = jax.block_until_ready(clip_loss(img, txt, logit_scale))
    ref = clip_loss_ref(img, txt, logit_scale)
    # Tolerance covers bf16 rounding of the in-kernel scale fold vs the f32-scaled ref.
    assert jnp.allclose(loss, ref, rtol=5e-3, atol=5e-3), (loss, ref)
    print("KERNEL_OK")
</pallas_src>

<mosaic_0001>
module attributes {stable_mosaic.version = 11 : i64} {
  func.func @_clip_loss_kernel(%arg0: i32, %arg1: i32, %arg2: memref<1x1xf32, #tpu.memory_space<smem>>, %arg3: memref<256x64xbf16, #tpu.memory_space<vmem>>, %arg4: memref<256x64xbf16, #tpu.memory_space<vmem>>, %arg5: memref<1x1xf32, #tpu.memory_space<vmem>>, %arg6: memref<256x64xbf16, #tpu.memory_space<vmem>>, %arg7: memref<256x1xf32, #tpu.memory_space<vmem>>, %arg8: memref<256x1xf32, #tpu.memory_space<vmem>>, %arg9: memref<1x1x256xf32, #tpu.memory_space<vmem>>, %arg10: memref<1x1x256xf32, #tpu.memory_space<vmem>>, %arg11: memref<1x1xf32, #tpu.memory_space<vmem>>, %arg12: memref<1x1xf32, #tpu.memory_space<vmem>>, %arg13: memref<1x1xf32, #tpu.memory_space<vmem>>) attributes {dimension_semantics = [#tpu.dimension_semantics<arbitrary>, #tpu.dimension_semantics<arbitrary>], iteration_bounds = array<i64: 1, 1>, scalar_prefetch = 0 : i64, scratch_operands = 8 : i64, tpu.core_type = #tpu.core_type<tc>, window_params = [{transform_indices = @transform_0, window_bounds = array<i64: 1, 1>}, {transform_indices = @transform_1, window_bounds = array<i64: 256, 64>}, {pipeline_mode = #tpu.pipeline_mode<synchronous>, transform_indices = @transform_2, window_bounds = array<i64: 256, 64>}, {pipeline_mode = #tpu.pipeline_mode<synchronous>, transform_indices = @transform_3, window_bounds = array<i64: 1, 1>}]} {
    %c0_i32 = arith.constant 0 : i32
    %0 = arith.cmpi eq, %arg0, %c0_i32 : i32
    %c0_i32_0 = arith.constant 0 : i32
    %1 = arith.cmpi eq, %arg1, %c0_i32_0 : i32
    %2 = arith.andi %0, %1 : i1
    %3 = arith.extui %2 : i1 to i32
    %c0_i32_1 = arith.constant 0 : i32
    %4 = arith.cmpi ne, %3, %c0_i32_1 : i32
    scf.if %4 {
      %cst_34 = arith.constant 0.000000e+00 : f32
      %70 = vector.broadcast %cst_34 : f32 to vector<1x1xf32>
      %c0_35 = arith.constant 0 : index
      %c0_36 = arith.constant 0 : index
      %71 = vector.load %arg11[%c0_35, %c0_36] : memref<1x1xf32, #tpu.memory_space<vmem>>, vector<1x1xf32>
      tpu.vector_store %arg11[%c0_35, %c0_36], %70 {strides = array<i32>} : memref<1x1xf32, #tpu.memory_space<vmem>>, vector<1x1xf32>,
      %cst_37 = arith.constant 0.000000e+00 : f32
      %72 = vector.broadcast %cst_37 : f32 to vector<1x1xf32>
      %c0_38 = arith.constant 0 : index
      %c0_39 = arith.constant 0 : index
      %73 = vector.load %arg12[%c0_38, %c0_39] : memref<1x1xf32, #tpu.memory_space<vmem>>, vector<1x1xf32>
      tpu.vector_store %arg12[%c0_38, %c0_39], %72 {strides = array<i32>} : memref<1x1xf32, #tpu.memory_space<vmem>>, vector<1x1xf32>,
      %cst_40 = arith.constant 0.000000e+00 : f32
      %74 = vector.broadcast %cst_40 : f32 to vector<1x1xf32>
      %c0_41 = arith.constant 0 : index
      %c0_42 = arith.constant 0 : index
      %75 = vector.load %arg13[%c0_41, %c0_42] : memref<1x1xf32, #tpu.memory_space<vmem>>, vector<1x1xf32>
      tpu.vector_store %arg13[%c0_41, %c0_42], %74 {strides = array<i32>} : memref<1x1xf32, #tpu.memory_space<vmem>>, vector<1x1xf32>,
      %cst_43 = arith.constant -1.000000e+30 : f32
      %76 = vector.broadcast %cst_43 : f32 to vector<1x1x256xf32>
      %c0_44 = arith.constant 0 : index
      %c0_45 = arith.constant 0 : index
      %c0_46 = arith.constant 0 : index
      %77 = vector.load %arg9[%c0_44, %c0_45, %c0_46] : memref<1x1x256xf32, #tpu.memory_space<vmem>>, vector<1x1x256xf32>
      tpu.vector_store %arg9[%c0_44, %c0_45, %c0_46], %76 {strides = array<i32>} : memref<1x1x256xf32, #tpu.memory_space<vmem>>, vector<1x1x256xf32>,
      %cst_47 = arith.constant 0.000000e+00 : f32
      %78 = vector.broadcast %cst_47 : f32 to vector<1x1x256xf32>
      %c0_48 = arith.constant 0 : index
      %c0_49 = arith.constant 0 : index
      %c0_50 = arith.constant 0 : index
      %79 = vector.load %arg10[%c0_48, %c0_49, %c0_50] : memref<1x1x256xf32, #tpu.memory_space<vmem>>, vector<1x1x256xf32>
      tpu.vector_store %arg10[%c0_48, %c0_49, %c0_50], %78 {strides = array<i32>} : memref<1x1x256xf32, #tpu.memory_space<vmem>>, vector<1x1x256xf32>,
    } else {
    }
    %c0_i32_2 = arith.constant 0 : i32
    %5 = arith.cmpi eq, %arg1, %c0_i32_2 : i32
    %6 = arith.extui %5 : i1 to i32
    %c0_i32_3 = arith.constant 0 : i32
    %7 = arith.cmpi ne, %6, %c0_i32_3 : i32
    scf.if %7 {
      %cst_34 = arith.constant -1.000000e+30 : f32
      %70 = vector.broadcast %cst_34 : f32 to vector<256x1xf32>
      %c0_35 = arith.constant 0 : index
      %c0_36 = arith.constant 0 : index
      %71 = vector.load %arg7[%c0_35, %c0_36] : memref<256x1xf32, #tpu.memory_space<vmem>>, vector<256x1xf32>
      tpu.vector_store %arg7[%c0_35, %c0_36], %70 {strides = array<i32>} : memref<256x1xf32, #tpu.memory_space<vmem>>, vector<256x1xf32>,
      %cst_37 = arith.constant 0.000000e+00 : f32
      %72 = vector.broadcast %cst_37 : f32 to vector<256x1xf32>
      %c0_38 = arith.constant 0 : index
      %c0_39 = arith.constant 0 : index
      %73 = vector.load %arg8[%c0_38, %c0_39] : memref<256x1xf32, #tpu.memory_space<vmem>>, vector<256x1xf32>
      tpu.vector_store %arg8[%c0_38, %c0_39], %72 {strides = array<i32>} : memref<256x1xf32, #tpu.memory_space<vmem>>, vector<256x1xf32>,
      %c0_40 = arith.constant 0 : index
      %c0_41 = arith.constant 0 : index
      %74 = memref.load %arg2[%c0_40, %c0_41] : memref<1x1xf32, #tpu.memory_space<smem>>
      %c0_42 = arith.constant 0 : index
      %c0_43 = arith.constant 0 : index
      %75 = vector.load %arg3[%c0_42, %c0_43] : memref<256x64xbf16, #tpu.memory_space<vmem>>, vector<256x64xbf16>
      %76 = arith.extf %75 : vector<256x64xbf16> to vector<256x64xf32>
      %77 = vector.broadcast %74 : f32 to vector<256x64xf32>
      %78 = arith.mulf %76, %77 : vector<256x64xf32>
      %79 = arith.truncf %78 : vector<256x64xf32> to vector<256x64xbf16>
      %c0_44 = arith.constant 0 : index
      %c0_45 = arith.constant 0 : index
      %80 = vector.load %arg6[%c0_44, %c0_45] : memref<256x64xbf16, #tpu.memory_space<vmem>>, vector<256x64xbf16>
      tpu.vector_store %arg6[%c0_44, %c0_45], %79 {strides = array<i32>} : memref<256x64xbf16, #tpu.memory_space<vmem>>, vector<256x64xbf16>,
    } else {
    }
    %c0 = arith.constant 0 : index
    %c0_4 = arith.constant 0 : index
    %8 = vector.load %arg6[%c0, %c0_4] : memref<256x64xbf16, #tpu.memory_space<vmem>>, vector<256x64xbf16>
    %c256_i32 = arith.constant 256 : i32
    %9 = arith.muli %arg1, %c256_i32 : i32
    %10 = tpu.assume_multiple %9, 256 : i32
    %11 = arith.index_cast %10 : i32 to index
    %c0_5 = arith.constant 0 : index
    %12 = vector.load %arg4[%11, %c0_5] : memref<256x64xbf16, #tpu.memory_space<vmem>>, vector<256x64xbf16>
    %cst = arith.constant dense<0.000000e+00> : vector<256x256xf32>
    %13 = tpu.matmul %8, %12, %cst {dimension_numbers = #tpu.dot_dimension_numbers<[1], [1], [0], [0], [0, 0, 1, 0], [], []>} : vector<256x64xbf16>, vector<256x64xbf16>, vector<256x256xf32> -> vector<256x256xf32>
    %14 = arith.cmpi eq, %arg0, %arg1 : i32
    %15 = arith.extui %14 : i1 to i32
    %c0_i32_6 = arith.constant 0 : i32
    %16 = arith.cmpi ne, %15, %c0_i32_6 : i32
    scf.if %16 {
      %70 = arith.extf %8 : vector<256x64xbf16> to vector<256x64xf32>
      %71 = arith.extf %12 : vector<256x64xbf16> to vector<256x64xf32>
      %72 = arith.mulf %70, %71 : vector<256x64xf32>
      %cst_34 = arith.constant dense<0.000000e+00> : vector<256xf32>
      %73 = vector.multi_reduction <add>, %72, %cst_34 [1] : vector<256x64xf32> to vector<256xf32>
      %74 = vector.shape_cast %73 : vector<256xf32> to vector<256x1xf32>
      %c0_35 = arith.constant 0 : index
      %c0_36 = arith.constant 0 : index
      %75 = vector.load %arg11[%c0_35, %c0_36] : memref<1x1xf32, #tpu.memory_space<vmem>>, vector<1x1xf32>
      %76 = vector.shape_cast %74 : vector<256x1xf32> to vector<1x256x1xf32>
      %cst_37 = arith.constant dense<0.000000e+00> : vector<1xf32>
      %77 = vector.multi_reduction <add>, %76, %cst_37 [1, 2] : vector<1x256x1xf32> to vector<1xf32>
      %78 = vector.shape_cast %77 : vector<1xf32> to vector<1x1x1xf32>
      %79 = vector.extract %78[0, 0, 0] : f32 from vector<1x1x1xf32>
      %80 = vector.broadcast %79 : f32 to vector<1x1xf32>
      %81 = arith.addf %75, %80 : vector<1x1xf32>
      %c0_38 = arith.constant 0 : index
      %c0_39 = arith.constant 0 : index
      %82 = vector.load %arg11[%c0_38, %c0_39] : memref<1x1xf32, #tpu.memory_space<vmem>>, vector<1x1xf32>
      tpu.vector_store %arg11[%c0_38, %c0_39], %81 {strides = array<i32>} : memref<1x1xf32, #tpu.memory_space<vmem>>, vector<1x1xf32>,
    } else {
    }
    %c0_7 = arith.constant 0 : index
    %c0_8 = arith.constant 0 : index
    %17 = vector.load %arg7[%c0_7, %c0_8] : memref<256x1xf32, #tpu.memory_space<vmem>>, vector<256x1xf32>
    %cst_9 = arith.constant dense<0xFF800000> : vector<256xf32>
    %18 = vector.multi_reduction <maximumf>, %13, %cst_9 [1] : vector<256x256xf32> to vector<256xf32>
    %19 = vector.shape_cast %18 : vector<256xf32> to vector<256x1xf32>
    %20 = arith.maximumf %17, %19 : vector<256x1xf32>
    %21 = vector.broadcast %20 : vector<256x1xf32> to vector<256x256xf32>
    %22 = arith.subf %13, %21 : vector<256x256xf32>
    %23 = math.exp %22 : vector<256x256xf32>
    %c0_10 = arith.constant 0 : index
    %c0_11 = arith.constant 0 : index
    %24 = vector.load %arg8[%c0_10, %c0_11] : memref<256x1xf32, #tpu.memory_space<vmem>>, vector<256x1xf32>
    %25 = arith.subf %17, %20 : vector<256x1xf32>
    %26 = math.exp %25 : vector<256x1xf32>
    %27 = arith.mulf %24, %26 : vector<256x1xf32>
    %cst_12 = arith.constant dense<0.000000e+00> : vector<256xf32>
    %28 = vector.multi_reduction <add>, %23, %cst_12 [1] : vector<256x256xf32> to vector<256xf32>
    %29 = vector.shape_cast %28 : vector<256xf32> to vector<256x1xf32>
    %30 = arith.addf %27, %29 : vector<256x1xf32>
    %c0_13 = arith.constant 0 : index
    %c0_14 = arith.constant 0 : index
    %31 = vector.load %arg8[%c0_13, %c0_14] : memref<256x1xf32, #tpu.memory_space<vmem>>, vector<256x1xf32>
    tpu.vector_store %arg8[%c0_13, %c0_14], %30 {strides = array<i32>} : memref<256x1xf32, #tpu.memory_space<vmem>>, vector<256x1xf32>,
    %c0_15 = arith.constant 0 : index
    %c0_16 = arith.constant 0 : index
    %32 = vector.load %arg7[%c0_15, %c0_16] : memref<256x1xf32, #tpu.memory_space<vmem>>, vector<256x1xf32>
    tpu.vector_store %arg7[%c0_15, %c0_16], %20 {strides = array<i32>} : memref<256x1xf32, #tpu.memory_space<vmem>>, vector<256x1xf32>,
    %33 = arith.index_cast %arg1 : i32 to index
    %c0_17 = arith.constant 0 : index
    %c0_18 = arith.constant 0 : index
    %34 = vector.load %arg9[%33, %c0_17, %c0_18] : memref<1x1x256xf32, #tpu.memory_space<vmem>>, vector<1x1x256xf32>
    %35 = vector.shape_cast %34 : vector<1x1x256xf32> to vector<1x256xf32>
    %cst_19 = arith.constant dense<0xFF800000> : vector<256xf32>
    %36 = vector.multi_reduction <maximumf>, %13, %cst_19 [0] : vector<256x256xf32> to vector<256xf32>
    %37 = vector.shape_cast %36 : vector<256xf32> to vector<1x256xf32>
    %38 = arith.maximumf %35, %37 : vector<1x256xf32>
    %39 = vector.broadcast %38 : vector<1x256xf32> to vector<256x256xf32>
    %40 = arith.subf %13, %39 : vector<256x256xf32>
    %41 = math.exp %40 : vector<256x256xf32>
    %42 = arith.index_cast %arg1 : i32 to index
    %c0_20 = arith.constant 0 : index
    %c0_21 = arith.constant 0 : index
    %43 = vector.load %arg10[%42, %c0_20, %c0_21] : memref<1x1x256xf32, #tpu.memory_space<vmem>>, vector<1x1x256xf32>
    %44 = vector.shape_cast %43 : vector<1x1x256xf32> to vector<1x256xf32>
    %45 = arith.subf %35, %38 : vector<1x256xf32>
    %46 = math.exp %45 : vector<1x256xf32>
    %47 = arith.mulf %44, %46 : vector<1x256xf32>
    %cst_22 = arith.constant dense<0.000000e+00> : vector<256xf32>
    %48 = vector.multi_reduction <add>, %41, %cst_22 [0] : vector<256x256xf32> to vector<256xf32>
    %49 = vector.shape_cast %48 : vector<256xf32> to vector<1x256xf32>
    %50 = arith.addf %47, %49 : vector<1x256xf32>
    %51 = arith.index_cast %arg1 : i32 to index
    %c0_23 = arith.constant 0 : index
    %c0_24 = arith.constant 0 : index
    %52 = vector.load %arg10[%51, %c0_23, %c0_24] : memref<1x1x256xf32, #tpu.memory_space<vmem>>, vector<1x1x256xf32>
    %53 = vector.shape_cast %52 : vector<1x1x256xf32> to vector<1x256xf32>
    %54 = vector.shape_cast %50 : vector<1x256xf32> to vector<1x1x256xf32>
    tpu.vector_store %arg10[%51, %c0_23, %c0_24], %54 {strides = array<i32>} : memref<1x1x256xf32, #tpu.memory_space<vmem>>, vector<1x1x256xf32>,
    %55 = arith.index_cast %arg1 : i32 to index
    %c0_25 = arith.constant 0 : index
    %c0_26 = arith.constant 0 : index
    %56 = vector.load %arg9[%55, %c0_25, %c0_26] : memref<1x1x256xf32, #tpu.memory_space<vmem>>, vector<1x1x256xf32>
    %57 = vector.shape_cast %56 : vector<1x1x256xf32> to vector<1x256xf32>
    %58 = vector.shape_cast %38 : vector<1x256xf32> to vector<1x1x256xf32>
    tpu.vector_store %arg9[%55, %c0_25, %c0_26], %58 {strides = array<i32>} : memref<1x1x256xf32, #tpu.memory_space<vmem>>, vector<1x1x256xf32>,
    %c0_i32_27 = arith.constant 0 : i32
    %59 = arith.cmpi eq, %arg1, %c0_i32_27 : i32
    %60 = arith.extui %59 : i1 to i32
    %c0_i32_28 = arith.constant 0 : i32
    %61 = arith.cmpi ne, %60, %c0_i32_28 : i32
    scf.if %61 {
      %c0_34 = arith.constant 0 : index
      %c0_35 = arith.constant 0 : index
      %70 = vector.load %arg7[%c0_34, %c0_35] : memref<256x1xf32, #tpu.memory_space<vmem>>, vector<256x1xf32>
      %c0_36 = arith.constant 0 : index
      %c0_37 = arith.constant 0 : index
      %71 = vector.load %arg8[%c0_36, %c0_37] : memref<256x1xf32, #tpu.memory_space<vmem>>, vector<256x1xf32>
      %72 = math.log %71 : vector<256x1xf32>
      %73 = arith.addf %70, %72 : vector<256x1xf32>
      %c0_38 = arith.constant 0 : index
      %c0_39 = arith.constant 0 : index
      %74 = vector.load %arg12[%c0_38, %c0_39] : memref<1x1xf32, #tpu.memory_space<vmem>>, vector<1x1xf32>
      %75 = vector.shape_cast %73 : vector<256x1xf32> to vector<1x256x1xf32>
      %cst_40 = arith.constant dense<0.000000e+00> : vector<1xf32>
      %76 = vector.multi_reduction <add>, %75, %cst_40 [1, 2] : vector<1x256x1xf32> to vector<1xf32>
      %77 = vector.shape_cast %76 : vector<1xf32> to vector<1x1x1xf32>
      %78 = vector.extract %77[0, 0, 0] : f32 from vector<1x1x1xf32>
      %79 = vector.broadcast %78 : f32 to vector<1x1xf32>
      %80 = arith.addf %74, %79 : vector<1x1xf32>
      %c0_41 = arith.constant 0 : index
      %c0_42 = arith.constant 0 : index
      %81 = vector.load %arg12[%c0_41, %c0_42] : memref<1x1xf32, #tpu.memory_space<vmem>>, vector<1x1xf32>
      tpu.vector_store %arg12[%c0_41, %c0_42], %80 {strides = array<i32>} : memref<1x1xf32, #tpu.memory_space<vmem>>, vector<1x1xf32>,
    } else {
    }
    %c0_i32_29 = arith.constant 0 : i32
    %62 = arith.cmpi eq, %arg0, %c0_i32_29 : i32
    %63 = arith.extui %62 : i1 to i32
    %c0_i32_30 = arith.constant 0 : i32
    %64 = arith.cmpi ne, %63, %c0_i32_30 : i32
    scf.if %64 {
      %70 = arith.index_cast %arg1 : i32 to index
      %c0_34 = arith.constant 0 : index
      %c0_35 = arith.constant 0 : index
      %71 = vector.load %arg9[%70, %c0_34, %c0_35] : memref<1x1x256xf32, #tpu.memory_space<vmem>>, vector<1x1x256xf32>
      %72 = vector.shape_cast %71 : vector<1x1x256xf32> to vector<1x256xf32>
      %73 = arith.index_cast %arg1 : i32 to index
      %c0_36 = arith.constant 0 : index
      %c0_37 = arith.constant 0 : index
      %74 = vector.load %arg10[%73, %c0_36, %c0_37] : memref<1x1x256xf32, #tpu.memory_space<vmem>>, vector<1x1x256xf32>
      %75 = vector.shape_cast %74 : vector<1x1x256xf32> to vector<1x256xf32>
      %76 = math.log %75 : vector<1x256xf32>
      %77 = arith.addf %72, %76 : vector<1x256xf32>
      %c0_38 = arith.constant 0 : index
      %c0_39 = arith.constant 0 : index
      %78 = vector.load %arg13[%c0_38, %c0_39] : memref<1x1xf32, #tpu.memory_space<vmem>>, vector<1x1xf32>
      %79 = vector.shape_cast %77 : vector<1x256xf32> to vector<1x1x256xf32>
      %cst_40 = arith.constant dense<0.000000e+00> : vector<1xf32>
      %80 = vector.multi_reduction <add>, %79, %cst_40 [1, 2] : vector<1x1x256xf32> to vector<1xf32>
      %81 = vector.shape_cast %80 : vector<1xf32> to vector<1x1x1xf32>
      %82 = vector.extract %81[0, 0, 0] : f32 from vector<1x1x1xf32>
      %83 = vector.broadcast %82 : f32 to vector<1x1xf32>
      %84 = arith.addf %78, %83 : vector<1x1xf32>
      %c0_41 = arith.constant 0 : index
      %c0_42 = arith.constant 0 : index
      %85 = vector.load %arg13[%c0_41, %c0_42] : memref<1x1xf32, #tpu.memory_space<vmem>>, vector<1x1xf32>
      tpu.vector_store %arg13[%c0_41, %c0_42], %84 {strides = array<i32>} : memref<1x1xf32, #tpu.memory_space<vmem>>, vector<1x1xf32>,
    } else {
    }
    %c0_i32_31 = arith.constant 0 : i32
    %65 = arith.cmpi eq, %arg0, %c0_i32_31 : i32
    %c0_i32_32 = arith.constant 0 : i32
    %66 = arith.cmpi eq, %arg1, %c0_i32_32 : i32
    %67 = arith.andi %65, %66 : i1
    %68 = arith.extui %67 : i1 to i32
    %c0_i32_33 = arith.constant 0 : i32
    %69 = arith.cmpi ne, %68, %c0_i32_33 : i32
    scf.if %69 {
      %c0_34 = arith.constant 0 : index
      %c0_35 = arith.constant 0 : index
      %70 = vector.load %arg12[%c0_34, %c0_35] : memref<1x1xf32, #tpu.memory_space<vmem>>, vector<1x1xf32>
      %c0_36 = arith.constant 0 : index
      %c0_37 = arith.constant 0 : index
      %71 = vector.load %arg13[%c0_36, %c0_37] : memref<1x1xf32, #tpu.memory_space<vmem>>, vector<1x1xf32>
      %72 = arith.addf %70, %71 : vector<1x1xf32>
      %cst_38 = arith.constant 5.000000e-01 : f32
      %73 = vector.broadcast %cst_38 : f32 to vector<1x1xf32>
      %74 = arith.mulf %73, %72 : vector<1x1xf32>
      %c0_39 = arith.constant 0 : index
      %c0_40 = arith.constant 0 : index
      %75 = vector.load %arg11[%c0_39, %c0_40] : memref<1x1xf32, #tpu.memory_space<vmem>>, vector<1x1xf32>
      %76 = arith.subf %74, %75 : vector<1x1xf32>
      %cst_41 = arith.constant 3.906250e-03 : f32
      %77 = vector.broadcast %cst_41 : f32 to vector<1x1xf32>
      %78 = arith.mulf %76, %77 : vector<1x1xf32>
      %c0_42 = arith.constant 0 : index
      %c0_43 = arith.constant 0 : index
      %79 = vector.load %arg5[%c0_42, %c0_43] : memref<1x1xf32, #tpu.memory_space<vmem>>, vector<1x1xf32>
      tpu.vector_store %arg5[%c0_42, %c0_43], %78 {strides = array<i32>} : memref<1x1xf32, #tpu.memory_space<vmem>>, vector<1x1xf32>,
    } else {
    }
    return
  }
  func.func @transform_0(%arg0: i32, %arg1: i32) -> (i32, i32) {
    %c0_i32 = arith.constant 0 : i32
    %c0_i32_0 = arith.constant 0 : i32
    %c0_i32_1 = arith.constant 0 : i32
    return %c0_i32, %c0_i32_0 : i32, i32
  }
  func.func @transform_1(%arg0: i32, %arg1: i32) -> (i32, i32) {
    %c0_i32 = arith.constant 0 : i32
    %c0_i32_0 = arith.constant 0 : i32
    return %arg0, %c0_i32 : i32, i32
  }
  func.func @transform_2(%arg0: i32, %arg1: i32) -> (i32, i32) {
    %c0_i32 = arith.constant 0 : i32
    %c0_i32_0 = arith.constant 0 : i32
    %c0_i32_1 = arith.constant 0 : i32
    return %c0_i32, %c0_i32_0 : i32, i32
  }
  func.func @transform_3(%arg0: i32, %arg1: i32) -> (i32, i32) {
    %c0_i32 = arith.constant 0 : i32
    %c0_i32_0 = arith.constant 0 : i32
    %c0_i32_1 = arith.constant 0 : i32
    return %c0_i32, %c0_i32_0 : i32, i32
  }
}

</mosaic_0001>

<bundles_post_ra>
// kernel: tpu_custom_call.1
= control target key start
LH: loop header
LB: loop body
LE: loop exit
PB: predicated region body
PF: predicated region fallthrough
CT: control target
= control target key end

     0   :  { %vm215_vm0 = vcmask 523264   ;;  %s5081_s0 = inlined_call_operand.<no memory space> [shape: f32[1,1], index: 0, kind: input, shape index: {}]   ;;  %s5082_s1 = inlined_call_operand.vmem [shape: bf16[256,64], index: 1, kind: input, shape index: {}]   ;;  %s5083_s2 = inlined_call_operand.vmem [shape: bf16[256,64], index: 2, kind: input, shape index: {}]   ;;  %s5084_s3 = inlined_call_operand.hbm [shape: f32[1,1], index: 3, kind: output, shape index: {}]  }
   0x1   :  { %v269_v0 = vld [vmem:[%s5083_s2 + $0x40] sm:$0xff]   ;;  %v271_v2 = vld [vmem:[%s5083_s2 + $0x48] sm:$0xff]   ;;  %v3218_v4 = vld [vmem:[%s5083_s2 + $0x10] sm:$0xff]   ;;  %v3250_v11 = vstv %s5081_s0 }
   0x2   :  { %v3205_v1 = vld [vmem:[%s5083_s2] sm:$0xff]   ;;  %v3213_v3 = vld [vmem:[%s5083_s2 + $0x8] sm:$0xff]   ;;  %v3223_v5 = vld [vmem:[%s5083_s2 + $0x18] sm:$0xff]   ;;  %2677 = vmatprep.subr.msk.bf16.mxu0 %vm215_vm0, %v269_v0  ;;  %2678 = vmatprep.subr.msk.bf16.mxu1 %vm215_vm0, %v269_v0  ;;  %v3265_v17 = vsel %vm215_vm0, %v3218_v4, 0 }
   0x3   :  { %v415_v6 = vsel %vm215_vm0, %v3205_v1, 0  ;;  %v273_v7 = vld [vmem:[%s5083_s2 + $0x50] sm:$0xff]   ;;  %v3235_v8 = vld [vmem:[%s5083_s2 + $0x58] sm:$0xff]   ;;  %v3240_v9 = vld [vmem:[%s5083_s2 + $0x60] sm:$0xff]   ;;  %v418_v16 = vsel %vm215_vm0, %v3213_v3, 0  ;;  %v3272_v21 = vsel %vm215_vm0, %v3223_v5, 0 }
   0x4   :  { %2614 = vmatpush3.bf16.xpose.msra.mxu0 %v415_v6  ;;  %2669 = vmatpush3.bf16.xpose.msra.mxu1 %v415_v6  ;;  %v2535_v10 = vld [vmem:[%s5082_s1] sm:$0xff]   ;;  %v2598_v14 = vld [vmem:[%s5082_s1 + $0x8] sm:$0xff]   ;;  %v2599_v20 = vld [vmem:[%s5082_s1 + $0x10] sm:$0xff]  }
   0x5   :  { %2679 = vmatprep.subr.msk.bf16.mxu0 %vm215_vm0, %v271_v2  ;;  %2680 = vmatprep.subr.msk.bf16.mxu1 %vm215_vm0, %v271_v2  ;;  %v2605_v12 = vld [vmem:[%s5082_s1 + $0x40] sm:$0xff]   ;;  %v2536_v13 = vunpack.c.l.bf16 %v2535_v10  ;;  %v2606_v15 = vld [vmem:[%s5082_s1 + $0x48] sm:$0xff]   ;;  %v2537_v18 = vunpack.c.h.bf16 %v2535_v10  ;;  %v2540_v24 = vunpack.c.l.bf16 %v2598_v14  ;;  %v2541_v27 = vunpack.c.h.bf16 %v2598_v14  ;;  %v2607_v29 = vld [vmem:[%s5082_s1 + $0x50] sm:$0xff]  }
   0x6   :  { %v2568_v19 = vunpack.c.l.bf16 %v2605_v12  ;;  %v2569_v23 = vunpack.c.h.bf16 %v2605_v12  ;;  %v2572_v28 = vunpack.c.l.bf16 %v2606_v15  ;;  %v2573_v32 = vunpack.c.h.bf16 %v2606_v15  ;;  %v2600_v34 = vld [vmem:[%s5082_s1 + $0x18] sm:$0xff]  }
   0x7   :  { %v167_v22 = vmul.f32 %v2536_v13, %v3250_v11  ;;  %v168_v25 = vmul.f32 %v2537_v18, %v3250_v11  ;;  %v169_v31 = vmul.f32 %v2540_v24, %v3250_v11  ;;  %v2544_v33 = vunpack.c.l.bf16 %v2599_v20 }
   0x8   :  { %v183_v26 = vmul.f32 %v2568_v19, %v3250_v11  ;;  %v184_v30 = vmul.f32 %v2569_v23, %v3250_v11 }
   0x9   :  { %9 = vsyncpa [#allocation12], 0  ;;  %v199_v35 = vpack.c.bf16 %v168_v25, %v167_v22  ;;  %v170_v36 = vmul.f32 %v2541_v27, %v3250_v11  ;;  %v185_v37 = vmul.f32 %v2572_v28, %v3250_v11  ;;  %v2545_v38 = vunpack.c.h.bf16 %v2599_v20  ;;  %v2608_v39 = vld [vmem:[%s5082_s1 + $0x58] sm:$0xff]   ;;  %v2601_v48 = vld [vmem:[%s5082_s1 + $0x20] sm:$0xff]   ;;  %s3178_s18 = smov [#allocation11]  }
   0xa   :  { %v207_v40 = vpack.c.bf16 %v184_v30, %v183_v26  ;;  %v186_v41 = vmul.f32 %v2573_v32, %v3250_v11  ;;  %v171_v42 = vmul.f32 %v2544_v33, %v3250_v11  ;;  %v2576_v43 = vunpack.c.l.bf16 %v2607_v29  ;;  %v2609_v53 = vld [vmem:[%s5082_s1 + $0x60] sm:$0xff]   ;;  %v2602_v58 = vld [vmem:[%s5082_s1 + $0x28] sm:$0xff]   ;;  %v2603_v15 = vld [vmem:[%s5082_s1 + $0x30] sm:$0xff]   ;;  %s2492_s19 = sshll.u32 %s3178_s18, 4  ;;  %s2493_s19 = int_to_ptr.vmem [resolvable:$true] %s2492_s19 }
   0xb   :  { %216 = vst.msk [vmem:[#allocation2] sm:$0xff] %vm215_vm0, %v199_v35  ;;  %v200_v44 = vpack.c.bf16 %v170_v36, %v169_v31  ;;  %v172_v45 = vmul.f32 %v2545_v38, %v3250_v11  ;;  %v2577_v46 = vunpack.c.h.bf16 %v2607_v29  ;;  %v2548_v47 = vunpack.c.l.bf16 %v2600_v34  ;;  %v2611_v22 = vld [vmem:[%s5082_s1 + $0x70] sm:$0xff]   ;;  %v2604_v28 = vld [vmem:[%s5082_s1 + $0x38] sm:$0xff]   ;;  %s3150_s20 = scalar_lea.vmem %s2493_s19, 16  ;;  %s3154_s21 = scalar_lea.vmem %s2493_s19, 32 }
   0xc   :  { %2616 = vmatpush3.bf16.xpose.msra.mxu0 %v418_v16  ;;  %2670 = vmatpush3.bf16.xpose.msra.mxu1 %v418_v16  ;;  %224 = vst.msk [vmem:[#allocation2 + $0x40] sm:$0xff] %vm215_vm0, %v207_v40  ;;  %v208_v49 = vpack.c.bf16 %v186_v41, %v185_v37  ;;  %v187_v50 = vmul.f32 %v2576_v43, %v3250_v11  ;;  %v2549_v51 = vunpack.c.h.bf16 %v2600_v34  ;;  %v2580_v52 = vunpack.c.l.bf16 %v2608_v39  ;;  %v2612_v36 = vld [vmem:[%s5082_s1 + $0x78] sm:$0xff]   ;;  %p3151_p0 = scmp.ne.s32.totalorder %s2493_s19, %s3150_s20  ;;  %p3155_p1 = scmp.lt.s32.totalorder %s2493_s19, %s2493_s19 }
   0xd   :  { %2681 = vmatprep.subr.msk.bf16.mxu0 %vm215_vm0, %v273_v7  ;;  %2682 = vmatprep.subr.msk.bf16.mxu1 %vm215_vm0, %v273_v7  ;;  %217 = vst.msk [vmem:[#allocation2 + $0x8] sm:$0xff] %vm215_vm0, %v200_v44  ;;  %v201_v54 = vpack.c.bf16 %v172_v45, %v171_v42  ;;  %v188_v55 = vmul.f32 %v2577_v46, %v3250_v11  ;;  %v2581_v57 = vunpack.c.h.bf16 %v2608_v39  ;;  %v2552_v61 = vunpack.c.l.bf16 %v2601_v48  ;;  %v2610_v7 = vld [vmem:[%s5082_s1 + $0x68] sm:$0xff]   ;;  %p3156_p2 = scmp.lt.s32.totalorder %s3154_s21, %s3150_s20 }
   0xe   :  { %v173_v56 = vmul.f32 %v2548_v47, %v3250_v11  ;;  %225 = vst.msk [vmem:[#allocation2 + $0x48] sm:$0xff] %vm215_vm0, %v208_v49  ;;  %v174_v59 = vmul.f32 %v2549_v51, %v3250_v11  ;;  %v189_v60 = vmul.f32 %v2580_v52, %v3250_v11  ;;  %v2553_v62 = vunpack.c.h.bf16 %v2601_v48  ;;  %v3366_v49 = vld [vmem:[%s5083_s2 + $0x20] sm:$0xff]  }
   0xf   :  { %218 = vst.msk [vmem:[#allocation2 + $0x10] sm:$0xff] %vm215_vm0, %v201_v54  ;;  %v209_v63 = vpack.c.bf16 %v188_v55, %v187_v50  ;;  %v190_v0 = vmul.f32 %v2581_v57, %v3250_v11  ;;  %v2584_v2 = vunpack.c.l.bf16 %v2609_v53  ;;  %v2585_v6 = vunpack.c.h.bf16 %v2609_v53  ;;  %p3157_p3 = por %p3156_p2, %p3155_p1 }
  0x10   :  { %v202_v10 = vpack.c.bf16 %v174_v59, %v173_v56  ;;  %v175_v12 = vmul.f32 %v2552_v61, %v3250_v11  ;;  %v176_v13 = vmul.f32 %v2553_v62, %v3250_v11  ;;  %v2556_v14 = vunpack.c.l.bf16 %v2602_v58 }
  0x11   :  { %226 = vst.msk [vmem:[#allocation2 + $0x50] sm:$0xff] %vm215_vm0, %v209_v63  ;;  %v210_v16 = vpack.c.bf16 %v190_v0, %v189_v60  ;;  %v191_v18 = vmul.f32 %v2584_v2, %v3250_v11  ;;  %v192_v19 = vmul.f32 %v2585_v6, %v3250_v11  ;;  %v2557_v20 = vunpack.c.h.bf16 %v2602_v58  ;;  %p3158_p4 = pnand %p3157_p3, %p3151_p0 }
  0x12   :  { %v3331_v23 = vld [vmem:[#allocation2] sm:$0xff]  ;;  %219 = vst.msk [vmem:[#allocation2 + $0x18] sm:$0xff] %vm215_vm0, %v202_v10  ;;  %v203_v24 = vpack.c.bf16 %v176_v13, %v175_v12  ;;  %v177_v25 = vmul.f32 %v2556_v14, %v3250_v11  ;;  %v2588_v26 = vunpack.c.l.bf16 %v2610_v7  ;;  %v2589_v27 = vunpack.c.h.bf16 %v2610_v7 }
  0x13   :  { %227 = vst.msk [vmem:[#allocation2 + $0x58] sm:$0xff] %vm215_vm0, %v210_v16  ;;  %v211_v29 = vpack.c.bf16 %v192_v19, %v191_v18  ;;  %v178_v30 = vmul.f32 %v2557_v20, %v3250_v11  ;;  %v2560_v31 = vunpack.c.l.bf16 %v2603_v15  ;;  %v2561_v32 = vunpack.c.h.bf16 %v2603_v15  ;;  %2629 = vmatprep.mubr.msk.bf16.mxu0 %vm215_vm0, %v3331_v23  ;;  %v263_v15 = vld [vmem:[%s5083_s2 + $0x28] sm:$0xff]  }
  0x14   :  { %2618 = vmatpush3.bf16.xpose.msra.mxu0 %v3265_v17  ;;  %2671 = vmatpush3.bf16.xpose.msra.mxu1 %v3265_v17  ;;  %v3342_v17 = vld [vmem:[#allocation2 + $0x40] sm:$0xff]  ;;  %220 = vst.msk [vmem:[#allocation2 + $0x20] sm:$0xff] %vm215_vm0, %v203_v24  ;;  %v193_v33 = vmul.f32 %v2588_v26, %v3250_v11  ;;  %v2592_v34 = vunpack.c.l.bf16 %v2611_v22  ;;  %v2593_v35 = vunpack.c.h.bf16 %v2611_v22  ;;  %v2564_v40 = vunpack.c.l.bf16 %v2604_v28  ;;  %v3368_v50 = vld [vmem:[#allocation2 + $0x8] sm:$0xff]  ;;  %v281_v22 = vld [vmem:[%s5083_s2 + $0x70] sm:$0xff]  }
  0x15   :  { %2683 = vmatprep.subr.msk.bf16.mxu0 %vm215_vm0, %v3235_v8  ;;  %2684 = vmatprep.subr.msk.bf16.mxu1 %vm215_vm0, %v3235_v8  ;;  %v194_v8 = vmul.f32 %v2589_v27, %v3250_v11  ;;  %228 = vst.msk [vmem:[#allocation2 + $0x60] sm:$0xff] %vm215_vm0, %v211_v29  ;;  %v204_v37 = vpack.c.bf16 %v178_v30, %v177_v25  ;;  %v2565_v44 = vunpack.c.h.bf16 %v2604_v28  ;;  %v2596_v47 = vunpack.c.l.bf16 %v2612_v36 }
  0x16   :  { %2645 = vmatprep.mubr.msk.bf16.mxu1 %vm215_vm0, %v3342_v17  ;;  %v179_v38 = vmul.f32 %v2560_v31, %v3250_v11  ;;  %v180_v39 = vmul.f32 %v2561_v32, %v3250_v11  ;;  %v195_v42 = vmul.f32 %v2592_v34, %v3250_v11  ;;  %v196_v43 = vmul.f32 %v2593_v35, %v3250_v11  ;;  %v3391_v0 = vld [vmem:[#allocation2 + $0x10] sm:$0xff] }
  0x17   :  { %v212_v41 = vpack.c.bf16 %v194_v8, %v193_v33  ;;  %221 = vst.msk [vmem:[#allocation2 + $0x28] sm:$0xff] %vm215_vm0, %v204_v37  ;;  %v181_v46 = vmul.f32 %v2564_v40, %v3250_v11  ;;  %v2597_v48 = vunpack.c.h.bf16 %v2612_v36  ;;  %v182_v52 = vmul.f32 %v2565_v44, %v3250_v11  ;;  %v283_v8 = vld [vmem:[%s5083_s2 + $0x78] sm:$0xff]  }
  0x18   :  { %v205_v45 = vpack.c.bf16 %v180_v39, %v179_v38  ;;  %v213_v51 = vpack.c.bf16 %v196_v43, %v195_v42  ;;  %v660_v53 = vunpack.c.h.bf16 %v3331_v23  ;;  %v692_v54 = vunpack.c.h.bf16 %v3205_v1  ;;  %v267_v37 = vld [vmem:[%s5083_s2 + $0x38] sm:$0xff]   ;;  %v241_v39 = vld [vmem:[#allocation2 + $0x48] sm:$0xff]  ;;  %v242_v40 = vld [vmem:[#allocation2 + $0x50] sm:$0xff] }
  0x19   :  { %229 = vst.msk [vmem:[#allocation2 + $0x68] sm:$0xff] %vm215_vm0, %v212_v41  ;;  %v197_v55 = vmul.f32 %v2596_v47, %v3250_v11  ;;  %v198_v56 = vmul.f32 %v2597_v48, %v3250_v11  ;;  %v661_v57 = vunpack.c.l.bf16 %v3368_v50  ;;  %v693_v58 = vunpack.c.l.bf16 %v3213_v3  ;;  %v235_v24 = vld [vmem:[#allocation2 + $0x18] sm:$0xff] }
  0x1a   :  { %222 = vst.msk [vmem:[#allocation2 + $0x30] sm:$0xff] %vm215_vm0, %v205_v45  ;;  %230 = vst.msk [vmem:[#allocation2 + $0x70] sm:$0xff] %vm215_vm0, %v213_v51  ;;  %v206_v59 = vpack.c.bf16 %v182_v52, %v181_v46  ;;  %v724_v60 = vmul.f32 %v692_v54, %v660_v53  ;;  %v662_v61 = vunpack.c.h.bf16 %v3368_v50  ;;  %v694_v62 = vunpack.c.h.bf16 %v3213_v3 }
  0x1b   :  { %v214_v11 = vpack.c.bf16 %v198_v56, %v197_v55  ;;  %v725_v63 = vmul.f32 %v693_v58, %v661_v57  ;;  %v659_v3 = vunpack.c.l.bf16 %v3331_v23  ;;  %v691_v6 = vunpack.c.l.bf16 %v3205_v1 }
  0x1c   :  { %2620 = vmatpush3.bf16.xpose.msra.mxu0 %v3272_v21  ;;  %2672 = vmatpush3.bf16.xpose.msra.mxu1 %v3272_v21  ;;  %v279_v21 = vld [vmem:[%s5083_s2 + $0x68] sm:$0xff]   ;;  %223 = vst.msk [vmem:[#allocation2 + $0x38] sm:$0xff] %vm215_vm0, %v206_v59  ;;  %v758_v2 = vsel %vm215_vm0, %v724_v60, 0.0  ;;  %v726_v10 = vmul.f32 %v694_v62, %v662_v61  ;;  %v695_v12 = vunpack.c.l.bf16 %v3218_v4  ;;  %v427_v14 = vsel %vm215_vm0, %v3366_v49, 0  ;;  %v244_v41 = vld [vmem:[#allocation2 + $0x60] sm:$0xff] }
  0x1d   :  { %2685 = vmatprep.subr.msk.bf16.mxu0 %vm215_vm0, %v3240_v9  ;;  %2686 = vmatprep.subr.msk.bf16.mxu1 %vm215_vm0, %v3240_v9  ;;  %231 = vst.msk [vmem:[#allocation2 + $0x78] sm:$0xff] %vm215_vm0, %v214_v11  ;;  %v663_v9 = vunpack.c.l.bf16 %v3391_v0  ;;  %v761_v7 = vsel %vm215_vm0, %v725_v63, 0.0  ;;  %v723_v13 = vmul.f32 %v691_v6, %v659_v3  ;;  %v664_v19 = vunpack.c.h.bf16 %v3391_v0 }
  0x1e   :  { %759 = vadd.xlane.f32.xlu1 %v758_v2  ;;  %v764_v16 = vsel %vm215_vm0, %v726_v10, 0.0  ;;  %v696_v20 = vunpack.c.h.bf16 %v3218_v4  ;;  %v665_v27 = vunpack.c.l.bf16 %v235_v24  ;;  %v697_v28 = vunpack.c.l.bf16 %v3223_v5  ;;  %v265_v4 = vld [vmem:[%s5083_s2 + $0x30] sm:$0xff]   ;;  %v237_v42 = vld [vmem:[#allocation2 + $0x28] sm:$0xff] }
  0x1f   :  { %v755_v1 = vsel %vm215_vm0, %v723_v13, 0.0  ;;  %v727_v18 = vmul.f32 %v695_v12, %v663_v9  ;;  %v430_v29 = vsel %vm215_vm0, %v263_v15, 0  ;;  %v666_v32 = vunpack.c.h.bf16 %v235_v24 }
  0x20   :  { %756 = vadd.xlane.f32.xlu0 %v755_v1  ;;  %v728_v26 = vmul.f32 %v696_v20, %v664_v19  ;;  %v729_v31 = vmul.f32 %v697_v28, %v665_v27  ;;  %v698_v33 = vunpack.c.h.bf16 %v3223_v5  ;;  %v433_v36 = vsel %vm215_vm0, %v265_v4, 0  ;;  %v245_v43 = vld [vmem:[#allocation2 + $0x68] sm:$0xff] }
  0x21   :  { %v767_v25 = vsel %vm215_vm0, %v727_v18, 0.0  ;;  %v436_v38 = vsel %vm215_vm0, %v267_v37, 0  ;;  %v238_v44 = vld [vmem:[#allocation2 + $0x30] sm:$0xff]  ;;  %v5087_v53 = vlaneseq  ;;  %v5214_v54 = vmov 0 }
  0x22   :  { %762 = vadd.xlane.f32.xlu1 %v761_v7  ;;  %v770_v30 = vsel %vm215_vm0, %v728_v26, 0.0  ;;  %v773_v34 = vsel %vm215_vm0, %v729_v31, 0.0  ;;  %v730_v35 = vmul.f32 %v698_v33, %v666_v32  ;;  %v246_v45 = vld [vmem:[#allocation2 + $0x70] sm:$0xff]  ;;  %v5085_v55 = vmov -1e+30  }
  0x23   :  { %v239_v46 = vld [vmem:[#allocation2 + $0x38] sm:$0xff]  ;;  %vm3476_vm1 = vcmp.lt.s32.totalorder %v5087_v53, 256  ;;  %v5092_v53 = vmov 0.0   ;;  %vm36_vm2 = vcmask 7168   ;;  %vm2458_vm3 = vcmask 1040384  }
  0x24   :  { %2622 = vmatpush3.bf16.xpose.msra.mxu0 %v427_v14  ;;  %2673 = vmatpush3.bf16.xpose.msra.mxu1 %v427_v14  ;;  %v776_v5 = vsel %vm215_vm0, %v730_v35, 0.0  ;;  %v247_v47 = vld [vmem:[#allocation2 + $0x78] sm:$0xff]  ;;  %v5215_v54 = vsel %vm3476_vm1, 4294967295, %v5214_v54  ;;  %31 = vst.msk [vmem:[#allocation5] sm:$0x3] %vm3476_vm1, %v5085_v55  ;;  %vm23_vm4 = vcmask 0  }
  0x25   :  { %2687 = vmatprep.subr.msk.bf16.mxu0 %vm215_vm0, %v279_v21  ;;  %2688 = vmatprep.subr.msk.bf16.mxu1 %vm215_vm0, %v279_v21  ;;  %5216 = vst [vmem:[#allocation14_spill] sm:$0xff] %v5215_v54  ;;  %32 = vst.msk [vmem:[#allocation6] sm:$0x3] %vm3476_vm1, %v5092_v53 }
  0x26   :  { %765 = vadd.xlane.f32.xlu1 %v764_v16 }
  0x2a   :  { %768 = vadd.xlane.f32.xlu1 %v767_v25 }
  0x2c   :  { %2624 = vmatpush3.bf16.xpose.msra.mxu0 %v430_v29  ;;  %2674 = vmatpush3.bf16.xpose.msra.mxu1 %v430_v29 }
  0x2d   :  { %2689 = vmatprep.subr.msk.bf16.mxu0 %vm215_vm0, %v281_v22  ;;  %2690 = vmatprep.subr.msk.bf16.mxu1 %vm215_vm0, %v281_v22 }
  0x2e   :  { %771 = vadd.xlane.f32.xlu1 %v770_v30 }
  0x32   :  { %774 = vadd.xlane.f32.xlu1 %v773_v34 }
  0x34   :  { %2626 = vmatpush3.bf16.xpose.msra.mxu0 %v433_v36  ;;  %2675 = vmatpush3.bf16.xpose.msra.mxu1 %v433_v36 }
  0x35   :  { %2691 = vmatprep.subr.msk.bf16.mxu0 %vm215_vm0, %v283_v8  ;;  %2692 = vmatprep.subr.msk.bf16.mxu1 %vm215_vm0, %v283_v8 }
  0x36   :  { %777 = vadd.xlane.f32.xlu1 %v776_v5 }
  0x3c   :  { %2628 = vmatpush3.bf16.xpose.msra.mxu0 %v436_v38  ;;  %2676 = vmatpush3.bf16.xpose.msra.mxu1 %v436_v38 }
  0x43   :  { %2630 = vmatmul.mubr.msk.bf16.vlgmr.msra.gmra.mrb[0].mxu0 %vm215_vm0, %v3331_v23  ;;  %2646 = vmatmul.mubr.msk.bf16.vlgmr.msra.gmra.mrb[0].mxu1 %vm215_vm0, %v3342_v17  ;;  %v243_v23 = vld [vmem:[#allocation2 + $0x58] sm:$0xff]  ;;  %v236_v17 = vld [vmem:[#allocation2 + $0x20] sm:$0xff] }
  0x44   :  { %2631 = vmatprep.mubr.msk.bf16.mxu0 %vm215_vm0, %v3368_v50  ;;  %2647 = vmatprep.mubr.msk.bf16.mxu1 %vm215_vm0, %v241_v39  ;;  %v667_v48 = vunpack.c.l.bf16 %v236_v17 }
  0x4b   :  { %2632 = vmatmul.mubr.msk.bf16.gmra.mrb[4].mxu0 %vm215_vm0, %v3368_v50  ;;  %2648 = vmatmul.mubr.msk.bf16.gmra.mrb[4].mxu1 %vm215_vm0, %v241_v39  ;;  %v699_v50 = vunpack.c.l.bf16 %v3366_v49 }
  0x4c   :  { %2633 = vmatprep.mubr.msk.bf16.mxu0 %vm215_vm0, %v3391_v0  ;;  %2649 = vmatprep.mubr.msk.bf16.mxu1 %vm215_vm0, %v242_v40 }
  0x4d   :  { %v731_v51 = vmul.f32 %v699_v50, %v667_v48 }
  0x4f   :  { %v779_v52 = vsel %vm215_vm0, %v731_v51, 0.0 }
  0x50   :  { %780 = vadd.xlane.f32.xlu1 %v779_v52 }
  0x53   :  { %2634 = vmatmul.mubr.msk.bf16.gmra.mrb[8].mxu0 %vm215_vm0, %v3391_v0  ;;  %2650 = vmatmul.mubr.msk.bf16.gmra.mrb[8].mxu1 %vm215_vm0, %v242_v40 }
  0x54   :  { %2635 = vmatprep.mubr.msk.bf16.mxu0 %vm215_vm0, %v235_v24  ;;  %2651 = vmatprep.mubr.msk.bf16.mxu1 %vm215_vm0, %v243_v23 }
  0x5b   :  { %2636 = vmatmul.mubr.msk.bf16.gmra.mrb[12].mxu0 %vm215_vm0, %v235_v24  ;;  %2652 = vmatmul.mubr.msk.bf16.gmra.mrb[12].mxu1 %vm215_vm0, %v243_v23 }
  0x5c   :  { %2637 = vmatprep.mubr.msk.bf16.mxu0 %vm215_vm0, %v236_v17  ;;  %2653 = vmatprep.mubr.msk.bf16.mxu1 %vm215_vm0, %v244_v41 }
  0x63   :  { %2638 = vmatmul.mubr.msk.bf16.gmra.mrb[16].mxu0 %vm215_vm0, %v236_v17  ;;  %2654 = vmatmul.mubr.msk.bf16.gmra.mrb[16].mxu1 %vm215_vm0, %v244_v41 }
  0x64   :  { %2639 = vmatprep.mubr.msk.bf16.mxu0 %vm215_vm0, %v237_v42  ;;  %2655 = vmatprep.mubr.msk.bf16.mxu1 %vm215_vm0, %v245_v43 }
  0x6b   :  { %2640 = vmatmul.mubr.msk.bf16.gmra.mrb[20].mxu0 %vm215_vm0, %v237_v42  ;;  %2656 = vmatmul.mubr.msk.bf16.gmra.mrb[20].mxu1 %vm215_vm0, %v245_v43 }
  0x6c   :  { %2641 = vmatprep.mubr.msk.bf16.mxu0 %vm215_vm0, %v238_v44  ;;  %2657 = vmatprep.mubr.msk.bf16.mxu1 %vm215_vm0, %v246_v45 }
  0x73   :  { %2642 = vmatmul.mubr.msk.bf16.gmra.mrb[24].mxu0 %vm215_vm0, %v238_v44  ;;  %2658 = vmatmul.mubr.msk.bf16.gmra.mrb[24].mxu1 %vm215_vm0, %v246_v45 }
  0x74   :  { %2643 = vmatprep.mubr.msk.bf16.mxu0 %vm215_vm0, %v239_v46  ;;  %2659 = vmatprep.mubr.msk.bf16.mxu1 %vm215_vm0, %v247_v47 }
  0x7b   :  { %2644 = vmatmul.mubr.msk.bf16.gmra.mrb[28].mxu0 %vm215_vm0, %v239_v46  ;;  %2660 = vmatmul.mubr.msk.bf16.gmra.mrb[28].mxu1 %vm215_vm0, %v247_v47 }
 0x116   :  { %v3483_v56 = vpop.f32.mrb[0].mxu0  ;;  %v3485_v57 = vpop.f32.mrb[0].mxu1 }
 0x117   :  { %5217 = vst [vmem:[#allocation15_spill] sm:$0xff] %v3485_v57  ;;  %v3487_v49 = vpop.f32.mrb[1].mxu0  ;;  %v3489_v58 = vpop.f32.mrb[1].mxu1 }
 0x118   :  { %5218 = vst [vmem:[#allocation16_spill] sm:$0xff] %v3487_v49  ;;  %5219 = vst [vmem:[#allocation17_spill] sm:$0xff] %v3489_v58  ;;  %v3491_v59 = vpop.f32.mrb[2].mxu0  ;;  %v3493_v60 = vpop.f32.mrb[2].mxu1  ;;  %v961_v61 = vmax.f32 %v3483_v56, %v3487_v49  ;;  %v1009_v62 = vmax.f32 %v3485_v57, %v3489_v58 }
 0x119   :  { %5220 = vst [vmem:[#allocation18_spill] sm:$0xff] %v3491_v59  ;;  %v3499_v11 = vpop.f32.mrb[3].mxu0  ;;  %v1811_v63 = vmax.f32 %v3493_v60, %v3485_v57  ;;  %v3503_v21 = vpop.f32.mrb[3].mxu1 }
 0x11a   :  { %v1848_v0 = vmax.f32 %v3503_v21, %v3489_v58  ;;  %962 = vmax.xlane.f32.xlu0 %v961_v61  ;;  %v1012_v2 = vmax.f32 %v3493_v60, %v3503_v21  ;;  %v964_v3 = vmax.f32 %v3491_v59, %v3499_v11 }
 0x11c   :  { %1013 = vmax.xlane.f32.xlu1 %v1012_v2 }
 0x11e   :  { %1010 = vmax.xlane.f32.xlu0 %v1009_v62  ;;  %v3511_v6 = vpop.f32.mrb[4].mxu0  ;;  %v3513_v9 = vpop.f32.mrb[4].mxu1 }
 0x11f   :  { %5221 = vst [vmem:[#allocation19_spill] sm:$0xff] %v3513_v9  ;;  %v1797_v7 = vmax.f32 %v3483_v56, %v3511_v6  ;;  %v3517_v10 = vpop.f32.mrb[5].mxu0  ;;  %v1813_v12 = vmax.f32 %v1811_v63, %v3513_v9  ;;  %v3520_v13 = vpop.f32.mrb[5].mxu1 }
 0x120   :  { %5222 = vst [vmem:[#allocation20_spill] sm:$0xff] %v3520_v13  ;;  %v1834_v14 = vmax.f32 %v3487_v49, %v3517_v10  ;;  %v3524_v15 = vpop.f32.mrb[6].mxu0  ;;  %v1850_v1 = vmax.f32 %v1848_v0, %v3520_v13  ;;  %v3527_v16 = vpop.f32.mrb[6].mxu1  ;;  %v967_v18 = vmax.f32 %v3511_v6, %v3517_v10  ;;  %v1015_v19 = vmax.f32 %v3513_v9, %v3520_v13 }
 0x121   :  { %v1798_v20 = vmax.f32 %v3491_v59, %v3524_v15  ;;  %v3535_v22 = vpop.f32.mrb[7].mxu0  ;;  %v1815_v24 = vmax.f32 %v1813_v12, %v3527_v16  ;;  %v3538_v25 = vpop.f32.mrb[7].mxu1 }
 0x122   :  { %5223 = vst [vmem:[#allocation21_spill] sm:$0xff] %v3535_v22  ;;  %v1835_v26 = vmax.f32 %v3499_v11, %v3535_v22  ;;  %v1852_v27 = vmax.f32 %v1850_v1, %v3538_v25  ;;  %965 = vmax.xlane.f32.xlu0 %v964_v3  ;;  %968 = vmax.xlane.f32.xlu1 %v967_v18 }
 0x123   :  { %v970_v28 = vmax.f32 %v3524_v15, %v3535_v22  ;;  %v1018_v29 = vmax.f32 %v3527_v16, %v3538_v25 }
 0x126   :  { %1016 = vmax.xlane.f32.xlu0 %v1015_v19  ;;  %971 = vmax.xlane.f32.xlu1 %v970_v28  ;;  %v3547_v4 = vpop.f32.mrb[8].mxu0  ;;  %v3549_v30 = vpop.f32.mrb[8].mxu1 }
 0x127   :  { %5224 = vst [vmem:[#allocation22_spill] sm:$0xff] %v3549_v30  ;;  %v1799_v31 = vmax.f32 %v1797_v7, %v3547_v4  ;;  %v3552_v32 = vpop.f32.mrb[9].mxu0  ;;  %v1812_v33 = vmax.f32 %v3549_v30, %v1815_v24  ;;  %v3555_v8 = vpop.f32.mrb[9].mxu1 }
 0x128   :  { %5225 = vst [vmem:[#allocation23_spill] sm:$0xff] %v3552_v32  ;;  %5226 = vst [vmem:[#allocation24_spill] sm:$0xff] %v3555_v8  ;;  %v1836_v34 = vmax.f32 %v1834_v14, %v3552_v32  ;;  %v3558_v35 = vpop.f32.mrb[10].mxu0  ;;  %v1849_v36 = vmax.f32 %v3555_v8, %v1852_v27  ;;  %v3561_v37 = vpop.f32.mrb[10].mxu1  ;;  %v973_v5 = vmax.f32 %v3547_v4, %v3552_v32 }
 0x129   :  { %5227 = vst [vmem:[#allocation25_spill] sm:$0xff] %v3561_v37  ;;  %v1021_v38 = vmax.f32 %v3549_v30, %v3555_v8  ;;  %v1800_v39 = vmax.f32 %v1798_v20, %v3558_v35  ;;  %v3568_v40 = vpop.f32.mrb[11].mxu0  ;;  %v1814_v23 = vmax.f32 %v1812_v33, %v3561_v37  ;;  %v3571_v17 = vpop.f32.mrb[11].mxu1 }
 0x12a   :  { %5228 = vst [vmem:[#allocation26_spill] sm:$0xff] %v3568_v40  ;;  %5229 = vst [vmem:[#allocation27_spill] sm:$0xff] %v3571_v17  ;;  %v1837_v41 = vmax.f32 %v1835_v26, %v3568_v40  ;;  %v1851_v42 = vmax.f32 %v1849_v36, %v3571_v17  ;;  %1019 = vmax.xlane.f32.xlu1 %v1018_v29  ;;  %974 = vmax.xlane.f32.xlu0 %v973_v5 }
 0x12b   :  { %v976_v43 = vmax.f32 %v3558_v35, %v3568_v40  ;;  %v1024_v44 = vmax.f32 %v3561_v37, %v3571_v17 }
 0x12e   :  { %1022 = vmax.xlane.f32.xlu0 %v1021_v38  ;;  %977 = vmax.xlane.f32.xlu1 %v976_v43  ;;  %v3579_v45 = vpop.f32.mrb[12].mxu0  ;;  %v3581_v46 = vpop.f32.mrb[12].mxu1 }
 0x12f   :  { %5230 = vst [vmem:[#allocation28_spill] sm:$0xff] %v3579_v45  ;;  %5231 = vst [vmem:[#allocation29_spill] sm:$0xff] %v3581_v46  ;;  %v1801_v47 = vmax.f32 %v1799_v31, %v3579_v45  ;;  %v3584_v48 = vpop.f32.mrb[13].mxu0  ;;  %v1816_v50 = vmax.f32 %v1814_v23, %v3581_v46  ;;  %v3587_v51 = vpop.f32.mrb[13].mxu1 }
 0x130   :  { %5232 = vst [vmem:[#allocation30_spill] sm:$0xff] %v3584_v48  ;;  %5233 = vst [vmem:[#allocation31_spill] sm:$0xff] %v3587_v51  ;;  %v1838_v52 = vmax.f32 %v1836_v34, %v3584_v48  ;;  %v3590_v61 = vpop.f32.mrb[14].mxu0  ;;  %v1853_v62 = vmax.f32 %v1851_v42, %v3587_v51  ;;  %v3593_v63 = vpop.f32.mrb[14].mxu1  ;;  %v979_v0 = vmax.f32 %v3579_v45, %v3584_v48 }
 0x131   :  { %5234 = vst [vmem:[#allocation32_spill] sm:$0xff] %v3590_v61  ;;  %5235 = vst [vmem:[#allocation33_spill] sm:$0xff] %v3593_v63  ;;  %v1027_v2 = vmax.f32 %v3581_v46, %v3587_v51  ;;  %v1802_v3 = vmax.f32 %v1800_v39, %v3590_v61  ;;  %v3600_v7 = vpop.f32.mrb[15].mxu0  ;;  %v1817_v12 = vmax.f32 %v3593_v63, %v1816_v50  ;;  %v3603_v14 = vpop.f32.mrb[15].mxu1 }
 0x132   :  { %5236 = vst [vmem:[#allocation34_spill] sm:$0xff] %v3600_v7  ;;  %5237 = vst [vmem:[#allocation35_spill] sm:$0xff] %v3603_v14  ;;  %v1839_v1 = vmax.f32 %v1837_v41, %v3600_v7  ;;  %v1854_v18 = vmax.f32 %v3603_v14, %v1853_v62  ;;  %1025 = vmax.xlane.f32.xlu1 %v1024_v44  ;;  %980 = vmax.xlane.f32.xlu0 %v979_v0 }
 0x133   :  { %v982_v19 = vmax.f32 %v3590_v61, %v3600_v7  ;;  %v1030_v20 = vmax.f32 %v3593_v63, %v3603_v14 }
 0x136   :  { %1028 = vmax.xlane.f32.xlu0 %v1027_v2  ;;  %983 = vmax.xlane.f32.xlu1 %v982_v19  ;;  %v3611_v24 = vpop.f32.mrb[16].mxu0  ;;  %v3613_v26 = vpop.f32.mrb[16].mxu1 }
 0x137   :  { %5238 = vst [vmem:[#allocation36_spill] sm:$0xff] %v3611_v24  ;;  %5239 = vst [vmem:[#allocation37_spill] sm:$0xff] %v3613_v26  ;;  %v1803_v27 = vmax.f32 %v1801_v47, %v3611_v24  ;;  %v3616_v28 = vpop.f32.mrb[17].mxu0  ;;  %v1819_v29 = vmax.f32 %v1817_v12, %v3613_v26  ;;  %v3619_v31 = vpop.f32.mrb[17].mxu1 }
 0x138   :  { %5240 = vst [vmem:[#allocation38_spill] sm:$0xff] %v3616_v28  ;;  %5241 = vst [vmem:[#allocation39_spill] sm:$0xff] %v3619_v31  ;;  %v1840_v33 = vmax.f32 %v1838_v52, %v3616_v28  ;;  %v3622_v34 = vpop.f32.mrb[18].mxu0  ;;  %v1856_v36 = vmax.f32 %v1854_v18, %v3619_v31  ;;  %v3625_v5 = vpop.f32.mrb[18].mxu1  ;;  %v985_v38 = vmax.f32 %v3611_v24, %v3616_v28 }
 0x139   :  { %5242 = vst [vmem:[#allocation40_spill] sm:$0xff] %v3622_v34  ;;  %5243 = vst [vmem:[#allocation41_spill] sm:$0xff] %v3625_v5  ;;  %v1033_v39 = vmax.f32 %v3613_v26, %v3619_v31  ;;  %v1804_v23 = vmax.f32 %v1802_v3, %v3622_v34  ;;  %v3632_v41 = vpop.f32.mrb[19].mxu0  ;;  %v1821_v42 = vmax.f32 %v1819_v29, %v3625_v5  ;;  %v3635_v43 = vpop.f32.mrb[19].mxu1 }
 0x13a   :  { %5244 = vst [vmem:[#allocation42_spill] sm:$0xff] %v3635_v43  ;;  %v1841_v44 = vmax.f32 %v1839_v1, %v3632_v41  ;;  %v1858_v47 = vmax.f32 %v1856_v36, %v3635_v43  ;;  %1031 = vmax.xlane.f32.xlu1 %v1030_v20  ;;  %986 = vmax.xlane.f32.xlu0 %v985_v38 }
 0x13b   :  { %v988_v50 = vmax.f32 %v3622_v34, %v3632_v41  ;;  %v1036_v52 = vmax.f32 %v3625_v5, %v3635_v43 }
 0x13e   :  { %1034 = vmax.xlane.f32.xlu0 %v1033_v39  ;;  %989 = vmax.xlane.f32.xlu1 %v988_v50  ;;  %v3643_v62 = vpop.f32.mrb[20].mxu0  ;;  %v3645_v0 = vpop.f32.mrb[20].mxu1 }
 0x13f   :  { %5245 = vst [vmem:[#allocation43_spill] sm:$0xff] %v3645_v0  ;;  %v1805_v2 = vmax.f32 %v1803_v27, %v3643_v62  ;;  %v3648_v3 = vpop.f32.mrb[21].mxu0  ;;  %v1823_v12 = vmax.f32 %v1821_v42, %v3645_v0  ;;  %v3651_v1 = vpop.f32.mrb[21].mxu1 }
 0x140   :  { %5246 = vst [vmem:[#allocation44_spill] sm:$0xff] %v3651_v1  ;;  %v1842_v18 = vmax.f32 %v1840_v33, %v3648_v3  ;;  %v3654_v19 = vpop.f32.mrb[22].mxu0  ;;  %v1860_v20 = vmax.f32 %v1858_v47, %v3651_v1  ;;  %v3657_v29 = vpop.f32.mrb[22].mxu1  ;;  %v991_v36 = vmax.f32 %v3643_v62, %v3648_v3  ;;  %v1039_v27 = vmax.f32 %v3645_v0, %v3651_v1 }
 0x141   :  { %5247 = vst [vmem:[#allocation45_spill] sm:$0xff] %v3657_v29  ;;  %v1806_v38 = vmax.f32 %v1804_v23, %v3654_v19  ;;  %v3664_v39 = vpop.f32.mrb[23].mxu0  ;;  %v1825_v42 = vmax.f32 %v1823_v12, %v3657_v29  ;;  %v3667_v50 = vpop.f32.mrb[23].mxu1 }
 0x142   :  { %5248 = vst [vmem:[#allocation46_spill] sm:$0xff] %v3667_v50  ;;  %v1843_v33 = vmax.f32 %v1841_v44, %v3664_v39  ;;  %v1862_v47 = vmax.f32 %v1860_v20, %v3667_v50  ;;  %1037 = vmax.xlane.f32.xlu1 %v1036_v52  ;;  %992 = vmax.xlane.f32.xlu0 %v991_v36 }
 0x143   :  { %v994_v55 = vmax.f32 %v3654_v19, %v3664_v39  ;;  %v1042_v23 = vmax.f32 %v3657_v29, %v3667_v50 }
 0x146   :  { %1040 = vmax.xlane.f32.xlu0 %v1039_v27  ;;  %995 = vmax.xlane.f32.xlu1 %v994_v55  ;;  %v3678_v12 = vpop.f32.mrb[24].mxu0  ;;  %v3680_v44 = vpop.f32.mrb[24].mxu1 }
 0x147   :  { %5249 = vst [vmem:[#allocation47_spill] sm:$0xff] %v3680_v44  ;;  %v1807_v52 = vmax.f32 %v1805_v2, %v3678_v12  ;;  %v3683_v20 = vpop.f32.mrb[25].mxu0  ;;  %v1818_v36 = vmax.f32 %v3680_v44, %v1825_v42  ;;  %v3686_v1 = vpop.f32.mrb[25].mxu1 }
 0x148   :  { %5250 = vst [vmem:[#allocation48_spill] sm:$0xff] %v3686_v1  ;;  %v1844_v0 = vmax.f32 %v1842_v18, %v3683_v20  ;;  %v3689_v53 = vpop.f32.mrb[26].mxu0  ;;  %v1855_v50 = vmax.f32 %v3686_v1, %v1862_v47  ;;  %v3692_v27 = vpop.f32.mrb[26].mxu1  ;;  %v997_v55 = vmax.f32 %v3678_v12, %v3683_v20  ;;  %v1045_v2 = vmax.f32 %v3680_v44, %v3686_v1  ;;  %v5278_v54 = vld [vmem:[#allocation45_spill] sm:$0xff] }
 0x149   :  { %5251 = vst [vmem:[#allocation49_spill] sm:$0xff] %v3692_v27  ;;  %v1808_v29 = vmax.f32 %v1806_v38, %v3689_v53  ;;  %v3699_v43 = vpop.f32.mrb[27].mxu0  ;;  %v1820_v42 = vmax.f32 %v1818_v36, %v3692_v27  ;;  %v3702_v5 = vpop.f32.mrb[27].mxu1 }
 0x14a   :  { %5252 = vst [vmem:[#allocation50_spill] sm:$0xff] %v3702_v5  ;;  %v1857_v18 = vmax.f32 %v1855_v50, %v3702_v5  ;;  %1043 = vmax.xlane.f32.xlu1 %v1042_v23  ;;  %998 = vmax.xlane.f32.xlu0 %v997_v55  ;;  %v1000_v47 = vmax.f32 %v3689_v53, %v3699_v43 }
 0x14b   :  { %v1845_v31 = vmax.f32 %v1843_v33, %v3699_v43  ;;  %v1048_v1 = vmax.f32 %v3692_v27, %v3702_v5 }
 0x14e   :  { %1046 = vmax.xlane.f32.xlu0 %v1045_v2  ;;  %1001 = vmax.xlane.f32.xlu1 %v1000_v47  ;;  %v3710_v38 = vpop.f32.mrb[28].mxu0  ;;  %v3712_v44 = vpop.f32.mrb[28].mxu1 }
 0x14f   :  { %v1809_v36 = vmax.f32 %v1807_v52, %v3710_v38  ;;  %v3715_v26 = vpop.f32.mrb[29].mxu0  ;;  %v3717_v50 = vpop.f32.mrb[29].mxu1 }
 0x150   :  { %5253 = vst [vmem:[#allocation51_spill] sm:$0xff] %v3715_v26  ;;  %v1846_v23 = vmax.f32 %v1844_v0, %v3715_v26  ;;  %v3720_v55 = vpop.f32.mrb[30].mxu0  ;;  %v1003_v33 = vmax.f32 %v3710_v38, %v3715_v26  ;;  %v3724_v5 = vpop.f32.mrb[30].mxu1  ;;  %v1051_v2 = vmax.f32 %v3712_v44, %v3717_v50 }
 0x151   :  { %5254 = vst [vmem:[#allocation52_spill] sm:$0xff] %v3720_v55  ;;  %5255 = vst [vmem:[#allocation53_spill] sm:$0xff] %v3724_v5  ;;  %v1822_v47 = vmax.f32 %v1820_v42, %v1809_v36  ;;  %v1810_v27 = vmax.f32 %v1808_v29, %v3720_v55  ;;  %v3729_v52 = vpop.f32.mrb[31].mxu0  ;;  %v3731_v14 = vpop.f32.mrb[31].mxu1 }
 0x152   :  { %5256 = vst [vmem:[#allocation54_spill] sm:$0xff] %v3729_v52  ;;  %v1859_v63 = vmax.f32 %v1857_v18, %v1846_v23  ;;  %v1847_v0 = vmax.f32 %v1845_v31, %v3729_v52  ;;  %1049 = vmax.xlane.f32.xlu1 %v1048_v1  ;;  %1004 = vmax.xlane.f32.xlu0 %v1003_v33 }
 0x153   :  { %v1006_v51 = vmax.f32 %v3720_v55, %v3729_v52  ;;  %v1824_v46 = vmax.f32 %v1822_v47, %v1810_v27  ;;  %v1054_v17 = vmax.f32 %v3724_v5, %v3731_v14  ;;  %v3176_v27 = vmov 1966171168  }
 0x154   :  { %v1861_v37 = vmax.f32 %v1859_v63, %v1847_v0  ;;  %v3742_v47 = vunpack.c.l.s4 %v3176_v27  ;;  %v3890_v27 = vld [vmem:[#allocation5] sm:$0x3] }
 0x155   :  { %v1826_v42 = vmax.f32 %v1824_v46, %v3712_v44  ;;  %5262 = vst [vmem:[#allocation57_spill] sm:$0xff] %v3890_v27 }
 0x156   :  { %v1863_v29 = vmax.f32 %v1861_v37, %v3717_v50  ;;  %1007 = vmax.xlane.f32.xlu1 %v1006_v51  ;;  %1052 = vmax.xlane.f32.xlu0 %v1051_v2  ;;  %v1876_v46 = vunpack.c.0.s8 %v3742_v47  ;;  %v5257_v51 = vlaneseq }
 0x157   :  { %v1827_v18 = vmax.f32 %v3724_v5, %v1826_v42  ;;  %v5259_v42 = vmov -1e+30  }
 0x158   :  { %v1864_v31 = vmax.f32 %v3731_v14, %v1863_v29  ;;  %v3750_v2 = vshrl.u32 %v5257_v51, 7  ;;  %37 = vst.msk [vmem:[#allocation3] sm:$0xff] %vm36_vm2, %v5259_v42  ;;  %38 = vst.msk [vmem:[#allocation3 + $0x8] sm:$0xff] %vm36_vm2, %v5259_v42 }
 0x159   :  { %v1828_v1 = vrot.slane %v1827_v18, 4  ;;  %39 = vst.msk [vmem:[#allocation3 + $0x10] sm:$0xff] %vm36_vm2, %v5259_v42  ;;  %40 = vst.msk [vmem:[#allocation3 + $0x18] sm:$0xff] %vm36_vm2, %v5259_v42 }
 0x15a   :  { %v1865_v36 = vrot.slane %v1864_v31, 4  ;;  %1055 = vmax.xlane.f32.xlu1 %v1054_v17  ;;  %5258 = vst [vmem:[#allocation55_spill] sm:$0xff] %v3750_v2  ;;  %41 = vst.msk [vmem:[#allocation3 + $0x20] sm:$0xff] %vm36_vm2, %v5259_v42  ;;  %v5260_v17 = vmov 0.0   ;;  %v5129_v51 = vsub.s32 0, %v3750_v2 }
 0x15b   :  { %v1829_v23 = vmax.f32 %v1827_v18, %v1828_v1  ;;  %42 = vst.msk [vmem:[#allocation3 + $0x28] sm:$0xff] %vm36_vm2, %v5259_v42  ;;  %43 = vst.msk [vmem:[#allocation3 + $0x30] sm:$0xff] %vm36_vm2, %v5259_v42 }
 0x15c   :  { %v1866_v33 = vmax.f32 %v1864_v31, %v1865_v36  ;;  %44 = vst.msk [vmem:[#allocation3 + $0x38] sm:$0xff] %vm36_vm2, %v5259_v42  ;;  %45 = vst.msk [vmem:[#allocation3 + $0x40] sm:$0xff] %vm36_vm2, %v5259_v42  ;;  %v3887_v36 = vsub.s32 %v1876_v46, %v3750_v2 }
 0x15d   :  { %v1830_v8 = vrot.slane %v1829_v23, 2  ;;  %46 = vst.msk [vmem:[#allocation3 + $0x48] sm:$0xff] %vm36_vm2, %v5259_v42  ;;  %47 = vst.msk [vmem:[#allocation3 + $0x50] sm:$0xff] %vm36_vm2, %v5259_v42 }
 0x15e   :  { %v1867_v63 = vrot.slane %v1866_v33, 2  ;;  %48 = vst.msk [vmem:[#allocation3 + $0x58] sm:$0xff] %vm36_vm2, %v5259_v42  ;;  %49 = vst.msk [vmem:[#allocation3 + $0x60] sm:$0xff] %vm36_vm2, %v5259_v42 }
 0x15f   :  { %v3744_v0 = vmax.f32 %v1829_v23, %v1830_v8  ;;  %50 = vst.msk [vmem:[#allocation3 + $0x68] sm:$0xff] %vm36_vm2, %v5259_v42  ;;  %51 = vst.msk [vmem:[#allocation3 + $0x70] sm:$0xff] %vm36_vm2, %v5259_v42  ;;  %v3177_v8 = vmov 0  }
 0x160   :  { %v3746_v37 = vmax.f32 %v1866_v33, %v1867_v63  ;;  %52 = vst.msk [vmem:[#allocation3 + $0x78] sm:$0xff] %vm36_vm2, %v5259_v42  ;;  %53 = vst.msk [vmem:[#allocation3 + $0x80] sm:$0xff] %vm36_vm2, %v5259_v42  ;;  %2704 = vset.pattern.permute.xlu0 %v3177_v8  ;;  %2705 = vset.pattern.permute.xlu1 %v3177_v8  ;;  %v5282_v8 = vld [vmem:[#allocation49_spill] sm:$0xff] }
 0x161   :  { %54 = vst.msk [vmem:[#allocation3 + $0x88] sm:$0xff] %vm36_vm2, %v5259_v42  ;;  %55 = vst.msk [vmem:[#allocation3 + $0x90] sm:$0xff] %vm36_vm2, %v5259_v42  ;;  %v1832_v29 = vrot.slane %v3744_v0, 1 }
 0x162   :  { %56 = vst.msk [vmem:[#allocation3 + $0x98] sm:$0xff] %vm36_vm2, %v5259_v42  ;;  %57 = vst.msk [vmem:[#allocation3 + $0xa0] sm:$0xff] %vm36_vm2, %v5259_v42  ;;  %v1869_v18 = vrot.slane %v3746_v37, 1 }
 0x163   :  { %58 = vst.msk [vmem:[#allocation3 + $0xa8] sm:$0xff] %vm36_vm2, %v5259_v42  ;;  %59 = vst.msk [vmem:[#allocation3 + $0xb0] sm:$0xff] %vm36_vm2, %v5259_v42  ;;  %v1833_v31 = vmax.f32 %v3744_v0, %v1832_v29  ;;  %v5267_v29 = vld [vmem:[#allocation27_spill] sm:$0xff] }
 0x164   :  { %60 = vst.msk [vmem:[#allocation3 + $0xb8] sm:$0xff] %vm36_vm2, %v5259_v42  ;;  %61 = vst.msk [vmem:[#allocation3 + $0xc0] sm:$0xff] %vm36_vm2, %v5259_v42  ;;  %v1870_v1 = vmax.f32 %v3746_v37, %v1869_v18  ;;  %v5266_v18 = vld [vmem:[#allocation25_spill] sm:$0xff] }
 0x165   :  { %62 = vst.msk [vmem:[#allocation3 + $0xc8] sm:$0xff] %vm36_vm2, %v5259_v42  ;;  %63 = vst.msk [vmem:[#allocation3 + $0xd0] sm:$0xff] %vm36_vm2, %v5259_v42 }
 0x166   :  { %64 = vst.msk [vmem:[#allocation3 + $0xd8] sm:$0xff] %vm36_vm2, %v5259_v42  ;;  %65 = vst.msk [vmem:[#allocation3 + $0xe0] sm:$0xff] %vm36_vm2, %v5259_v42  ;;  %v1873_v23 = vcombine.low %v1833_v31, %v1870_v1  ;;  %v3993_v31 = vpop.xlane.xlu1 %759 }
 0x167   :  { %66 = vst.msk [vmem:[#allocation3 + $0xe8] sm:$0xff] %vm36_vm2, %v5259_v42  ;;  %67 = vst.msk [vmem:[#allocation3 + $0xf0] sm:$0xff] %vm36_vm2, %v5259_v42 }
 0x168   :  { %68 = vst.msk [vmem:[#allocation3 + $0xf8] sm:$0xff] %vm36_vm2, %v5259_v42  ;;  %69 = vst.msk [vmem:[#allocation4] sm:$0xff] %vm36_vm2, %v5260_v17  ;;  %v1880_v33 = vrot.slane %v1873_v23, %v3887_v36  ;;  %v5128_v42 = vsub.s32 1, %v3750_v2  ;;  %v5265_v23 = vld [vmem:[#allocation24_spill] sm:$0xff] }
 0x169   :  { %70 = vst.msk [vmem:[#allocation4 + $0x8] sm:$0xff] %vm36_vm2, %v5260_v17  ;;  %71 = vst.msk [vmem:[#allocation4 + $0x10] sm:$0xff] %vm36_vm2, %v5260_v17 }
 0x16a   :  { %72 = vst.msk [vmem:[#allocation4 + $0x18] sm:$0xff] %vm36_vm2, %v5260_v17  ;;  %73 = vst.msk [vmem:[#allocation4 + $0x20] sm:$0xff] %vm36_vm2, %v5260_v17  ;;  %v1887_v63 = vrot.slane %v1880_v33, %v3887_v36 }
 0x16b   :  { %74 = vst.msk [vmem:[#allocation4 + $0x28] sm:$0xff] %vm36_vm2, %v5260_v17  ;;  %75 = vst.msk [vmem:[#allocation4 + $0x30] sm:$0xff] %vm36_vm2, %v5260_v17 }
 0x16c   :  { %76 = vst.msk [vmem:[#allocation4 + $0x38] sm:$0xff] %vm36_vm2, %v5260_v17  ;;  %77 = vst.msk [vmem:[#allocation4 + $0x40] sm:$0xff] %vm36_vm2, %v5260_v17  ;;  %v3896_v0 = vmax.f32 %v3890_v27, %v1887_v63  ;;  %v5281_v27 = vld [vmem:[#allocation48_spill] sm:$0xff] }
 0x16d   :  { %78 = vst.msk [vmem:[#allocation4 + $0x48] sm:$0xff] %vm36_vm2, %v5260_v17  ;;  %79 = vst.msk [vmem:[#allocation4 + $0x50] sm:$0xff] %vm36_vm2, %v5260_v17 }
 0x16e   :  { %80 = vst.msk [vmem:[#allocation4 + $0x58] sm:$0xff] %vm36_vm2, %v5260_v17  ;;  %81 = vst.msk [vmem:[#allocation4 + $0x60] sm:$0xff] %vm36_vm2, %v5260_v17  ;;  %v3901_v47 = vrot.slane %v3896_v0, %v5129_v51  ;;  %v3906_v37 = vrot.slane %v3896_v0, %v5128_v42 }
 0x16f   :  { %82 = vst.msk [vmem:[#allocation4 + $0x68] sm:$0xff] %vm36_vm2, %v5260_v17  ;;  %83 = vst.msk [vmem:[#allocation4 + $0x70] sm:$0xff] %vm36_vm2, %v5260_v17 }
 0x170   :  { %84 = vst.msk [vmem:[#allocation4 + $0x78] sm:$0xff] %vm36_vm2, %v5260_v17  ;;  %85 = vst.msk [vmem:[#allocation4 + $0x80] sm:$0xff] %vm36_vm2, %v5260_v17  ;;  %v5285_v46 = vsub.f32 %v3483_v56, %v3901_v47  ;;  %v5286_v1 = vsub.f32 %v3487_v49, %v3906_v37  ;;  %v5287_v2 = vsub.f32 %v3491_v59, %v3901_v47 }
 0x171   :  { %86 = vst.msk [vmem:[#allocation4 + $0x88] sm:$0xff] %vm36_vm2, %v5260_v17  ;;  %87 = vst.msk [vmem:[#allocation4 + $0x90] sm:$0xff] %vm36_vm2, %v5260_v17  ;;  %v5288_v63 = vsub.f32 %v3499_v11, %v3906_v37 }
 0x172   :  { %88 = vst.msk [vmem:[#allocation4 + $0x98] sm:$0xff] %vm36_vm2, %v5260_v17  ;;  %89 = vst.msk [vmem:[#allocation4 + $0xa0] sm:$0xff] %vm36_vm2, %v5260_v17  ;;  %v1965_v51 = vmul.f32 1.442695, %v5285_v46  ;;  %v1969_v33 = vmul.f32 1.442695, %v5287_v2  ;;  %v5290_v46 = vsub.f32 %v3511_v6, %v3901_v47  ;;  %v5292_v2 = vsub.f32 %v3524_v15, %v3901_v47 }
 0x173   :  { %90 = vst.msk [vmem:[#allocation4 + $0xa8] sm:$0xff] %vm36_vm2, %v5260_v17  ;;  %91 = vst.msk [vmem:[#allocation4 + $0xb0] sm:$0xff] %vm36_vm2, %v5260_v17  ;;  %v1971_v5 = vmul.f32 1.442695, %v5288_v63 }
 0x174   :  { %92 = vst.msk [vmem:[#allocation4 + $0xb8] sm:$0xff] %vm36_vm2, %v5260_v17  ;;  %93 = vst.msk [vmem:[#allocation4 + $0xc0] sm:$0xff] %vm36_vm2, %v5260_v17  ;;  %2738 = vpow2.f32 %v1965_v51  ;;  %v1977_v59 = vmul.f32 1.442695, %v5292_v2  ;;  %v5293_v51 = vsub.f32 %v3535_v22, %v3906_v37 }
 0x175   :  { %94 = vst.msk [vmem:[#allocation4 + $0xc8] sm:$0xff] %vm36_vm2, %v5260_v17  ;;  %95 = vst.msk [vmem:[#allocation4 + $0xd0] sm:$0xff] %vm36_vm2, %v5260_v17 }
 0x176   :  { %96 = vst.msk [vmem:[#allocation4 + $0xd8] sm:$0xff] %vm36_vm2, %v5260_v17  ;;  %97 = vst.msk [vmem:[#allocation4 + $0xe0] sm:$0xff] %vm36_vm2, %v5260_v17  ;;  %v1979_v63 = vmul.f32 1.442695, %v5293_v51 }
 0x177   :  { %98 = vst.msk [vmem:[#allocation4 + $0xe8] sm:$0xff] %vm36_vm2, %v5260_v17  ;;  %99 = vst.msk [vmem:[#allocation4 + $0xf0] sm:$0xff] %vm36_vm2, %v5260_v17 }
 0x178   :  { %100 = vst.msk [vmem:[#allocation4 + $0xf8] sm:$0xff] %vm36_vm2, %v5260_v17  ;;  %5261 = vst [vmem:[#allocation56_spill] sm:$0xff] %v3887_v36  ;;  %v5279_v36 = vld [vmem:[#allocation46_spill] sm:$0xff]  ;;  %v1967_v17 = vmul.f32 1.442695, %v5286_v1  ;;  %v5291_v1 = vsub.f32 %v3517_v10, %v3906_v37 }
 0x179   :  { %5263 = vst [vmem:[#allocation58_spill] sm:$0xff] %v3896_v0  ;;  %2197 = vst.msk [vmem:[#allocation5] sm:$0x3] %vm3476_vm1, %v3896_v0  ;;  %v4043_v0 = vpop.xlane.xlu1 %762 }
 0x17a   :  { %5264 = vst [vmem:[#allocation59_spill] sm:$0xff] %v3993_v31  ;;  %v5277_v31 = vld [vmem:[#allocation44_spill] sm:$0xff]  ;;  %5284 = vst [vmem:[#allocation25_spill] sm:$0xff] %v4043_v0  ;;  %2740 = vpow2.f32 %v1967_v17  ;;  %v1973_v0 = vmul.f32 1.442695, %v5290_v46  ;;  %v5294_v17 = vsub.f32 %v3547_v4, %v3901_v47 }
 0x17b   :  { %2742 = vpow2.f32 %v1969_v33  ;;  %v1975_v49 = vmul.f32 1.442695, %v5291_v1  ;;  %v5297_v1 = vsub.f32 %v3558_v35, %v3901_v47 }
 0x17c   :  { %2744 = vpow2.f32 %v1971_v5  ;;  %v1981_v33 = vmul.f32 1.442695, %v5294_v17  ;;  %v5296_v5 = vsub.f32 %v3552_v32, %v3906_v37  ;;  %v5299_v17 = vsub.f32 %v3579_v45, %v3901_v47 }
 0x17d   :  { %v4057_v42 = vpop.xlane.xlu1 %765  ;;  %2746 = vpow2.f32 %v1973_v0  ;;  %v1985_v2 = vmul.f32 1.442695, %v5297_v1  ;;  %v5298_v0 = vsub.f32 %v3568_v40, %v3906_v37 }
 0x17e   :  { %5289 = vst [vmem:[#allocation27_spill] sm:$0xff] %v4057_v42  ;;  %2748 = vpow2.f32 %v1975_v49  ;;  %v1983_v46 = vmul.f32 1.442695, %v5296_v5  ;;  %v2739_v22 = vpop.eup %2738  ;;  %v1989_v49 = vmul.f32 1.442695, %v5299_v17 }
 0x17f   :  { %2750 = vpow2.f32 %v1977_v59  ;;  %v1987_v51 = vmul.f32 1.442695, %v5298_v0  ;;  %v5300_v59 = vsub.f32 %v3584_v48, %v3906_v37 }
 0x180   :  { %2752 = vpow2.f32 %v1979_v63  ;;  %v5301_v63 = vsub.f32 %v3590_v61, %v3901_v47 }
 0x181   :  { %v4074_v42 = vpop.xlane.xlu1 %768  ;;  %2754 = vpow2.f32 %v1981_v33  ;;  %v1991_v5 = vmul.f32 1.442695, %v5300_v59  ;;  %v5303_v33 = vsub.f32 %v3600_v7, %v3906_v37 }
 0x182   :  { %5295 = vst [vmem:[#allocation45_spill] sm:$0xff] %v4074_v42  ;;  %2756 = vpow2.f32 %v1983_v46  ;;  %v1993_v1 = vmul.f32 1.442695, %v5301_v63  ;;  %v5304_v46 = vsub.f32 %v3611_v24, %v3901_v47  ;;  %v5306_v63 = vsub.f32 %v3622_v34, %v3901_v47 }
 0x183   :  { %2758 = vpow2.f32 %v1985_v2  ;;  %v1995_v17 = vmul.f32 1.442695, %v5303_v33  ;;  %v5305_v2 = vsub.f32 %v3616_v28, %v3906_v37 }
 0x184   :  { %v2741_v42 = vpop.eup %2740  ;;  %2760 = vpow2.f32 %v1987_v51  ;;  %v1997_v48 = vmul.f32 1.442695, %v5304_v46  ;;  %v2001_v51 = vmul.f32 1.442695, %v5306_v63 }
 0x185   :  { %v2743_v32 = vpop.eup %2742  ;;  %v4094_v40 = vpop.xlane.xlu1 %771  ;;  %2762 = vpow2.f32 %v1989_v49  ;;  %v1999_v59 = vmul.f32 1.442695, %v5305_v2  ;;  %v5307_v49 = vsub.f32 %v3632_v41, %v3906_v37 }
 0x186   :  { %5302 = vst [vmem:[#allocation46_spill] sm:$0xff] %v4094_v40  ;;  %v2745_v0 = vpop.eup %2744  ;;  %2764 = vpow2.f32 %v1991_v5  ;;  %v2099_v40 = vadd.f32 %v2743_v32, %v2739_v22  ;;  %v5308_v5 = vsub.f32 %v3643_v62, %v3901_v47  ;;  %v5310_v22 = vsub.f32 %v3648_v3, %v3906_v37 }
 0x187   :  { %v2747_v61 = vpop.eup %2746  ;;  %2766 = vpow2.f32 %v1993_v1  ;;  %v2136_v45 = vadd.f32 %v2745_v0, %v2741_v42  ;;  %v2003_v33 = vmul.f32 1.442695, %v5307_v49  ;;  %v5311_v0 = vsub.f32 %v3654_v19, %v3901_v47 }
 0x188   :  { %v2749_v7 = vpop.eup %2748  ;;  %2768 = vpow2.f32 %v1995_v17  ;;  %v2005_v2 = vmul.f32 1.442695, %v5308_v5  ;;  %v2100_v28 = vadd.f32 %v2747_v61, %v2099_v40  ;;  %v2007_v32 = vmul.f32 1.442695, %v5310_v22 }
 0x189   :  { %v2751_v46 = vpop.eup %2750  ;;  %2770 = vpow2.f32 %v1997_v48  ;;  %v2137_v1 = vadd.f32 %v2749_v7, %v2136_v45  ;;  %v4114_v24 = vpop.xlane.xlu1 %774  ;;  %v2009_v48 = vmul.f32 1.442695, %v5311_v0  ;;  %v5312_v40 = vsub.f32 %v3664_v39, %v3906_v37 }
 0x18a   :  { %5309 = vst [vmem:[#allocation49_spill] sm:$0xff] %v4114_v24  ;;  %v2753_v34 = vpop.eup %2752  ;;  %2772 = vpow2.f32 %v1999_v59  ;;  %v2101_v17 = vadd.f32 %v2751_v46, %v2100_v28  ;;  %v5313_v7 = vsub.f32 %v3678_v12, %v3901_v47  ;;  %v5314_v28 = vsub.f32 %v3683_v20, %v3906_v37 }
 0x18b   :  { %v2755_v42 = vpop.eup %2754  ;;  %2774 = vpow2.f32 %v2001_v51  ;;  %v2138_v63 = vadd.f32 %v2753_v34, %v2137_v1  ;;  %v2011_v45 = vmul.f32 1.442695, %v5312_v40 }
 0x18c   :  { %v2757_v49 = vpop.eup %2756  ;;  %2776 = vpow2.f32 %v2003_v33  ;;  %v2013_v59 = vmul.f32 1.442695, %v5313_v7  ;;  %v2102_v5 = vadd.f32 %v2755_v42, %v2101_v17  ;;  %v2015_v34 = vmul.f32 1.442695, %v5314_v28 }
 0x18d   :  { %v2759_v61 = vpop.eup %2758  ;;  %2778 = vpow2.f32 %v2005_v2  ;;  %v2139_v51 = vadd.f32 %v2757_v49, %v2138_v63  ;;  %v5315_v33 = vsub.f32 %v3689_v53, %v3901_v47  ;;  %v4134_v40 = vpop.xlane.xlu1 %777  ;;  %v5317_v42 = vsub.f32 %v3699_v43, %v3906_v37 }
 0x18e   :  { %v2761_v22 = vpop.eup %2760  ;;  %2780 = vpow2.f32 %v2007_v32  ;;  %v2103_v0 = vadd.f32 %v2759_v61, %v2102_v5  ;;  %5316 = vst [vmem:[#allocation60_spill] sm:$0xff] %v4134_v40  ;;  %v5318_v63 = vsub.f32 %v3710_v38, %v3901_v47  ;;  %v5319_v61 = vsub.f32 %v3715_v26, %v3906_v37 }
 0x18f   :  { %v2763_v46 = vpop.eup %2762  ;;  %2782 = vpow2.f32 %v2009_v48  ;;  %v2017_v1 = vmul.f32 1.442695, %v5315_v33  ;;  %v2140_v2 = vadd.f32 %v2761_v22, %v2139_v51  ;;  %v2019_v32 = vmul.f32 1.442695, %v5317_v42 }
 0x190   :  { %v2765_v24 = vpop.eup %2764  ;;  %2784 = vpow2.f32 %v2011_v45  ;;  %v2021_v48 = vmul.f32 1.442695, %v5318_v63  ;;  %v2104_v49 = vadd.f32 %v2763_v46, %v2103_v0  ;;  %v2023_v5 = vmul.f32 1.442695, %v5319_v61  ;;  %v4154_v61 = vpop.xlane.xlu0 %756 }
 0x191   :  { %v2767_v17 = vpop.eup %2766  ;;  %2786 = vpow2.f32 %v2013_v59  ;;  %v2141_v7 = vadd.f32 %v2765_v24, %v2140_v2  ;;  %v5320_v45 = vsub.f32 %v3720_v55, %v3901_v47  ;;  %v5321_v46 = vsub.f32 %v3729_v52, %v3906_v37  ;;  %5323 = vst [vmem:[#allocation61_spill] sm:$0xff] %v4154_v61  ;;  %v4156_v40 = vpop.xlane.xlu1 %780  ;;  %v5359_v55 = vld [vmem:[#allocation41_spill] sm:$0xff] }
 0x192   :  { %v2769_v28 = vpop.eup %2768  ;;  %2788 = vpow2.f32 %v2015_v34  ;;  %v2105_v33 = vadd.f32 %v2767_v17, %v2104_v49  ;;  %v5322_v34 = vsub.f32 %v3485_v57, %v3901_v47  ;;  %5324 = vst [vmem:[#allocation62_spill] sm:$0xff] %v4156_v40 }
 0x193   :  { %v2771_v51 = vpop.eup %2770  ;;  %2790 = vpow2.f32 %v2017_v1  ;;  %v2025_v22 = vmul.f32 1.442695, %v5320_v45  ;;  %v2142_v59 = vadd.f32 %v2769_v28, %v2141_v7  ;;  %v2027_v24 = vmul.f32 1.442695, %v5321_v46 }
 0x194   :  { %v2773_v42 = vpop.eup %2772  ;;  %2792 = vpow2.f32 %v2019_v32  ;;  %v2029_v2 = vmul.f32 1.442695, %v5322_v34  ;;  %v2106_v63 = vadd.f32 %v2771_v51, %v2105_v33  ;;  %v5325_v32 = vsub.f32 %v3489_v58, %v3906_v37  ;;  %v4164_v51 = vld [vmem:[#allocation3] sm:$0xff] }
 0x195   :  { %v2775_v0 = vpop.eup %2774  ;;  %2794 = vpow2.f32 %v2021_v48  ;;  %v2143_v1 = vadd.f32 %v2773_v42, %v2142_v59  ;;  %v5326_v48 = vsub.f32 %v3493_v60, %v3901_v47  ;;  %5327 = vst [vmem:[#allocation63_spill] sm:$0xff] %v4164_v51  ;;  %v5328_v59 = vsub.f32 %v3503_v21, %v3906_v37 }
 0x196   :  { %v2777_v17 = vpop.eup %2776  ;;  %2796 = vpow2.f32 %v2023_v5  ;;  %v2031_v49 = vmul.f32 1.442695, %v5325_v32  ;;  %v2107_v45 = vadd.f32 %v2775_v0, %v2106_v63  ;;  %v5329_v34 = vsub.f32 %v3513_v9, %v3901_v47 }
 0x197   :  { %v2779_v7 = vpop.eup %2778  ;;  %2798 = vpow2.f32 %v2025_v22  ;;  %v2033_v28 = vmul.f32 1.442695, %v5326_v48  ;;  %v2144_v46 = vadd.f32 %v2777_v17, %v2143_v1  ;;  %v2035_v5 = vmul.f32 1.442695, %v5328_v59  ;;  %v4172_v48 = vld [vmem:[#allocation3 + $0x88] sm:$0xff] }
 0x198   :  { %v2781_v33 = vpop.eup %2780  ;;  %2800 = vpow2.f32 %v2027_v24  ;;  %v2037_v22 = vmul.f32 1.442695, %v5329_v34  ;;  %v2108_v32 = vadd.f32 %v2779_v7, %v2107_v45  ;;  %5330 = vst [vmem:[#allocation64_spill] sm:$0xff] %v4172_v48  ;;  %v5331_v24 = vsub.f32 %v3520_v13, %v3906_v37 }
 0x199   :  { %v2783_v42 = vpop.eup %2782  ;;  %2802 = vpow2.f32 %v2029_v2  ;;  %v2145_v40 = vadd.f32 %v2781_v33, %v2144_v46  ;;  %v5333_v2 = vsub.f32 %v3527_v16, %v3901_v47  ;;  %v4183_v33 = vld [vmem:[#allocation3 + $0x80] sm:$0xff] }
 0x19a   :  { %v2785_v0 = vpop.eup %2784  ;;  %2804 = vpow2.f32 %v2031_v49  ;;  %v2039_v63 = vmul.f32 1.442695, %v5331_v24  ;;  %v2109_v7 = vadd.f32 %v2783_v42, %v2108_v32  ;;  %5334 = vst [vmem:[#allocation66_spill] sm:$0xff] %v4183_v33  ;;  %v5335_v49 = vsub.f32 %v3538_v25, %v3906_v37 }
 0x19b   :  { %v2787_v17 = vpop.eup %2786  ;;  %2806 = vpow2.f32 %v2033_v28  ;;  %v2041_v59 = vmul.f32 1.442695, %v5333_v2  ;;  %v2146_v45 = vadd.f32 %v2785_v0, %v2145_v40 }
 0x19c   :  { %v2789_v34 = vpop.eup %2788  ;;  %2808 = vpow2.f32 %v2035_v5  ;;  %v2043_v24 = vmul.f32 1.442695, %v5335_v49  ;;  %v5337_v5 = vsub.f32 %v3549_v30, %v3901_v47  ;;  %v2110_v32 = vadd.f32 %v2787_v17, %v2109_v7 }
 0x19d   :  { %v2791_v40 = vpop.eup %2790  ;;  %2810 = vpow2.f32 %v2037_v22  ;;  %v2147_v0 = vadd.f32 %v2789_v34, %v2146_v45  ;;  %v5339_v17 = vsub.f32 %v5266_v18, %v3901_v47  ;;  %v4212_v34 = vld [vmem:[#allocation3 + $0x8] sm:$0xff] }
 0x19e   :  { %v2045_v42 = vmul.f32 1.442695, %v5337_v5  ;;  %v2793_v49 = vpop.eup %2792  ;;  %2812 = vpow2.f32 %v2039_v63  ;;  %v2111_v63 = vadd.f32 %v2791_v40, %v2110_v32  ;;  %5340 = vst [vmem:[#allocation68_spill] sm:$0xff] %v4212_v34  ;;  %v5343_v40 = vld [vmem:[#allocation29_spill] sm:$0xff] }
 0x19f   :  { %2814 = vpow2.f32 %v2041_v59  ;;  %v2049_v7 = vmul.f32 1.442695, %v5339_v17  ;;  %v2148_v45 = vadd.f32 %v2793_v49, %v2147_v0  ;;  %v5344_v32 = vsub.f32 %v5343_v40, %v3901_v47  ;;  %v5349_v40 = vld [vmem:[#allocation33_spill] sm:$0xff] }
 0x1a0   :  { %2816 = vpow2.f32 %v2043_v24 }
 0x1a1   :  { %2818 = vpow2.f32 %v2045_v42  ;;  %v2053_v0 = vmul.f32 1.442695, %v5344_v32  ;;  %v4239_v32 = vld [vmem:[#allocation3 + $0x90] sm:$0xff] }
 0x1a2   :  { %5351 = vst [vmem:[#allocation33_spill] sm:$0xff] %v4239_v32 }
 0x1a7   :  { %v963_v61 = vpop.xlane.xlu0 %962 }
 0x1a8   :  { %v4178_v1 = vmax.f32 %v4164_v51, %v963_v61  ;;  %v5338_v61 = vsub.f32 %v5265_v23, %v3906_v37 }
 0x1a9   :  { %v1014_v46 = vpop.xlane.xlu1 %1013 }
 0x1aa   :  { %5332 = vst [vmem:[#allocation65_spill] sm:$0xff] %v4178_v1  ;;  %1762 = vst.msk [vmem:[#allocation3] sm:$0xff] %vm36_vm2, %v4178_v1  ;;  %v4193_v28 = vmax.f32 %v4172_v48, %v1014_v46  ;;  %1091 = vperm.xlu0 %2704, %v4178_v1   ;;  %v2047_v51 = vmul.f32 1.442695, %v5338_v61  ;;  %v2795_v1 = vpop.eup %2794  ;;  %v4214_v61 = vld [vmem:[#allocation3 + $0x10] sm:$0xff]  ;;  %v5342_v46 = vsub.f32 %v5267_v29, %v3906_v37 }
 0x1ab   :  { %v1011_v2 = vpop.xlane.xlu0 %1010  ;;  %5341 = vst [vmem:[#allocation69_spill] sm:$0xff] %v4214_v61  ;;  %v2797_v5 = vpop.eup %2796  ;;  %v2112_v49 = vadd.f32 %v2795_v1, %v2111_v63  ;;  %v5350_v1 = vsub.f32 %v5349_v40, %v3901_v47 }
 0x1ac   :  { %5336 = vst [vmem:[#allocation67_spill] sm:$0xff] %v4193_v28  ;;  %1779 = vst.msk [vmem:[#allocation3 + $0x88] sm:$0xff] %vm36_vm2, %v4193_v28  ;;  %v4207_v22 = vmax.f32 %v4183_v33, %v1011_v2  ;;  %v2051_v48 = vmul.f32 1.442695, %v5342_v46  ;;  %v2799_v59 = vpop.eup %2798  ;;  %v2149_v24 = vadd.f32 %v2797_v5, %v2148_v45  ;;  %2820 = vpow2.f32 %v2047_v51  ;;  %v5345_v46 = vld [vmem:[#allocation31_spill] sm:$0xff] }
 0x1ad   :  { %v2801_v30 = vpop.eup %2800  ;;  %v5346_v2 = vsub.f32 %v5345_v46, %v3906_v37  ;;  %2822 = vpow2.f32 %v2049_v7  ;;  %v2057_v63 = vmul.f32 1.442695, %v5350_v1  ;;  %v2113_v45 = vadd.f32 %v2799_v59, %v2112_v49  ;;  %v5352_v46 = vld [vmem:[#allocation35_spill] sm:$0xff]  ;;  %v5355_v59 = vld [vmem:[#allocation37_spill] sm:$0xff] }
 0x1ae   :  { %1778 = vst.msk [vmem:[#allocation3 + $0x80] sm:$0xff] %vm36_vm2, %v4207_v22  ;;  %1176 = vperm.xlu0 %2704, %v4193_v28   ;;  %v2803_v42 = vpop.eup %2802  ;;  %v2150_v5 = vadd.f32 %v2801_v30, %v2149_v24  ;;  %2824 = vpow2.f32 %v2051_v48  ;;  %v4253_v30 = vld [vmem:[#allocation3 + $0x18] sm:$0xff]  ;;  %v5356_v49 = vsub.f32 %v5355_v59, %v3901_v47 }
 0x1af   :  { %v966_v17 = vpop.xlane.xlu0 %965  ;;  %v969_v23 = vpop.xlane.xlu1 %968  ;;  %v2055_v33 = vmul.f32 1.442695, %v5346_v2  ;;  %v5353_v2 = vsub.f32 %v5352_v46, %v3906_v37  ;;  %5354 = vst [vmem:[#allocation35_spill] sm:$0xff] %v4253_v30  ;;  %2826 = vpow2.f32 %v2053_v0  ;;  %v2114_v1 = vadd.f32 %v2803_v42, %v2113_v45  ;;  %v5357_v7 = vld [vmem:[#allocation39_spill] sm:$0xff] }
 0x1b0   :  { %v4231_v13 = vmax.f32 %v4212_v34, %v966_v17  ;;  %v4234_v28 = vmax.f32 %v4214_v61, %v969_v23  ;;  %v2805_v51 = vpop.eup %2804  ;;  %v2061_v24 = vmul.f32 1.442695, %v5356_v49  ;;  %v5358_v61 = vsub.f32 %v5357_v7, %v3906_v37  ;;  %v5366_v59 = vld [vmem:[#allocation43_spill] sm:$0xff] }
 0x1b1   :  { %v2059_v17 = vmul.f32 1.442695, %v5353_v2  ;;  %v2807_v48 = vpop.eup %2806  ;;  %v2151_v2 = vadd.f32 %v2805_v51, %v2150_v5  ;;  %2828 = vpow2.f32 %v2055_v33  ;;  %v4270_v5 = vld [vmem:[#allocation3 + $0x98] sm:$0xff]  ;;  %v4272_v33 = vld [vmem:[#allocation3 + $0x20] sm:$0xff] }
 0x1b2   :  { %5347 = vst [vmem:[#allocation70_spill] sm:$0xff] %v4231_v13  ;;  %5348 = vst [vmem:[#allocation71_spill] sm:$0xff] %v4234_v28  ;;  %1096 = vperm.xlu1 %2705, %v4231_v13   ;;  %v2809_v9 = vpop.eup %2808  ;;  %v2063_v52 = vmul.f32 1.442695, %v5358_v61  ;;  %2830 = vpow2.f32 %v2057_v63  ;;  %v2115_v49 = vadd.f32 %v2807_v48, %v2114_v1  ;;  %v5364_v61 = vld [vmem:[#allocation42_spill] sm:$0xff] }
 0x1b3   :  { %1763 = vst.msk [vmem:[#allocation3 + $0x8] sm:$0xff] %vm36_vm2, %v4231_v13  ;;  %1764 = vst.msk [vmem:[#allocation3 + $0x10] sm:$0xff] %vm36_vm2, %v4234_v28  ;;  %v1017_v23 = vpop.xlane.xlu0 %1016  ;;  %v972_v34 = vpop.xlane.xlu1 %971  ;;  %v5360_v13 = vsub.f32 %v5359_v55, %v3901_v47  ;;  %v2152_v42 = vadd.f32 %v2809_v9, %v2151_v2  ;;  %2832 = vpow2.f32 %v2059_v17  ;;  %v5365_v7 = vsub.f32 %v5364_v61, %v3906_v37 }
 0x1b4   :  { %v4265_v0 = vmax.f32 %v4239_v32, %v1017_v23  ;;  %v2811_v57 = vpop.eup %2810  ;;  %v4268_v45 = vmax.f32 %v4253_v30, %v972_v34  ;;  %5362 = vst [vmem:[#allocation72_spill] sm:$0xff] %v4270_v5  ;;  %5363 = vst [vmem:[#allocation73_spill] sm:$0xff] %v4272_v33  ;;  %v5367_v23 = vsub.f32 %v5366_v59, %v3901_v47  ;;  %2834 = vpow2.f32 %v2061_v24 }
 0x1b5   :  { %v2065_v58 = vmul.f32 1.442695, %v5360_v13  ;;  %v2813_v51 = vpop.eup %2812  ;;  %v2067_v13 = vmul.f32 1.442695, %v5365_v7  ;;  %v2116_v63 = vadd.f32 %v2811_v57, %v2115_v49  ;;  %2836 = vpow2.f32 %v2063_v52 }
 0x1b6   :  { %5361 = vst [vmem:[#allocation41_spill] sm:$0xff] %v4268_v45  ;;  %v2069_v26 = vmul.f32 1.442695, %v5367_v23  ;;  %1780 = vst.msk [vmem:[#allocation3 + $0x90] sm:$0xff] %vm36_vm2, %v4265_v0  ;;  %1101 = vperm.xlu1 %2705, %v4234_v28   ;;  %v2815_v34 = vpop.eup %2814  ;;  %v2153_v17 = vadd.f32 %v2813_v51, %v2152_v42  ;;  %v5368_v23 = vsub.f32 %v5277_v31, %v3906_v37  ;;  %v4301_v28 = vld [vmem:[#allocation3 + $0xa0] sm:$0xff] }
 0x1b7   :  { %1765 = vst.msk [vmem:[#allocation3 + $0x18] sm:$0xff] %vm36_vm2, %v4268_v45  ;;  %v1020_v7 = vpop.xlane.xlu1 %1019  ;;  %v975_v1 = vpop.xlane.xlu0 %974  ;;  %2838 = vpow2.f32 %v2065_v58  ;;  %v5371_v49 = vsub.f32 %v5278_v54, %v3901_v47  ;;  %v2117_v51 = vadd.f32 %v2815_v34, %v2116_v63  ;;  %5372 = vst [vmem:[#allocation74_spill] sm:$0xff] %v4301_v28  ;;  %v5375_v63 = vld [vmem:[#allocation47_spill] sm:$0xff] }
 0x1b8   :  { %v2817_v2 = vpop.eup %2816  ;;  %v2071_v9 = vmul.f32 1.442695, %v5368_v23  ;;  %v4293_v32 = vmax.f32 %v4270_v5, %v1020_v7  ;;  %v4296_v57 = vmax.f32 %v4272_v33, %v975_v1  ;;  %2840 = vpow2.f32 %v2067_v13  ;;  %v4316_v13 = vld [vmem:[#allocation3 + $0x28] sm:$0xff] }
 0x1b9   :  { %v2819_v24 = vpop.eup %2818  ;;  %v2073_v42 = vmul.f32 1.442695, %v5371_v49  ;;  %v2154_v48 = vadd.f32 %v2817_v2, %v2153_v17  ;;  %v5373_v23 = vsub.f32 %v5279_v36, %v3906_v37  ;;  %5374 = vst [vmem:[#allocation75_spill] sm:$0xff] %v4316_v13  ;;  %2842 = vpow2.f32 %v2069_v26 }
 0x1ba   :  { %5369 = vst [vmem:[#allocation42_spill] sm:$0xff] %v4293_v32  ;;  %5370 = vst [vmem:[#allocation43_spill] sm:$0xff] %v4296_v57  ;;  %v2821_v52 = vpop.eup %2820  ;;  %1106 = vperm.xlu1 %2705, %v4268_v45   ;;  %1186 = vperm.xlu0 %2704, %v4293_v32   ;;  %v5376_v17 = vsub.f32 %v5375_v63, %v3901_v47  ;;  %v2118_v49 = vadd.f32 %v2819_v24, %v2117_v51  ;;  %2844 = vpow2.f32 %v2071_v9  ;;  %v4333_v51 = vld [vmem:[#allocation3 + $0xa8] sm:$0xff]  ;;  %v4335_v9 = vld [vmem:[#allocation3 + $0x30] sm:$0xff] }
 0x1bb   :  { %v2075_v7 = vmul.f32 1.442695, %v5373_v23  ;;  %1781 = vst.msk [vmem:[#allocation3 + $0x98] sm:$0xff] %vm36_vm2, %v4293_v32  ;;  %1766 = vst.msk [vmem:[#allocation3 + $0x20] sm:$0xff] %vm36_vm2, %v4296_v57  ;;  %v2823_v34 = vpop.eup %2822  ;;  %v2155_v23 = vadd.f32 %v2821_v52, %v2154_v48  ;;  %v1023_v1 = vpop.xlane.xlu0 %1022  ;;  %v5377_v33 = vsub.f32 %v5281_v27, %v3906_v37  ;;  %v5378_v32 = vsub.f32 %v5282_v8, %v3901_v47 }
 0x1bc   :  { %v2077_v2 = vmul.f32 1.442695, %v5376_v17  ;;  %v978_v5 = vpop.xlane.xlu1 %977  ;;  %v2825_v58 = vpop.eup %2824  ;;  %v4328_v26 = vmax.f32 %v4301_v28, %v1023_v1  ;;  %2846 = vpow2.f32 %v2073_v42  ;;  %v2119_v17 = vadd.f32 %v2823_v34, %v2118_v49  ;;  %5379 = vst [vmem:[#allocation76_spill] sm:$0xff] %v4333_v51  ;;  %5380 = vst [vmem:[#allocation77_spill] sm:$0xff] %v4335_v9 }
 0x1bd   :  { %v2079_v45 = vmul.f32 1.442695, %v5377_v33  ;;  %v2081_v30 = vmul.f32 1.442695, %v5378_v32  ;;  %v2827_v31 = vpop.eup %2826  ;;  %v2156_v24 = vadd.f32 %v2825_v58, %v2155_v23  ;;  %v4331_v48 = vmax.f32 %v4316_v13, %v978_v5  ;;  %v5381_v33 = vld [vmem:[#allocation50_spill] sm:$0xff] }
 0x1be   :  { %v2829_v52 = vpop.eup %2828  ;;  %2848 = vpow2.f32 %v2075_v7  ;;  %v5382_v27 = vsub.f32 %v5381_v33, %v3906_v37  ;;  %v5383_v1 = vsub.f32 %v3712_v44, %v3901_v47  ;;  %1782 = vst.msk [vmem:[#allocation3 + $0xa0] sm:$0xff] %vm36_vm2, %v4328_v26  ;;  %1111 = vperm.xlu1 %2705, %v4296_v57   ;;  %v2120_v58 = vadd.f32 %v2827_v31, %v2119_v17  ;;  %v5387_v17 = vld [vmem:[#allocation53_spill] sm:$0xff]  ;;  %v4364_v13 = vld [vmem:[#allocation3 + $0xb0] sm:$0xff] }
 0x1bf   :  { %v2831_v5 = vpop.eup %2830  ;;  %2850 = vpow2.f32 %v2077_v2  ;;  %v2157_v7 = vadd.f32 %v2829_v52, %v2156_v24  ;;  %1767 = vst.msk [vmem:[#allocation3 + $0x28] sm:$0xff] %vm36_vm2, %v4331_v48  ;;  %v981_v49 = vpop.xlane.xlu0 %980  ;;  %v5388_v24 = vsub.f32 %v5387_v17, %v3901_v47  ;;  %5389 = vst [vmem:[#allocation53_spill] sm:$0xff] %v4364_v13 }
 0x1c0   :  { %v2083_v32 = vmul.f32 1.442695, %v5382_v27  ;;  %v2085_v63 = vmul.f32 1.442695, %v5383_v1  ;;  %v1026_v27 = vpop.xlane.xlu1 %1025  ;;  %v2833_v23 = vpop.eup %2832  ;;  %2852 = vpow2.f32 %v2079_v45  ;;  %v5384_v1 = vsub.f32 %v3717_v50, %v3906_v37 }
 0x1c1   :  { %v4356_v28 = vmax.f32 %v4333_v51, %v1026_v27  ;;  %v4359_v31 = vmax.f32 %v4335_v9, %v981_v49  ;;  %v2835_v2 = vpop.eup %2834  ;;  %2854 = vpow2.f32 %v2081_v30  ;;  %v2089_v52 = vmul.f32 1.442695, %v5388_v24  ;;  %v4379_v30 = vld [vmem:[#allocation3 + $0x38] sm:$0xff]  ;;  %v4389_v51 = vld [vmem:[#allocation3 + $0x40] sm:$0xff] }
 0x1c2   :  { %v2087_v42 = vmul.f32 1.442695, %v5384_v1  ;;  %v2121_v34 = vadd.f32 %v2831_v5, %v2120_v58  ;;  %v2158_v57 = vadd.f32 %v2833_v23, %v2157_v7  ;;  %v2837_v45 = vpop.eup %2836  ;;  %2856 = vpow2.f32 %v2083_v32  ;;  %1116 = vperm.xlu1 %2705, %v4331_v48   ;;  %5392 = vst [vmem:[#allocation80_spill] sm:$0xff] %v4389_v51 }
 0x1c3   :  { %5385 = vst [vmem:[#allocation50_spill] sm:$0xff] %v4356_v28  ;;  %5386 = vst [vmem:[#allocation78_spill] sm:$0xff] %v4359_v31  ;;  %v5390_v1 = vsub.f32 %v3731_v14, %v3906_v37  ;;  %1196 = vperm.xlu0 %2704, %v4356_v28   ;;  %v2839_v37 = vpop.eup %2838  ;;  %2858 = vpow2.f32 %v2085_v63  ;;  %v1029_v58 = vpop.xlane.xlu0 %1028 }
 0x1c4   :  { %1783 = vst.msk [vmem:[#allocation3 + $0xa8] sm:$0xff] %vm36_vm2, %v4356_v28  ;;  %1768 = vst.msk [vmem:[#allocation3 + $0x30] sm:$0xff] %vm36_vm2, %v4359_v31  ;;  %v2122_v32 = vadd.f32 %v2835_v2, %v2121_v34  ;;  %v2159_v5 = vadd.f32 %v2837_v45, %v2158_v57  ;;  %v984_v7 = vpop.xlane.xlu1 %983  ;;  %v2841_v23 = vpop.eup %2840  ;;  %2860 = vpow2.f32 %v2087_v42  ;;  %v4382_v24 = vmax.f32 %v4364_v13, %v1029_v58  ;;  %v4387_v28 = vld [vmem:[#allocation3 + $0xb8] sm:$0xff]  ;;  %v4426_v13 = vld [vmem:[#allocation3 + $0xc8] sm:$0xff] }
 0x1c5   :  { %v2091_v27 = vmul.f32 1.442695, %v5390_v1  ;;  %v2843_v1 = vpop.eup %2842  ;;  %2862 = vpow2.f32 %v2089_v52  ;;  %v4385_v9 = vmax.f32 %v4379_v30, %v984_v7  ;;  %5391 = vst [vmem:[#allocation79_spill] sm:$0xff] %v4387_v28  ;;  %5397 = vst [vmem:[#allocation85_spill] sm:$0xff] %v4426_v13 }
 0x1c6   :  { %v2123_v47 = vadd.f32 %v2839_v37, %v2122_v32  ;;  %v2160_v49 = vadd.f32 %v2841_v23, %v2159_v5  ;;  %v2845_v63 = vpop.eup %2844  ;;  %1784 = vst.msk [vmem:[#allocation3 + $0xb0] sm:$0xff] %vm36_vm2, %v4382_v24  ;;  %1121 = vperm.xlu1 %2705, %v4359_v31  }
 0x1c7   :  { %2864 = vpow2.f32 %v2091_v27  ;;  %v2847_v42 = vpop.eup %2846  ;;  %1769 = vst.msk [vmem:[#allocation3 + $0x38] sm:$0xff] %vm36_vm2, %v4385_v9  ;;  %v987_v37 = vpop.xlane.xlu0 %986 }
 0x1c8   :  { %v2124_v34 = vadd.f32 %v2843_v1, %v2123_v47  ;;  %v2161_v2 = vadd.f32 %v2845_v63, %v2160_v49  ;;  %v1032_v45 = vpop.xlane.xlu1 %1031  ;;  %v2849_v27 = vpop.eup %2848  ;;  %v4404_v5 = vmax.f32 %v4389_v51, %v987_v37  ;;  %v4406_v47 = vld [vmem:[#allocation3 + $0xc0] sm:$0xff] }
 0x1c9   :  { %v4401_v32 = vmax.f32 %v4387_v28, %v1032_v45  ;;  %v2851_v58 = vpop.eup %2850  ;;  %5395 = vst [vmem:[#allocation83_spill] sm:$0xff] %v4406_v47 }
 0x1ca   :  { %5394 = vst [vmem:[#allocation82_spill] sm:$0xff] %v4404_v5  ;;  %v2125_v7 = vadd.f32 %v2847_v42, %v2124_v34  ;;  %v2162_v23 = vadd.f32 %v2849_v27, %v2161_v2  ;;  %v2853_v49 = vpop.eup %2852  ;;  %1770 = vst.msk [vmem:[#allocation3 + $0x40] sm:$0xff] %vm36_vm2, %v4404_v5  ;;  %1126 = vperm.xlu1 %2705, %v4385_v9   ;;  %v4418_v42 = vld [vmem:[#allocation3 + $0x48] sm:$0xff] }
 0x1cb   :  { %5393 = vst [vmem:[#allocation81_spill] sm:$0xff] %v4401_v32  ;;  %1785 = vst.msk [vmem:[#allocation3 + $0xb8] sm:$0xff] %vm36_vm2, %v4401_v32  ;;  %1206 = vperm.xlu0 %2704, %v4401_v32   ;;  %v2855_v34 = vpop.eup %2854  ;;  %v1035_v37 = vpop.xlane.xlu0 %1034  ;;  %v4428_v32 = vld [vmem:[#allocation3 + $0x50] sm:$0xff] }
 0x1cc   :  { %v2126_v2 = vadd.f32 %v2851_v58, %v2125_v7  ;;  %v2163_v45 = vadd.f32 %v2853_v49, %v2162_v23  ;;  %v990_v27 = vpop.xlane.xlu1 %989  ;;  %v2857_v1 = vpop.eup %2856  ;;  %v4421_v57 = vmax.f32 %v4406_v47, %v1035_v37  ;;  %5398 = vst [vmem:[#allocation86_spill] sm:$0xff] %v4428_v32  ;;  %v4468_v47 = vld [vmem:[#allocation3 + $0x60] sm:$0xff] }
 0x1cd   :  { %v2859_v52 = vpop.eup %2858  ;;  %v4424_v51 = vmax.f32 %v4418_v42, %v990_v27  ;;  %5406 = vst [vmem:[#allocation94_spill] sm:$0xff] %v4468_v47 }
 0x1ce   :  { %5396 = vst [vmem:[#allocation84_spill] sm:$0xff] %v4421_v57  ;;  %v2127_v63 = vadd.f32 %v2855_v34, %v2126_v2  ;;  %v2164_v28 = vadd.f32 %v2857_v1, %v2163_v45  ;;  %v2861_v31 = vpop.eup %2860  ;;  %1786 = vst.msk [vmem:[#allocation3 + $0xc0] sm:$0xff] %vm36_vm2, %v4421_v57  ;;  %1131 = vperm.xlu1 %2705, %v4404_v5   ;;  %v4487_v5 = vld [vmem:[#allocation3 + $0x68] sm:$0xff] }
 0x1cf   :  { %v2863_v7 = vpop.eup %2862  ;;  %1771 = vst.msk [vmem:[#allocation3 + $0x48] sm:$0xff] %vm36_vm2, %v4424_v51  ;;  %1136 = vperm.xlu0 %2704, %v4424_v51   ;;  %v993_v2 = vpop.xlane.xlu0 %992  ;;  %5410 = vst [vmem:[#allocation98_spill] sm:$0xff] %v4487_v5 }
 0x1d0   :  { %v2128_v23 = vadd.f32 %v2859_v52, %v2127_v63  ;;  %v2165_v49 = vadd.f32 %v2861_v31, %v2164_v28  ;;  %v1038_v34 = vpop.xlane.xlu1 %1037  ;;  %v4444_v27 = vmax.f32 %v4428_v32, %v993_v2  ;;  %v4446_v28 = vld [vmem:[#allocation3 + $0xd0] sm:$0xff] }
 0x1d1   :  { %v2865_v45 = vpop.eup %2864  ;;  %v4441_v37 = vmax.f32 %v4426_v13, %v1038_v34  ;;  %5401 = vst [vmem:[#allocation89_spill] sm:$0xff] %v4446_v28  ;;  %v4457_v34 = vld [vmem:[#allocation3 + $0x58] sm:$0xff] }
 0x1d2   :  { %5400 = vst [vmem:[#allocation88_spill] sm:$0xff] %v4444_v27  ;;  %v2129_v58 = vadd.f32 %v2863_v7, %v2128_v23  ;;  %v2166_v52 = vadd.f32 %v2865_v45, %v2165_v49  ;;  %1772 = vst.msk [vmem:[#allocation3 + $0x50] sm:$0xff] %vm36_vm2, %v4444_v27  ;;  %1141 = vperm.xlu1 %2705, %v4444_v27   ;;  %v4466_v13 = vld [vmem:[#allocation3 + $0xd8] sm:$0xff] }
 0x1d3   :  { %5399 = vst [vmem:[#allocation87_spill] sm:$0xff] %v4441_v37  ;;  %1787 = vst.msk [vmem:[#allocation3 + $0xc8] sm:$0xff] %vm36_vm2, %v4441_v37  ;;  %1216 = vperm.xlu0 %2704, %v4441_v37   ;;  %v1041_v49 = vpop.xlane.xlu0 %1040 }
 0x1d4   :  { %5402 = vst [vmem:[#allocation90_spill] sm:$0xff] %v4457_v34  ;;  %v2130_v7 = vrot.slane %v2129_v58, 4  ;;  %v2167_v23 = vrot.slane %v2166_v52, 4  ;;  %v996_v2 = vpop.xlane.xlu1 %995  ;;  %v4461_v45 = vmax.f32 %v4446_v28, %v1041_v49  ;;  %5405 = vst [vmem:[#allocation93_spill] sm:$0xff] %v4466_v13  ;;  %v4485_v28 = vld [vmem:[#allocation3 + $0xe0] sm:$0xff] }
 0x1d5   :  { %v4464_v63 = vmax.f32 %v4457_v34, %v996_v2  ;;  %5409 = vst [vmem:[#allocation97_spill] sm:$0xff] %v4485_v28 }
 0x1d6   :  { %5403 = vst [vmem:[#allocation91_spill] sm:$0xff] %v4461_v45  ;;  %v2131_v31 = vadd.f32 %v2130_v7, %v2129_v58  ;;  %v2168_v1 = vadd.f32 %v2167_v23, %v2166_v52  ;;  %1788 = vst.msk [vmem:[#allocation3 + $0xd0] sm:$0xff] %vm36_vm2, %v4461_v45 }
 0x1d7   :  { %5404 = vst [vmem:[#allocation92_spill] sm:$0xff] %v4464_v63  ;;  %1773 = vst.msk [vmem:[#allocation3 + $0x58] sm:$0xff] %vm36_vm2, %v4464_v63  ;;  %1146 = vperm.xlu0 %2704, %v4464_v63   ;;  %v999_v52 = vpop.xlane.xlu0 %998  ;;  %v4505_v63 = vld [vmem:[#allocation3 + $0xe8] sm:$0xff] }
 0x1d8   :  { %v2132_v37 = vrot.slane %v2131_v31, 2  ;;  %v2169_v32 = vrot.slane %v2168_v1, 2  ;;  %v1044_v58 = vpop.xlane.xlu1 %1043  ;;  %v4483_v23 = vmax.f32 %v4468_v47, %v999_v52  ;;  %5412 = vst [vmem:[#allocation100_spill] sm:$0xff] %v4505_v63  ;;  %v4507_v47 = vld [vmem:[#allocation3 + $0x70] sm:$0xff] }
 0x1d9   :  { %v4480_v7 = vmax.f32 %v4466_v13, %v1044_v58 }
 0x1da   :  { %5408 = vst [vmem:[#allocation96_spill] sm:$0xff] %v4483_v23  ;;  %v2133_v2 = vadd.f32 %v2132_v37, %v2131_v31  ;;  %v2170_v27 = vadd.f32 %v2169_v32, %v2168_v1  ;;  %1774 = vst.msk [vmem:[#allocation3 + $0x60] sm:$0xff] %vm36_vm2, %v4483_v23  ;;  %1151 = vperm.xlu1 %2705, %v4483_v23   ;;  %v4526_v23 = vld [vmem:[#allocation3 + $0xf0] sm:$0xff] }
 0x1db   :  { %5407 = vst [vmem:[#allocation95_spill] sm:$0xff] %v4480_v7  ;;  %1789 = vst.msk [vmem:[#allocation3 + $0xd8] sm:$0xff] %vm36_vm2, %v4480_v7  ;;  %1226 = vperm.xlu0 %2704, %v4480_v7   ;;  %v1047_v1 = vpop.xlane.xlu0 %1046  ;;  %v5416_v7 = vld [vmem:[#allocation58_spill] sm:$0xff] }
 0x1dc   :  { %v2134_v37 = vrot.slane %v2133_v2, 1  ;;  %v2171_v32 = vrot.slane %v2170_v27, 1  ;;  %v1002_v31 = vpop.xlane.xlu1 %1001  ;;  %v4500_v58 = vmax.f32 %v4485_v28, %v1047_v1  ;;  %5414 = vst [vmem:[#allocation102_spill] sm:$0xff] %v4526_v23  ;;  %v5415_v28 = vld [vmem:[#allocation57_spill] sm:$0xff] }
 0x1dd   :  { %v4503_v52 = vmax.f32 %v4487_v5, %v1002_v31  ;;  %v4524_v31 = vld [vmem:[#allocation3 + $0x78] sm:$0xff]  ;;  %v5417_v5 = vsub.f32 %v5415_v28, %v5416_v7 }
 0x1de   :  { %5411 = vst [vmem:[#allocation99_spill] sm:$0xff] %v4500_v58  ;;  %v2135_v49 = vadd.f32 %v2134_v37, %v2133_v2  ;;  %v2172_v13 = vadd.f32 %v2171_v32, %v2170_v27  ;;  %1790 = vst.msk [vmem:[#allocation3 + $0xe0] sm:$0xff] %vm36_vm2, %v4500_v58  ;;  %v4547_v7 = vld [vmem:[#allocation3 + $0xf8] sm:$0xff] }
 0x1df   :  { %1775 = vst.msk [vmem:[#allocation3 + $0x68] sm:$0xff] %vm36_vm2, %v4503_v52  ;;  %1156 = vperm.xlu0 %2704, %v4503_v52   ;;  %v1005_v2 = vpop.xlane.xlu0 %1004  ;;  %v2096_v34 = vmul.f32 1.442695, %v5417_v5  ;;  %5420 = vst [vmem:[#allocation103_spill] sm:$0xff] %v4547_v7 }
 0x1e0   :  { %v2175_v1 = vcombine.low %v2135_v49, %v2172_v13  ;;  %v1050_v27 = vpop.xlane.xlu1 %1049  ;;  %v4522_v32 = vmax.f32 %v4507_v47, %v1005_v2  ;;  %v5422_v13 = vld [vmem:[#allocation56_spill] sm:$0xff]  ;;  %v2094_v49 = vld [vmem:[#allocation6] sm:$0x3] }
 0x1e1   :  { %v4519_v37 = vmax.f32 %v4505_v63, %v1050_v27  ;;  %2866 = vpow2.f32 %v2096_v34  ;;  %v5424_v34 = vld [vmem:[#allocation16_spill] sm:$0xff] }
 0x1e2   :  { %1776 = vst.msk [vmem:[#allocation3 + $0x70] sm:$0xff] %vm36_vm2, %v4522_v32  ;;  %1161 = vperm.xlu1 %2705, %v4522_v32  }
 0x1e3   :  { %5413 = vst [vmem:[#allocation101_spill] sm:$0xff] %v4519_v37  ;;  %1791 = vst.msk [vmem:[#allocation3 + $0xe8] sm:$0xff] %vm36_vm2, %v4519_v37  ;;  %1236 = vperm.xlu0 %2704, %v4519_v37   ;;  %v1053_v2 = vpop.xlane.xlu0 %1052  ;;  %v2182_v37 = vrot.slane %v2175_v1, %v5422_v13  ;;  %v3126_v1 = vld [vmem:[#allocation2 + $0x20] sm:$0xff] }
 0x1e4   :  { %v1008_v27 = vpop.xlane.xlu1 %1007  ;;  %v4545_v28 = vmax.f32 %v4526_v23, %v1053_v2 }
 0x1e5   :  { %v4542_v5 = vmax.f32 %v4524_v31, %v1008_v27  ;;  %v2189_v23 = vrot.slane %v2182_v37, %v5422_v13 }
 0x1e6   :  { %5419 = vst [vmem:[#allocation58_spill] sm:$0xff] %v4545_v28  ;;  %1171 = vperm.xlu1 %2705, %v4207_v22   ;;  %1792 = vst.msk [vmem:[#allocation3 + $0xf0] sm:$0xff] %vm36_vm2, %v4545_v28 }
 0x1e7   :  { %5418 = vst [vmem:[#allocation57_spill] sm:$0xff] %v4542_v5  ;;  %1777 = vst.msk [vmem:[#allocation3 + $0x78] sm:$0xff] %vm36_vm2, %v4542_v5  ;;  %1166 = vperm.xlu0 %2704, %v4542_v5  }
 0x1e8   :  { %v1056_v27 = vpop.xlane.xlu1 %1055 }
 0x1e9   :  { %v4560_v2 = vmax.f32 %v4547_v7, %v1056_v27 }
 0x1ea   :  { %1181 = vperm.xlu1 %2705, %v4265_v0  }
 0x1eb   :  { %5421 = vst [vmem:[#allocation104_spill] sm:$0xff] %v4560_v2  ;;  %1793 = vst.msk [vmem:[#allocation3 + $0xf8] sm:$0xff] %vm36_vm2, %v4560_v2  ;;  %1246 = vperm.xlu0 %2704, %v4560_v2   ;;  %v2867_v63 = vpop.eup %2866  ;;  %v668_v2 = vunpack.c.h.bf16 %v3126_v1 }
 0x1ec   :  { %v2098_v27 = vmul.f32 %v2867_v63, %v2094_v49  ;;  %v3127_v63 = vld [vmem:[%s5083_s2 + $0x20] sm:$0xff]  }
 0x1ed   :  { %v700_v37 = vunpack.c.h.bf16 %v3127_v63 }
 0x1ee   :  { %1191 = vperm.xlu1 %2705, %v4328_v26   ;;  %v2191_v5 = vadd.f32 %v2189_v23, %v2098_v27 }
 0x1ef   :  { %v732_v13 = vmul.f32 %v700_v37, %v668_v2  ;;  %v5425_v37 = vld [vmem:[#allocation18_spill] sm:$0xff] }
 0x1f0   :  { %2196 = vst.msk [vmem:[#allocation6] sm:$0x3] %vm3476_vm1, %v2191_v5 }
 0x1f1   :  { %v782_v23 = vsel %vm215_vm0, %v732_v13, 0.0 }
 0x1f2   :  { %1201 = vperm.xlu1 %2705, %v4382_v24  }
 0x1f6   :  { %1211 = vperm.xlu1 %2705, %v4421_v57  }
 0x1fa   :  { %1221 = vperm.xlu1 %2705, %v4461_v45  }
 0x1fe   :  { %1231 = vperm.xlu1 %2705, %v4500_v58  }
 0x202   :  { %1241 = vperm.xlu1 %2705, %v4545_v28  }
 0x226   :  { %783 = vadd.xlane.f32.xlu1 %v782_v23 }
 0x229   :  { %v1092_v49 = vpop.permute.xlu0 %1091 }
 0x22a   :  { %v1249_v5 = vsub.f32 %v3483_v56, %v1092_v49  ;;  %v1250_v27 = vsub.f32 %v5424_v34, %v1092_v49 }
 0x22c   :  { %v1313_v7 = vmul.f32 1.442695, %v1249_v5  ;;  %v1315_v58 = vmul.f32 1.442695, %v1250_v27 }
 0x22d   :  { %v1177_v45 = vpop.permute.xlu0 %1176 }
 0x22e   :  { %2868 = vpow2.f32 %v1313_v7  ;;  %v1283_v1 = vsub.f32 %v3493_v60, %v1177_v45  ;;  %v1284_v28 = vsub.f32 %v3503_v21, %v1177_v45 }
 0x22f   :  { %2870 = vpow2.f32 %v1315_v58 }
 0x230   :  { %v1381_v57 = vmul.f32 1.442695, %v1283_v1  ;;  %v1383_v63 = vmul.f32 1.442695, %v1284_v28 }
 0x231   :  { %v1097_v2 = vpop.permute.xlu1 %1096 }
 0x232   :  { %2872 = vpow2.f32 %v1381_v57  ;;  %v1251_v13 = vsub.f32 %v5425_v37, %v1097_v2  ;;  %v1252_v23 = vsub.f32 %v3499_v11, %v1097_v2  ;;  %v5426_v11 = vld [vmem:[#allocation21_spill] sm:$0xff] }
 0x233   :  { %2874 = vpow2.f32 %v1383_v63 }
 0x234   :  { %v1317_v56 = vmul.f32 1.442695, %v1251_v13  ;;  %v1319_v49 = vmul.f32 1.442695, %v1252_v23 }
 0x235   :  { %v1102_v5 = vpop.permute.xlu1 %1101 }
 0x236   :  { %2876 = vpow2.f32 %v1317_v56  ;;  %v1253_v7 = vsub.f32 %v3511_v6, %v1102_v5  ;;  %v1254_v60 = vsub.f32 %v3517_v10, %v1102_v5 }
 0x237   :  { %2878 = vpow2.f32 %v1319_v49 }
 0x238   :  { %v2869_v21 = vpop.eup %2868  ;;  %v1321_v45 = vmul.f32 1.442695, %v1253_v7  ;;  %v1323_v58 = vmul.f32 1.442695, %v1254_v60 }
 0x239   :  { %v2871_v28 = vpop.eup %2870  ;;  %v1107_v34 = vpop.permute.xlu1 %1106 }
 0x23a   :  { %v1187_v57 = vpop.permute.xlu0 %1186  ;;  %2880 = vpow2.f32 %v1321_v45  ;;  %v1255_v27 = vsub.f32 %v3524_v15, %v1107_v34  ;;  %v1256_v1 = vsub.f32 %v5426_v11, %v1107_v34  ;;  %v1601_v6 = vadd.f32 %v2871_v28, %v2869_v21  ;;  %v5427_v15 = vld [vmem:[#allocation23_spill] sm:$0xff] }
 0x23b   :  { %v1287_v63 = vsub.f32 %v3527_v16, %v1187_v57  ;;  %2882 = vpow2.f32 %v1323_v58  ;;  %v1288_v2 = vsub.f32 %v3538_v25, %v1187_v57 }
 0x23c   :  { %v2873_v37 = vpop.eup %2872  ;;  %v1325_v10 = vmul.f32 1.442695, %v1255_v27  ;;  %v1327_v13 = vmul.f32 1.442695, %v1256_v1  ;;  %1602 = vadd.xlane.f32.xlu1 %v1601_v6  ;;  %v5428_v27 = vld [vmem:[#allocation26_spill] sm:$0xff] }
 0x23d   :  { %v1389_v23 = vmul.f32 1.442695, %v1287_v63  ;;  %v2875_v56 = vpop.eup %2874  ;;  %v1391_v49 = vmul.f32 1.442695, %v1288_v2  ;;  %v1112_v5 = vpop.permute.xlu1 %1111 }
 0x23e   :  { %2884 = vpow2.f32 %v1325_v10  ;;  %v1257_v7 = vsub.f32 %v3547_v4, %v1112_v5  ;;  %v1258_v60 = vsub.f32 %v5427_v15, %v1112_v5  ;;  %v4596_v45 = vadd.f32 %v2875_v56, %v2873_v37 }
 0x23f   :  { %2886 = vpow2.f32 %v1327_v13 }
 0x240   :  { %v2877_v16 = vpop.eup %2876  ;;  %2888 = vpow2.f32 %v1389_v23  ;;  %v1329_v25 = vmul.f32 1.442695, %v1257_v7  ;;  %v1331_v21 = vmul.f32 1.442695, %v1258_v60 }
 0x241   :  { %v2879_v58 = vpop.eup %2878  ;;  %2890 = vpow2.f32 %v1391_v49  ;;  %v1117_v28 = vpop.permute.xlu1 %1116  ;;  %v5429_v49 = vld [vmem:[#allocation28_spill] sm:$0xff] }
 0x242   :  { %v1197_v34 = vpop.permute.xlu0 %1196  ;;  %2892 = vpow2.f32 %v1329_v25  ;;  %v1259_v57 = vsub.f32 %v3558_v35, %v1117_v28  ;;  %v1260_v11 = vsub.f32 %v5428_v27, %v1117_v28  ;;  %v4602_v63 = vadd.f32 %v2879_v58, %v2877_v16  ;;  %v5430_v35 = vld [vmem:[#allocation30_spill] sm:$0xff]  ;;  %v5431_v28 = vld [vmem:[#allocation32_spill] sm:$0xff] }
 0x243   :  { %v1291_v4 = vsub.f32 %v5266_v18, %v1197_v34  ;;  %2894 = vpow2.f32 %v1331_v21  ;;  %v1292_v1 = vsub.f32 %v5267_v29, %v1197_v34 }
 0x244   :  { %v2881_v2 = vpop.eup %2880  ;;  %v1333_v6 = vmul.f32 1.442695, %v1259_v57  ;;  %v1335_v37 = vmul.f32 1.442695, %v1260_v11  ;;  %v5432_v57 = vld [vmem:[#allocation34_spill] sm:$0xff] }
 0x245   :  { %v1397_v10 = vmul.f32 1.442695, %v1291_v4  ;;  %v2883_v13 = vpop.eup %2882  ;;  %v1399_v23 = vmul.f32 1.442695, %v1292_v1  ;;  %v1122_v56 = vpop.permute.xlu1 %1121 }
 0x246   :  { %2896 = vpow2.f32 %v1333_v6  ;;  %v1261_v5 = vsub.f32 %v5429_v49, %v1122_v56  ;;  %v1262_v7 = vsub.f32 %v5430_v35, %v1122_v56  ;;  %v4606_v15 = vadd.f32 %v2883_v13, %v2881_v2  ;;  %v5433_v35 = vld [vmem:[#allocation36_spill] sm:$0xff] }
 0x247   :  { %2898 = vpow2.f32 %v1335_v37 }
 0x248   :  { %v2885_v18 = vpop.eup %2884  ;;  %2900 = vpow2.f32 %v1397_v10  ;;  %v1337_v29 = vmul.f32 1.442695, %v1261_v5  ;;  %v1339_v60 = vmul.f32 1.442695, %v1262_v7 }
 0x249   :  { %v2887_v16 = vpop.eup %2886  ;;  %2902 = vpow2.f32 %v1399_v23  ;;  %v1127_v25 = vpop.permute.xlu1 %1126 }
 0x24a   :  { %v1207_v21 = vpop.permute.xlu0 %1206  ;;  %v2889_v58 = vpop.eup %2888  ;;  %2904 = vpow2.f32 %v1337_v29  ;;  %v1263_v34 = vsub.f32 %v5431_v28, %v1127_v25  ;;  %v1264_v27 = vsub.f32 %v5432_v57, %v1127_v25  ;;  %v1610_v2 = vadd.f32 %v2887_v16, %v2885_v18  ;;  %v5434_v29 = vld [vmem:[#allocation38_spill] sm:$0xff] }
 0x24b   :  { %v1295_v11 = vsub.f32 %v5349_v40, %v1207_v21  ;;  %v2891_v4 = vpop.eup %2890  ;;  %2906 = vpow2.f32 %v1339_v60  ;;  %v1296_v1 = vsub.f32 %v5352_v46, %v1207_v21  ;;  %v5435_v46 = vld [vmem:[#allocation40_spill] sm:$0xff] }
 0x24c   :  { %v2893_v6 = vpop.eup %2892  ;;  %v1341_v37 = vmul.f32 1.442695, %v1263_v34  ;;  %v1343_v10 = vmul.f32 1.442695, %v1264_v27  ;;  %v4612_v23 = vadd.f32 %v2891_v4, %v2889_v58  ;;  %1611 = vadd.xlane.f32.xlu1 %v1610_v2 }
 0x24d   :  { %v1405_v13 = vmul.f32 1.442695, %v1295_v11  ;;  %v2895_v56 = vpop.eup %2894  ;;  %v1407_v49 = vmul.f32 1.442695, %v1296_v1  ;;  %v1132_v5 = vpop.permute.xlu1 %1131 }
 0x24e   :  { %2908 = vpow2.f32 %v1341_v37  ;;  %v1265_v7 = vsub.f32 %v5433_v35, %v1132_v5  ;;  %v1266_v40 = vsub.f32 %v5434_v29, %v1132_v5  ;;  %v1137_v25 = vpop.permute.xlu0 %1136  ;;  %v4616_v60 = vadd.f32 %v2895_v56, %v2893_v6 }
 0x24f   :  { %2910 = vpow2.f32 %v1343_v10  ;;  %v1267_v18 = vsub.f32 %v5435_v46, %v1137_v25  ;;  %v1268_v16 = vsub.f32 %v3632_v41, %v1137_v25 }
 0x250   :  { %v2897_v21 = vpop.eup %2896  ;;  %2912 = vpow2.f32 %v1405_v13  ;;  %v1345_v58 = vmul.f32 1.442695, %v1265_v7  ;;  %v1347_v28 = vmul.f32 1.442695, %v1266_v40 }
 0x251   :  { %v2899_v34 = vpop.eup %2898  ;;  %2914 = vpow2.f32 %v1407_v49  ;;  %v1349_v57 = vmul.f32 1.442695, %v1267_v18  ;;  %v1351_v27 = vmul.f32 1.442695, %v1268_v16  ;;  %v1142_v11 = vpop.permute.xlu1 %1141 }
 0x252   :  { %v2901_v4 = vpop.eup %2900  ;;  %2916 = vpow2.f32 %v1345_v58  ;;  %v1269_v1 = vsub.f32 %v3643_v62, %v1142_v11  ;;  %v1270_v2 = vsub.f32 %v3648_v3, %v1142_v11  ;;  %v1217_v6 = vpop.permute.xlu0 %1216  ;;  %v1616_v37 = vadd.f32 %v2899_v34, %v2897_v21 }
 0x253   :  { %v2903_v10 = vpop.eup %2902  ;;  %2918 = vpow2.f32 %v1347_v28  ;;  %v1299_v41 = vsub.f32 %v5359_v55, %v1217_v6  ;;  %v1300_v13 = vsub.f32 %v5364_v61, %v1217_v6 }
 0x254   :  { %v2905_v56 = vpop.eup %2904  ;;  %2920 = vpow2.f32 %v1349_v57  ;;  %v1353_v49 = vmul.f32 1.442695, %v1269_v1  ;;  %v1355_v5 = vmul.f32 1.442695, %v1270_v2  ;;  %1617 = vadd.xlane.f32.xlu1 %v1616_v37  ;;  %v4624_v35 = vadd.f32 %v2903_v10, %v2901_v4 }
 0x255   :  { %v2907_v7 = vpop.eup %2906  ;;  %2922 = vpow2.f32 %v1351_v27  ;;  %v1413_v62 = vmul.f32 1.442695, %v1299_v41  ;;  %v1415_v29 = vmul.f32 1.442695, %v1300_v13 }
 0x256   :  { %2924 = vpow2.f32 %v1353_v49  ;;  %v1147_v3 = vpop.permute.xlu0 %1146  ;;  %v4626_v40 = vadd.f32 %v2907_v7, %v2905_v56 }
 0x257   :  { %2926 = vpow2.f32 %v1355_v5  ;;  %v1271_v55 = vsub.f32 %v3654_v19, %v1147_v3  ;;  %v1272_v61 = vsub.f32 %v3664_v39, %v1147_v3 }
 0x258   :  { %v2909_v25 = vpop.eup %2908  ;;  %2928 = vpow2.f32 %v1413_v62 }
 0x259   :  { %v2911_v46 = vpop.eup %2910  ;;  %2930 = vpow2.f32 %v1415_v29  ;;  %v1357_v18 = vmul.f32 1.442695, %v1271_v55  ;;  %v1359_v16 = vmul.f32 1.442695, %v1272_v61  ;;  %v1152_v21 = vpop.permute.xlu1 %1151 }
 0x25a   :  { %v2913_v58 = vpop.eup %2912  ;;  %v1273_v28 = vsub.f32 %v3678_v12, %v1152_v21  ;;  %v1274_v34 = vsub.f32 %v3683_v20, %v1152_v21  ;;  %v1227_v57 = vpop.permute.xlu0 %1226  ;;  %v1622_v27 = vadd.f32 %v2911_v46, %v2909_v25  ;;  %v5436_v25 = vld [vmem:[#allocation51_spill] sm:$0xff] }
 0x25b   :  { %v2915_v11 = vpop.eup %2914  ;;  %2932 = vpow2.f32 %v1357_v18  ;;  %v1303_v19 = vsub.f32 %v5278_v54, %v1227_v57  ;;  %v1304_v39 = vsub.f32 %v5279_v36, %v1227_v57 }
 0x25c   :  { %v2917_v4 = vpop.eup %2916  ;;  %2934 = vpow2.f32 %v1359_v16  ;;  %v1361_v1 = vmul.f32 1.442695, %v1273_v28  ;;  %v1363_v2 = vmul.f32 1.442695, %v1274_v34  ;;  %1623 = vadd.xlane.f32.xlu1 %v1622_v27  ;;  %v4634_v6 = vadd.f32 %v2915_v11, %v2913_v58 }
 0x25d   :  { %v2919_v37 = vpop.eup %2918  ;;  %v1421_v10 = vmul.f32 1.442695, %v1303_v19  ;;  %v1423_v12 = vmul.f32 1.442695, %v1304_v39  ;;  %v3128_v19 = vld [vmem:[#allocation2 + $0x28] sm:$0xff] }
 0x25e   :  { %v2921_v41 = vpop.eup %2920  ;;  %2936 = vpow2.f32 %v1361_v1  ;;  %v1157_v20 = vpop.permute.xlu0 %1156  ;;  %v4636_v13 = vadd.f32 %v2919_v37, %v2917_v4  ;;  %v669_v39 = vunpack.c.l.bf16 %v3128_v19  ;;  %v3129_v4 = vld [vmem:[%s5083_s2 + $0x28] sm:$0xff]  }
 0x25f   :  { %v2923_v56 = vpop.eup %2922  ;;  %2938 = vpow2.f32 %v1363_v2  ;;  %v1275_v54 = vsub.f32 %v3689_v53, %v1157_v20  ;;  %v1276_v36 = vsub.f32 %v3699_v43, %v1157_v20  ;;  %v701_v1 = vunpack.c.l.bf16 %v3129_v4  ;;  %v5438_v37 = vld [vmem:[#allocation17_spill] sm:$0xff] }
 0x260   :  { %v2925_v49 = vpop.eup %2924  ;;  %2940 = vpow2.f32 %v1421_v10  ;;  %v1628_v5 = vadd.f32 %v2923_v56, %v2921_v41  ;;  %v5439_v41 = vld [vmem:[#allocation52_spill] sm:$0xff]  ;;  %v5440_v56 = vld [vmem:[#allocation54_spill] sm:$0xff] }
 0x261   :  { %v2927_v7 = vpop.eup %2926  ;;  %2942 = vpow2.f32 %v1423_v12  ;;  %v1365_v62 = vmul.f32 1.442695, %v1275_v54  ;;  %v1367_v29 = vmul.f32 1.442695, %v1276_v36  ;;  %v1162_v3 = vpop.permute.xlu1 %1161 }
 0x262   :  { %v2929_v55 = vpop.eup %2928  ;;  %1629 = vadd.xlane.f32.xlu1 %v1628_v5  ;;  %v1277_v61 = vsub.f32 %v3710_v38, %v1162_v3  ;;  %v1278_v46 = vsub.f32 %v5436_v25, %v1162_v3  ;;  %v1237_v18 = vpop.permute.xlu0 %1236  ;;  %v4642_v16 = vadd.f32 %v2927_v7, %v2925_v49 }
 0x263   :  { %v2931_v53 = vpop.eup %2930  ;;  %2944 = vpow2.f32 %v1365_v62  ;;  %v1307_v43 = vsub.f32 %v5282_v8, %v1237_v18  ;;  %v1308_v21 = vsub.f32 %v5381_v33, %v1237_v18  ;;  %v5437_v8 = vld [vmem:[#allocation15_spill] sm:$0xff] }
 0x264   :  { %2946 = vpow2.f32 %v1367_v29  ;;  %v1369_v58 = vmul.f32 1.442695, %v1277_v61  ;;  %v1371_v28 = vmul.f32 1.442695, %v1278_v46  ;;  %v4646_v34 = vadd.f32 %v2931_v53, %v2929_v55  ;;  %v5441_v46 = vld [vmem:[#allocation19_spill] sm:$0xff]  ;;  %v5442_v53 = vld [vmem:[#allocation20_spill] sm:$0xff] }
 0x265   :  { %v2933_v57 = vpop.eup %2932  ;;  %v1429_v27 = vmul.f32 1.442695, %v1307_v43  ;;  %v1431_v11 = vmul.f32 1.442695, %v1308_v21  ;;  %v1172_v38 = vpop.permute.xlu1 %1171  ;;  %v733_v61 = vmul.f32 %v701_v1, %v669_v39 }
 0x266   :  { %v2935_v2 = vpop.eup %2934  ;;  %2948 = vpow2.f32 %v1369_v58  ;;  %v1281_v33 = vsub.f32 %v5437_v8, %v1172_v38  ;;  %v1282_v10 = vsub.f32 %v5438_v37, %v1172_v38  ;;  %v1167_v12 = vpop.permute.xlu0 %1166 }
 0x267   :  { %2950 = vpow2.f32 %v1371_v28  ;;  %v1279_v20 = vsub.f32 %v5439_v41, %v1167_v12  ;;  %v1280_v54 = vsub.f32 %v5440_v56, %v1167_v12  ;;  %v1634_v36 = vadd.f32 %v2935_v2, %v2933_v57  ;;  %v5443_v41 = vld [vmem:[#allocation22_spill] sm:$0xff]  ;;  %v5444_v56 = vld [vmem:[#allocation24_spill] sm:$0xff] }
 0x268   :  { %v2937_v49 = vpop.eup %2936  ;;  %2952 = vpow2.f32 %v1429_v27  ;;  %v1377_v5 = vmul.f32 1.442695, %v1281_v33  ;;  %v1379_v7 = vmul.f32 1.442695, %v1282_v10  ;;  %v702_v10 = vunpack.c.h.bf16 %v3129_v4  ;;  %v3130_v4 = vld [vmem:[#allocation2 + $0x30] sm:$0xff] }
 0x269   :  { %v2939_v62 = vpop.eup %2938  ;;  %2954 = vpow2.f32 %v1431_v11  ;;  %v1373_v29 = vmul.f32 1.442695, %v1279_v20  ;;  %v1375_v3 = vmul.f32 1.442695, %v1280_v54  ;;  %1635 = vadd.xlane.f32.xlu1 %v1634_v36  ;;  %v1182_v55 = vpop.permute.xlu1 %1181  ;;  %v670_v11 = vunpack.c.h.bf16 %v3128_v19 }
 0x26a   :  { %v2941_v25 = vpop.eup %2940  ;;  %2956 = vpow2.f32 %v1377_v5  ;;  %v1285_v18 = vsub.f32 %v5441_v46, %v1182_v55  ;;  %v1286_v43 = vsub.f32 %v5442_v53, %v1182_v55  ;;  %v1247_v21 = vpop.permute.xlu0 %1246  ;;  %v4657_v58 = vadd.f32 %v2939_v62, %v2937_v49  ;;  %v5445_v46 = vld [vmem:[#allocation29_spill] sm:$0xff]  ;;  %v5446_v53 = vld [vmem:[#allocation31_spill] sm:$0xff] }
 0x26b   :  { %v2943_v28 = vpop.eup %2942  ;;  %2958 = vpow2.f32 %v1379_v7  ;;  %v1311_v57 = vsub.f32 %v5387_v17, %v1247_v21  ;;  %v1312_v27 = vsub.f32 %v3731_v14, %v1247_v21  ;;  %v785_v49 = vsel %vm215_vm0, %v733_v61, 0.0 }
 0x26c   :  { %2960 = vpow2.f32 %v1373_v29  ;;  %v1385_v38 = vmul.f32 1.442695, %v1285_v18  ;;  %v1387_v2 = vmul.f32 1.442695, %v1286_v43  ;;  %v4661_v39 = vadd.f32 %v2943_v28, %v2941_v25 }
 0x26d   :  { %v2945_v1 = vpop.eup %2944  ;;  %2962 = vpow2.f32 %v1375_v3  ;;  %v1437_v8 = vmul.f32 1.442695, %v1311_v57  ;;  %v1439_v33 = vmul.f32 1.442695, %v1312_v27  ;;  %v1192_v37 = vpop.permute.xlu1 %1191  ;;  %v734_v62 = vmul.f32 %v702_v10, %v670_v11  ;;  %v3131_v3 = vld [vmem:[%s5083_s2 + $0x30] sm:$0xff]  }
 0x26e   :  { %v2947_v12 = vpop.eup %2946  ;;  %2964 = vpow2.f32 %v1385_v38  ;;  %v1289_v20 = vsub.f32 %v5443_v41, %v1192_v37  ;;  %v1290_v17 = vsub.f32 %v5444_v56, %v1192_v37  ;;  %v671_v29 = vunpack.c.l.bf16 %v3130_v4 }
 0x26f   :  { %2966 = vpow2.f32 %v1387_v2  ;;  %v1640_v14 = vadd.f32 %v2947_v12, %v2945_v1  ;;  %v703_v55 = vunpack.c.l.bf16 %v3131_v3  ;;  %v788_v1 = vsel %vm215_vm0, %v734_v62, 0.0  ;;  %v5447_v12 = vld [vmem:[#allocation37_spill] sm:$0xff] }
 0x270   :  { %v2949_v19 = vpop.eup %2948  ;;  %2968 = vpow2.f32 %v1437_v8  ;;  %v1393_v54 = vmul.f32 1.442695, %v1289_v20  ;;  %v1395_v36 = vmul.f32 1.442695, %v1290_v17  ;;  %v704_v37 = vunpack.c.h.bf16 %v3131_v3  ;;  %v5448_v20 = vld [vmem:[#allocation39_spill] sm:$0xff] }
 0x271   :  { %v2951_v5 = vpop.eup %2950  ;;  %2970 = vpow2.f32 %v1439_v33  ;;  %1641 = vadd.xlane.f32.xlu1 %v1640_v14  ;;  %v1202_v7 = vpop.permute.xlu1 %1201  ;;  %v735_v8 = vmul.f32 %v703_v55, %v671_v29  ;;  %v672_v33 = vunpack.c.h.bf16 %v3130_v4  ;;  %v3132_v29 = vld [vmem:[#allocation2 + $0x38] sm:$0xff] }
 0x272   :  { %v2953_v25 = vpop.eup %2952  ;;  %2972 = vpow2.f32 %v1393_v54  ;;  %v1293_v18 = vsub.f32 %v5445_v46, %v1202_v7  ;;  %v1294_v43 = vsub.f32 %v5446_v53, %v1202_v7  ;;  %v4671_v21 = vadd.f32 %v2951_v5, %v2949_v19  ;;  %v3133_v55 = vld [vmem:[%s5083_s2 + $0x38] sm:$0xff]  }
 0x273   :  { %v2955_v61 = vpop.eup %2954  ;;  %2974 = vpow2.f32 %v1395_v36  ;;  %v791_v62 = vsel %vm215_vm0, %v735_v8, 0.0  ;;  %v736_v4 = vmul.f32 %v704_v37, %v672_v33  ;;  %v673_v3 = vunpack.c.l.bf16 %v3132_v29  ;;  %v5449_v53 = vld [vmem:[#allocation44_spill] sm:$0xff] }
 0x274   :  { %v2957_v28 = vpop.eup %2956  ;;  %v1401_v57 = vmul.f32 1.442695, %v1293_v18  ;;  %v1403_v27 = vmul.f32 1.442695, %v1294_v43  ;;  %v4673_v11 = vadd.f32 %v2955_v61, %v2953_v25  ;;  %v705_v25 = vunpack.c.l.bf16 %v3133_v55 }
 0x275   :  { %v2959_v38 = vpop.eup %2958  ;;  %786 = vadd.xlane.f32.xlu1 %v785_v49  ;;  %v1212_v2 = vpop.permute.xlu1 %1211  ;;  %v794_v33 = vsel %vm215_vm0, %v736_v4, 0.0 }
 0x276   :  { %v2961_v10 = vpop.eup %2960  ;;  %2976 = vpow2.f32 %v1401_v57  ;;  %v1297_v41 = vsub.f32 %v5447_v12, %v1212_v2  ;;  %v1298_v56 = vsub.f32 %v5448_v20, %v1212_v2  ;;  %v1649_v17 = vadd.f32 %v2959_v38, %v2957_v28  ;;  %v5450_v12 = vld [vmem:[#allocation47_spill] sm:$0xff]  ;;  %v5451_v20 = vld [vmem:[#allocation48_spill] sm:$0xff] }
 0x277   :  { %v2963_v14 = vpop.eup %2962  ;;  %2978 = vpow2.f32 %v1403_v27  ;;  %v737_v37 = vmul.f32 %v705_v25, %v673_v3 }
 0x278   :  { %v2965_v19 = vpop.eup %2964  ;;  %v1409_v54 = vmul.f32 1.442695, %v1297_v41  ;;  %v1411_v36 = vmul.f32 1.442695, %v1298_v56  ;;  %1650 = vadd.xlane.f32.xlu0 %v1649_v17  ;;  %v4678_v49 = vadd.f32 %v2963_v14, %v2961_v10  ;;  %v674_v10 = vunpack.c.h.bf16 %v3132_v29  ;;  %v3135_v29 = vld [vmem:[#allocation2 + $0x40] sm:$0xff] }
 0x279   :  { %v2967_v5 = vpop.eup %2966  ;;  %789 = vadd.xlane.f32.xlu1 %v788_v1  ;;  %v1222_v7 = vpop.permute.xlu1 %1221  ;;  %v675_v3 = vunpack.c.l.bf16 %v3135_v29 }
 0x27a   :  { %v2969_v46 = vpop.eup %2968  ;;  %2980 = vpow2.f32 %v1409_v54  ;;  %v1301_v18 = vsub.f32 %v5366_v59, %v1222_v7  ;;  %v1302_v43 = vsub.f32 %v5449_v53, %v1222_v7  ;;  %v1655_v61 = vadd.f32 %v2967_v5, %v2965_v19 }
 0x27b   :  { %v2971_v28 = vpop.eup %2970  ;;  %2982 = vpow2.f32 %v1411_v36  ;;  %v706_v59 = vunpack.c.h.bf16 %v3133_v55  ;;  %v3134_v36 = vld [vmem:[%s5083_s2 + $0x40] sm:$0xff]  }
 0x27c   :  { %v2973_v57 = vpop.eup %2972  ;;  %v1417_v27 = vmul.f32 1.442695, %v1301_v18  ;;  %v1419_v38 = vmul.f32 1.442695, %v1302_v43  ;;  %1605 = vadd.xlane.f32.xlu0 %v4602_v63  ;;  %v4687_v2 = vadd.f32 %v2971_v28, %v2969_v46  ;;  %v707_v5 = vunpack.c.l.bf16 %v3134_v36 }
 0x27d   :  { %v2975_v1 = vpop.eup %2974  ;;  %792 = vadd.xlane.f32.xlu1 %v791_v62  ;;  %v1232_v8 = vpop.permute.xlu1 %1231  ;;  %v797_v62 = vsel %vm215_vm0, %v737_v37, 0.0  ;;  %v738_v4 = vmul.f32 %v706_v59, %v674_v10  ;;  %v708_v28 = vunpack.c.h.bf16 %v3134_v36 }
 0x27e   :  { %2984 = vpow2.f32 %v1417_v27  ;;  %v1305_v41 = vsub.f32 %v5450_v12, %v1232_v8  ;;  %v1306_v56 = vsub.f32 %v5451_v20, %v1232_v8  ;;  %v4692_v17 = vadd.f32 %v2975_v1, %v2973_v57  ;;  %v3136_v8 = vld [vmem:[#allocation2 + $0x48] sm:$0xff] }
 0x27f   :  { %2986 = vpow2.f32 %v1419_v38  ;;  %v800_v57 = vsel %vm215_vm0, %v738_v4, 0.0  ;;  %v739_v27 = vmul.f32 %v707_v5, %v675_v3  ;;  %v676_v38 = vunpack.c.h.bf16 %v3135_v29  ;;  %v4727_v29 = vld [vmem:[%s5083_s2 + $0x50] sm:$0xff]  }
 0x280   :  { %v2977_v14 = vpop.eup %2976  ;;  %v1425_v63 = vmul.f32 1.442695, %v1305_v41  ;;  %v1427_v19 = vmul.f32 1.442695, %v1306_v56  ;;  %1653 = vadd.xlane.f32.xlu0 %v4596_v45  ;;  %v712_v3 = vunpack.c.h.bf16 %v4727_v29 }
 0x281   :  { %v2979_v54 = vpop.eup %2978  ;;  %795 = vadd.xlane.f32.xlu1 %v794_v33  ;;  %v1242_v7 = vpop.permute.xlu1 %1241  ;;  %v677_v33 = vunpack.c.l.bf16 %v3136_v8  ;;  %v803_v10 = vsel %vm215_vm0, %v739_v27, 0.0  ;;  %v740_v59 = vmul.f32 %v708_v28, %v676_v38  ;;  %v4743_v28 = vld [vmem:[#allocation2 + $0x60] sm:$0xff] }
 0x282   :  { %2988 = vpow2.f32 %v1425_v63  ;;  %v1309_v55 = vsub.f32 %v3712_v44, %v1242_v7  ;;  %v1310_v25 = vsub.f32 %v3717_v50, %v1242_v7  ;;  %v4701_v46 = vadd.f32 %v2979_v54, %v2977_v14  ;;  %v4749_v27 = vld [vmem:[%s5083_s2 + $0x60] sm:$0xff]  }
 0x283   :  { %2990 = vpow2.f32 %v1427_v19  ;;  %v806_v56 = vsel %vm215_vm0, %v740_v59, 0.0  ;;  %v678_v14 = vunpack.c.h.bf16 %v3136_v8  ;;  %v716_v38 = vunpack.c.h.bf16 %v4749_v27 }
 0x284   :  { %v2981_v45 = vpop.eup %2980  ;;  %v1433_v18 = vmul.f32 1.442695, %v1309_v55  ;;  %v1435_v53 = vmul.f32 1.442695, %v1310_v25  ;;  %1608 = vadd.xlane.f32.xlu0 %v4606_v15  ;;  %v3137_v15 = vld [vmem:[%s5083_s2 + $0x48] sm:$0xff]   ;;  %v4732_v25 = vld [vmem:[#allocation2 + $0x58] sm:$0xff] }
 0x285   :  { %v2983_v43 = vpop.eup %2982  ;;  %798 = vadd.xlane.f32.xlu1 %v797_v62  ;;  %v709_v37 = vunpack.c.l.bf16 %v3137_v15  ;;  %v710_v63 = vunpack.c.h.bf16 %v3137_v15 }
 0x286   :  { %2992 = vpow2.f32 %v1433_v18  ;;  %v4705_v1 = vadd.f32 %v2983_v43, %v2981_v45  ;;  %v682_v45 = vunpack.c.h.bf16 %v4732_v25  ;;  %v4738_v18 = vld [vmem:[%s5083_s2 + $0x58] sm:$0xff]  }
 0x287   :  { %2994 = vpow2.f32 %v1435_v53  ;;  %v742_v7 = vmul.f32 %v710_v63, %v678_v14  ;;  %v714_v53 = vunpack.c.h.bf16 %v4738_v18  ;;  %v4782_v63 = vld [vmem:[%s5083_s2 + $0x78] sm:$0xff]  }
 0x288   :  { %v2985_v44 = vpop.eup %2984  ;;  %1656 = vadd.xlane.f32.xlu0 %v1655_v61  ;;  %v741_v61 = vmul.f32 %v709_v37, %v677_v33  ;;  %v4760_v33 = vld [vmem:[%s5083_s2 + $0x68] sm:$0xff]  }
 0x289   :  { %v2987_v50 = vpop.eup %2986  ;;  %801 = vadd.xlane.f32.xlu1 %v800_v57  ;;  %v746_v43 = vmul.f32 %v714_v53, %v682_v45  ;;  %v684_v57 = vunpack.c.h.bf16 %v4743_v28  ;;  %v718_v15 = vunpack.c.h.bf16 %v4760_v33  ;;  %v5456_v45 = vld [vmem:[#allocation41_spill] sm:$0xff] }
 0x28a   :  { %v4711_v12 = vadd.f32 %v2987_v50, %v2985_v44  ;;  %v809_v5 = vsel %vm215_vm0, %v741_v61, 0.0  ;;  %v4754_v50 = vld [vmem:[#allocation2 + $0x68] sm:$0xff] }
 0x28b   :  { %v748_v44 = vmul.f32 %v716_v38, %v684_v57  ;;  %v686_v8 = vunpack.c.h.bf16 %v4754_v50  ;;  %v711_v38 = vunpack.c.l.bf16 %v4727_v29 }
 0x28c   :  { %v2989_v41 = vpop.eup %2988  ;;  %1659 = vadd.xlane.f32.xlu0 %v4612_v23  ;;  %v4721_v23 = vld [vmem:[#allocation2 + $0x50] sm:$0xff] }
 0x28d   :  { %v2991_v20 = vpop.eup %2990  ;;  %804 = vadd.xlane.f32.xlu1 %v803_v10  ;;  %v680_v4 = vunpack.c.h.bf16 %v4721_v23  ;;  %v750_v37 = vmul.f32 %v718_v15, %v686_v8  ;;  %v4765_v10 = vld [vmem:[#allocation2 + $0x70] sm:$0xff]  ;;  %v679_v57 = vunpack.c.l.bf16 %v4721_v23  ;;  %v713_v8 = vunpack.c.l.bf16 %v4738_v18 }
 0x28e   :  { %v4715_v19 = vadd.f32 %v2991_v20, %v2989_v41  ;;  %v688_v59 = vunpack.c.h.bf16 %v4765_v10  ;;  %v4771_v41 = vld [vmem:[%s5083_s2 + $0x70] sm:$0xff]  }
 0x28f   :  { %v744_v55 = vmul.f32 %v712_v3, %v680_v4  ;;  %v720_v20 = vunpack.c.h.bf16 %v4771_v41  ;;  %v5453_v4 = vld [vmem:[#allocation65_spill] sm:$0xff] }
 0x290   :  { %v2993_v54 = vpop.eup %2992  ;;  %1614 = vadd.xlane.f32.xlu0 %v4616_v60  ;;  %v812_v60 = vsel %vm215_vm0, %v742_v7, 0.0  ;;  %v5452_v7 = vld [vmem:[#allocation63_spill] sm:$0xff] }
 0x291   :  { %v2995_v36 = vpop.eup %2994  ;;  %807 = vadd.xlane.f32.xlu1 %v806_v56  ;;  %v752_v61 = vmul.f32 %v720_v20, %v688_v59  ;;  %v4776_v56 = vld [vmem:[#allocation2 + $0x78] sm:$0xff]  ;;  %v5454_v3 = vsub.f32 %v5452_v7, %v5453_v4 }
 0x292   :  { %v4719_v62 = vadd.f32 %v2995_v36, %v2993_v54  ;;  %v690_v14 = vunpack.c.h.bf16 %v4776_v56  ;;  %v722_v54 = vunpack.c.h.bf16 %v4782_v63 }
 0x294   :  { %1662 = vadd.xlane.f32.xlu0 %v4692_v17  ;;  %v818_v17 = vsel %vm215_vm0, %v744_v55, 0.0  ;;  %v754_v36 = vmul.f32 %v722_v54, %v690_v14  ;;  %v5455_v55 = vld [vmem:[#allocation35_spill] sm:$0xff]  ;;  %v719_v54 = vunpack.c.l.bf16 %v4771_v41 }
 0x295   :  { %810 = vadd.xlane.f32.xlu1 %v809_v5 }
 0x296   :  { %v848_v5 = vsel %vm215_vm0, %v754_v36, 0.0  ;;  %v5462_v36 = vld [vmem:[#allocation90_spill] sm:$0xff] }
 0x298   :  { %1665 = vadd.xlane.f32.xlu0 %v4624_v35  ;;  %v824_v35 = vsel %vm215_vm0, %v746_v43, 0.0 }
 0x299   :  { %813 = vadd.xlane.f32.xlu1 %v812_v60  ;;  %v1505_v60 = vmul.f32 1.442695, %v5454_v3  ;;  %v1448_v3 = vld [vmem:[#allocation4 + $0x38] sm:$0xff] }
 0x29b   :  { %2996 = vpow2.f32 %v1505_v60 }
 0x29c   :  { %1620 = vadd.xlane.f32.xlu0 %v4626_v40  ;;  %v830_v40 = vsel %vm215_vm0, %v748_v44, 0.0  ;;  %v743_v44 = vmul.f32 %v711_v38, %v679_v57  ;;  %v1452_v38 = vld [vmem:[#allocation4 + $0x58] sm:$0xff] }
 0x29d   :  { %819 = vadd.xlane.f32.xlu1 %v818_v17 }
 0x29e   :  { %v815_v23 = vsel %vm215_vm0, %v743_v44, 0.0 }
 0x2a0   :  { %1668 = vadd.xlane.f32.xlu0 %v4701_v46  ;;  %v836_v46 = vsel %vm215_vm0, %v750_v37, 0.0 }
 0x2a1   :  { %825 = vadd.xlane.f32.xlu1 %v824_v35  ;;  %v1444_v35 = vld [vmem:[#allocation4 + $0x18] sm:$0xff] }
 0x2a4   :  { %1626 = vadd.xlane.f32.xlu0 %v4636_v13  ;;  %v842_v13 = vsel %vm215_vm0, %v752_v61, 0.0 }
 0x2a5   :  { %831 = vadd.xlane.f32.xlu1 %v830_v40  ;;  %v683_v40 = vunpack.c.l.bf16 %v4743_v28  ;;  %v717_v28 = vunpack.c.l.bf16 %v4760_v33 }
 0x2a8   :  { %1632 = vadd.xlane.f32.xlu0 %v4642_v16  ;;  %v2997_v16 = vpop.eup %2996 }
 0x2a9   :  { %837 = vadd.xlane.f32.xlu1 %v836_v46  ;;  %v685_v46 = vunpack.c.l.bf16 %v4754_v50 }
 0x2ac   :  { %1638 = vadd.xlane.f32.xlu0 %v4657_v58 }
 0x2ad   :  { %843 = vadd.xlane.f32.xlu1 %v842_v13 }
 0x2b0   :  { %1671 = vadd.xlane.f32.xlu0 %v4634_v6  ;;  %v1441_v6 = vld [vmem:[#allocation4] sm:$0xff] }
 0x2b1   :  { %849 = vadd.xlane.f32.xlu1 %v848_v5  ;;  %v1569_v17 = vmul.f32 %v2997_v16, %v1441_v6  ;;  %v5463_v5 = vld [vmem:[#allocation92_spill] sm:$0xff]  ;;  %v689_v16 = vunpack.c.l.bf16 %v4776_v56  ;;  %v721_v6 = vunpack.c.l.bf16 %v4782_v63 }
 0x2b2   :  { %v5464_v7 = vsub.f32 %v5462_v36, %v5463_v5  ;;  %v1442_v36 = vld [vmem:[#allocation4 + $0x8] sm:$0xff] }
 0x2b3   :  { %v4798_v58 = vpop.xlane.xlu1 %783 }
 0x2b4   :  { %1644 = vadd.xlane.f32.xlu0 %v4671_v21  ;;  %v5457_v21 = vsub.f32 %v5455_v55, %v5456_v45  ;;  %v1527_v4 = vmul.f32 1.442695, %v5464_v7  ;;  %v753_v45 = vmul.f32 %v721_v6, %v689_v16  ;;  %v5480_v7 = vld [vmem:[#allocation72_spill] sm:$0xff]  ;;  %v1458_v6 = vld [vmem:[#allocation4 + $0x88] sm:$0xff] }
 0x2b6   :  { %v1511_v53 = vmul.f32 1.442695, %v5457_v21  ;;  %v845_v56 = vsel %vm215_vm0, %v753_v45, 0.0 }
 0x2b8   :  { %1647 = vadd.xlane.f32.xlu0 %v4678_v49  ;;  %2998 = vpow2.f32 %v1511_v53 }
 0x2bc   :  { %1674 = vadd.xlane.f32.xlu0 %v4705_v1 }
 0x2c0   :  { %1677 = vadd.xlane.f32.xlu0 %v4646_v34  ;;  %v5458_v34 = vld [vmem:[#allocation75_spill] sm:$0xff] }
 0x2c1   :  { %v5459_v1 = vsub.f32 %v5458_v34, %v4331_v48  ;;  %v5460_v48 = vsub.f32 %v4379_v30, %v4385_v9 }
 0x2c3   :  { %v1519_v15 = vmul.f32 1.442695, %v5460_v48  ;;  %v5470_v48 = vld [vmem:[#allocation70_spill] sm:$0xff] }
 0x2c4   :  { %1680 = vadd.xlane.f32.xlu0 %v4711_v12  ;;  %v1515_v12 = vmul.f32 1.442695, %v5459_v1 }
 0x2c6   :  { %3000 = vpow2.f32 %v1515_v12 }
 0x2c7   :  { %3002 = vpow2.f32 %v1519_v15 }
 0x2c8   :  { %1683 = vadd.xlane.f32.xlu0 %v4661_v39  ;;  %v2999_v39 = vpop.eup %2998 }
 0x2c9   :  { %v1603_v43 = vpop.xlane.xlu1 %1602 }
 0x2ca   :  { %v1697_v49 = vadd.f32 %v1603_v43, %v1569_v17  ;;  %v1450_v17 = vld [vmem:[#allocation4 + $0x48] sm:$0xff] }
 0x2cb   :  { %v5465_v43 = vld [vmem:[#allocation98_spill] sm:$0xff] }
 0x2cc   :  { %1686 = vadd.xlane.f32.xlu0 %v4715_v19  ;;  %1730 = vst.msk [vmem:[#allocation4] sm:$0xff] %vm36_vm2, %v1697_v49  ;;  %v681_v19 = vunpack.c.l.bf16 %v4732_v25  ;;  %v5461_v25 = vsub.f32 %v4418_v42, %v4424_v51  ;;  %v749_v51 = vmul.f32 %v717_v28, %v685_v46  ;;  %v687_v42 = vunpack.c.l.bf16 %v4765_v10 }
 0x2cd   :  { %v5466_v49 = vsub.f32 %v5465_v43, %v4503_v52  ;;  %v1443_v43 = vld [vmem:[#allocation4 + $0x10] sm:$0xff] }
 0x2ce   :  { %v745_v29 = vmul.f32 %v713_v8, %v681_v19  ;;  %v1523_v18 = vmul.f32 1.442695, %v5461_v25  ;;  %v833_v33 = vsel %vm215_vm0, %v749_v51, 0.0  ;;  %v751_v60 = vmul.f32 %v719_v54, %v687_v42  ;;  %v5469_v8 = vld [vmem:[#allocation68_spill] sm:$0xff] }
 0x2cf   :  { %v1531_v34 = vmul.f32 1.442695, %v5466_v49  ;;  %v5471_v15 = vsub.f32 %v5469_v8, %v5470_v48 }
 0x2d0   :  { %1689 = vadd.xlane.f32.xlu0 %v4673_v11  ;;  %v1572_v11 = vmul.f32 %v2999_v39, %v1444_v35  ;;  %v3001_v9 = vpop.eup %3000  ;;  %v821_v30 = vsel %vm215_vm0, %v745_v29, 0.0  ;;  %3004 = vpow2.f32 %v1523_v18  ;;  %v839_v55 = vsel %vm215_vm0, %v751_v60, 0.0  ;;  %v5467_v39 = vld [vmem:[#allocation66_spill] sm:$0xff] }
 0x2d1   :  { %v3003_v50 = vpop.eup %3002  ;;  %3006 = vpow2.f32 %v1527_v4  ;;  %v5468_v35 = vsub.f32 %v5467_v39, %v4207_v22  ;;  %v5481_v4 = vld [vmem:[#allocation42_spill] sm:$0xff] }
 0x2d2   :  { %v1576_v10 = vmul.f32 %v3003_v50, %v1448_v3  ;;  %3008 = vpow2.f32 %v1531_v34  ;;  %v5482_v50 = vsub.f32 %v5480_v7, %v5481_v4  ;;  %v5486_v34 = vld [vmem:[#allocation74_spill] sm:$0xff] }
 0x2d3   :  { %v1537_v44 = vmul.f32 1.442695, %v5468_v35  ;;  %v5488_v35 = vld [vmem:[#allocation76_spill] sm:$0xff] }
 0x2d4   :  { %1692 = vadd.xlane.f32.xlu0 %v4719_v62  ;;  %v715_v62 = vunpack.c.l.bf16 %v4749_v27 }
 0x2d5   :  { %3010 = vpow2.f32 %v1537_v44  ;;  %v5489_v44 = vld [vmem:[#allocation50_spill] sm:$0xff] }
 0x2d6   :  { %v747_v20 = vmul.f32 %v715_v62, %v683_v40  ;;  %v1454_v40 = vld [vmem:[#allocation4 + $0x68] sm:$0xff]  ;;  %v5472_v62 = vld [vmem:[#allocation64_spill] sm:$0xff] }
 0x2d8   :  { %1695 = vadd.xlane.f32.xlu0 %v4687_v2  ;;  %v1446_v2 = vld [vmem:[#allocation4 + $0x28] sm:$0xff]  ;;  %v827_v14 = vsel %vm215_vm0, %v747_v20, 0.0 }
 0x2d9   :  { %v1612_v37 = vpop.xlane.xlu1 %1611  ;;  %v1574_v27 = vmul.f32 %v3001_v9, %v1446_v2  ;;  %v5475_v9 = vld [vmem:[#allocation69_spill] sm:$0xff] }
 0x2da   :  { %v1700_v59 = vadd.f32 %v1612_v37, %v1572_v11  ;;  %v3005_v21 = vpop.eup %3004  ;;  %v1507_v11 = vmul.f32 1.442695, %v5471_v15  ;;  %v5473_v37 = vld [vmem:[#allocation67_spill] sm:$0xff] }
 0x2db   :  { %v1578_v63 = vmul.f32 %v3005_v21, %v1450_v17  ;;  %v3007_v57 = vpop.eup %3006 }
 0x2dc   :  { %816 = vadd.xlane.f32.xlu0 %v815_v23  ;;  %1733 = vst.msk [vmem:[#allocation4 + $0x18] sm:$0xff] %vm36_vm2, %v1700_v59  ;;  %v1580_v52 = vmul.f32 %v3007_v57, %v1452_v38  ;;  %v3009_v29 = vpop.eup %3008  ;;  %v5474_v59 = vsub.f32 %v5472_v62, %v5473_v37  ;;  %3012 = vpow2.f32 %v1507_v11  ;;  %v1459_v38 = vld [vmem:[#allocation4 + $0x90] sm:$0xff]  ;;  %v1460_v11 = vld [vmem:[#allocation4 + $0x98] sm:$0xff] }
 0x2dd   :  { %v1582_v18 = vmul.f32 %v3009_v29, %v1454_v40  ;;  %v5492_v29 = vld [vmem:[#allocation78_spill] sm:$0xff] }
 0x2de   :  { %v1539_v25 = vmul.f32 1.442695, %v5474_v59 }
 0x2df   :  { %v3011_v28 = vpop.eup %3010 }
 0x2e0   :  { %822 = vadd.xlane.f32.xlu0 %v821_v30  ;;  %3014 = vpow2.f32 %v1539_v25  ;;  %v5476_v30 = vld [vmem:[#allocation71_spill] sm:$0xff] }
 0x2e1   :  { %v1618_v61 = vpop.xlane.xlu1 %1617  ;;  %v5477_v2 = vsub.f32 %v5475_v9, %v5476_v30  ;;  %v5494_v9 = vld [vmem:[#allocation53_spill] sm:$0xff] }
 0x2e2   :  { %v1702_v13 = vadd.f32 %v1618_v61, %v1574_v27  ;;  %v1457_v27 = vld [vmem:[#allocation4 + $0x80] sm:$0xff]  ;;  %v5495_v30 = vsub.f32 %v5494_v9, %v4382_v24 }
 0x2e3   :  { %v1509_v20 = vmul.f32 1.442695, %v5477_v2  ;;  %v5478_v61 = vld [vmem:[#allocation33_spill] sm:$0xff]  ;;  %v1585_v42 = vmul.f32 %v3011_v28, %v1457_v27 }
 0x2e4   :  { %1735 = vst.msk [vmem:[#allocation4 + $0x28] sm:$0xff] %vm36_vm2, %v1702_v13  ;;  %828 = vadd.xlane.f32.xlu0 %v827_v14  ;;  %v5479_v14 = vsub.f32 %v5478_v61, %v4265_v0  ;;  %v5483_v0 = vld [vmem:[#allocation73_spill] sm:$0xff]  ;;  %v1549_v2 = vmul.f32 1.442695, %v5495_v30 }
 0x2e5   :  { %3016 = vpow2.f32 %v1509_v20  ;;  %v1461_v61 = vld [vmem:[#allocation4 + $0xa0] sm:$0xff] }
 0x2e6   :  { %v1541_v51 = vmul.f32 1.442695, %v5479_v14  ;;  %v3013_v54 = vpop.eup %3012  ;;  %v2233_v14 = vld [vmem:[#allocation4] sm:$0xff] }
 0x2e7   :  { %v1570_v3 = vmul.f32 %v3013_v54, %v1442_v36  ;;  %v5497_v54 = vld [vmem:[#allocation82_spill] sm:$0xff] }
 0x2e8   :  { %834 = vadd.xlane.f32.xlu0 %v833_v33  ;;  %3018 = vpow2.f32 %v1541_v51  ;;  %v1543_v33 = vmul.f32 1.442695, %v5482_v50  ;;  %v1462_v50 = vld [vmem:[#allocation4 + $0xa8] sm:$0xff] }
 0x2e9   :  { %v1624_v41 = vpop.xlane.xlu1 %1623 }
 0x2ea   :  { %v1704_v53 = vadd.f32 %v1624_v41, %v1576_v10  ;;  %v3015_v60 = vpop.eup %3014  ;;  %3020 = vpow2.f32 %v1543_v33  ;;  %v5484_v41 = vld [vmem:[#allocation43_spill] sm:$0xff]  ;;  %v5499_v33 = vld [vmem:[#allocation86_spill] sm:$0xff] }
 0x2eb   :  { %v1586_v21 = vmul.f32 %v3015_v60, %v1458_v6 }
 0x2ec   :  { %1737 = vst.msk [vmem:[#allocation4 + $0x38] sm:$0xff] %vm36_vm2, %v1704_v53  ;;  %840 = vadd.xlane.f32.xlu0 %v839_v55  ;;  %v5485_v55 = vsub.f32 %v5483_v0, %v5484_v41  ;;  %v2236_v0 = vld [vmem:[#allocation4 + $0x18] sm:$0xff] }
 0x2ee   :  { %v1513_v45 = vmul.f32 1.442695, %v5485_v55 }
 0x2ef   :  { %v1630_v1 = vpop.xlane.xlu1 %1629  ;;  %v3017_v53 = vpop.eup %3016 }
 0x2f0   :  { %v1706_v12 = vadd.f32 %v1630_v1, %v1578_v63  ;;  %846 = vadd.xlane.f32.xlu0 %v845_v56  ;;  %3022 = vpow2.f32 %v1513_v45  ;;  %v5487_v56 = vsub.f32 %v5486_v34, %v4328_v26  ;;  %v1571_v1 = vmul.f32 %v3017_v53, %v1443_v43  ;;  %v5503_v43 = vld [vmem:[#allocation96_spill] sm:$0xff] }
 0x2f2   :  { %1739 = vst.msk [vmem:[#allocation4 + $0x48] sm:$0xff] %vm36_vm2, %v1706_v12  ;;  %v1545_v63 = vmul.f32 1.442695, %v5487_v56  ;;  %v3019_v12 = vpop.eup %3018 }
 0x2f3   :  { %v1587_v8 = vmul.f32 %v3019_v12, %v1459_v38  ;;  %v1463_v38 = vld [vmem:[#allocation4 + $0xb0] sm:$0xff] }
 0x2f4   :  { %3024 = vpow2.f32 %v1545_v63  ;;  %v3021_v48 = vpop.eup %3020 }
 0x2f5   :  { %v1588_v37 = vmul.f32 %v3021_v48, %v1460_v11 }
 0x2f6   :  { %v1636_v19 = vpop.xlane.xlu1 %1635 }
 0x2f7   :  { %v1708_v23 = vadd.f32 %v1636_v19, %v1580_v52  ;;  %v5490_v52 = vsub.f32 %v5488_v35, %v5489_v44 }
 0x2f9   :  { %1741 = vst.msk [vmem:[#allocation4 + $0x58] sm:$0xff] %vm36_vm2, %v1708_v23  ;;  %v1547_v19 = vmul.f32 1.442695, %v5490_v52  ;;  %v5491_v23 = vld [vmem:[#allocation77_spill] sm:$0xff]  ;;  %v5505_v52 = vld [vmem:[#allocation79_spill] sm:$0xff] }
 0x2fa   :  { %v5493_v40 = vsub.f32 %v5491_v23, %v5492_v29  ;;  %v3023_v59 = vpop.eup %3022 }
 0x2fb   :  { %3026 = vpow2.f32 %v1547_v19  ;;  %v5506_v19 = vld [vmem:[#allocation81_spill] sm:$0xff] }
 0x2fc   :  { %v1517_v62 = vmul.f32 1.442695, %v5493_v40 }
 0x2fe   :  { %v1642_v22 = vpop.xlane.xlu1 %1641  ;;  %3028 = vpow2.f32 %v1517_v62  ;;  %v1449_v62 = vld [vmem:[#allocation4 + $0x40] sm:$0xff] }
 0x2ff   :  { %v1710_v46 = vadd.f32 %v1642_v22, %v1582_v18  ;;  %v1445_v18 = vld [vmem:[#allocation4 + $0x20] sm:$0xff]  ;;  %3030 = vpow2.f32 %v1549_v2  ;;  %v2202_v2 = vld [vmem:[#allocation3 + $0x8] sm:$0xff] }
 0x300   :  { %v1573_v20 = vmul.f32 %v3023_v59, %v1445_v18 }
 0x301   :  { %1743 = vst.msk [vmem:[#allocation4 + $0x68] sm:$0xff] %vm36_vm2, %v1710_v46  ;;  %v3025_v46 = vpop.eup %3024 }
 0x302   :  { %v1589_v24 = vmul.f32 %v3025_v46, %v1461_v61 }
 0x305   :  { %v1651_v13 = vpop.xlane.xlu0 %1650  ;;  %v3027_v7 = vpop.eup %3026 }
 0x306   :  { %v1713_v5 = vadd.f32 %v1651_v13, %v1585_v42  ;;  %v5496_v42 = vld [vmem:[#allocation80_spill] sm:$0xff]  ;;  %v1590_v41 = vmul.f32 %v3027_v7, %v1462_v50 }
 0x307   :  { %v5498_v13 = vsub.f32 %v5496_v42, %v5497_v54  ;;  %v1451_v42 = vld [vmem:[#allocation4 + $0x50] sm:$0xff] }
 0x308   :  { %1746 = vst.msk [vmem:[#allocation4 + $0x80] sm:$0xff] %vm36_vm2, %v1713_v5  ;;  %v3029_v55 = vpop.eup %3028 }
 0x309   :  { %v1606_v16 = vpop.xlane.xlu0 %1605  ;;  %v1521_v36 = vmul.f32 1.442695, %v5498_v13  ;;  %v2201_v13 = vld [vmem:[#allocation3] sm:$0xff] }
 0x30a   :  { %v1698_v10 = vadd.f32 %v1606_v16, %v1570_v3  ;;  %v5500_v3 = vld [vmem:[#allocation88_spill] sm:$0xff] }
 0x30b   :  { %v5501_v60 = vsub.f32 %v5499_v33, %v5500_v3 }
 0x30c   :  { %1731 = vst.msk [vmem:[#allocation4 + $0x8] sm:$0xff] %vm36_vm2, %v1698_v10  ;;  %v4894_v10 = vpop.xlane.xlu1 %786 }
 0x30d   :  { %v1654_v17 = vpop.xlane.xlu0 %1653  ;;  %v1525_v16 = vmul.f32 1.442695, %v5501_v60  ;;  %v5513_v60 = vld [vmem:[#allocation25_spill] sm:$0xff] }
 0x30e   :  { %v1714_v49 = vadd.f32 %v1654_v17, %v1586_v21  ;;  %v1447_v21 = vld [vmem:[#allocation4 + $0x30] sm:$0xff] }
 0x30f   :  { %v5502_v17 = vld [vmem:[#allocation94_spill] sm:$0xff]  ;;  %v1575_v63 = vmul.f32 %v3029_v55, %v1447_v21 }
 0x310   :  { %1747 = vst.msk [vmem:[#allocation4 + $0x88] sm:$0xff] %vm36_vm2, %v1714_v49  ;;  %v5504_v49 = vsub.f32 %v5502_v17, %v5503_v43  ;;  %v4901_v12 = vpop.xlane.xlu1 %789  ;;  %v2242_v21 = vld [vmem:[#allocation4 + $0x48] sm:$0xff] }
 0x311   :  { %v1609_v57 = vpop.xlane.xlu0 %1608 }
 0x312   :  { %v1699_v39 = vadd.f32 %v1609_v57, %v1571_v1  ;;  %v1529_v34 = vmul.f32 1.442695, %v5504_v49  ;;  %v3031_v1 = vpop.eup %3030 }
 0x313   :  { %v2234_v28 = vld [vmem:[#allocation4 + $0x8] sm:$0xff] }
 0x314   :  { %1732 = vst.msk [vmem:[#allocation4 + $0x10] sm:$0xff] %vm36_vm2, %v1699_v39  ;;  %3032 = vlog2.f32 %v2234_v28 }
 0x315   :  { %v1657_v15 = vpop.xlane.xlu0 %1656  ;;  %3034 = vlog2.f32 %v2233_v14  ;;  %v5510_v14 = vld [vmem:[#allocation61_spill] sm:$0xff] }
 0x316   :  { %v1715_v26 = vadd.f32 %v1657_v15, %v1587_v8  ;;  %v5507_v8 = vsub.f32 %v5505_v52, %v5506_v19  ;;  %v2238_v15 = vld [vmem:[#allocation4 + $0x28] sm:$0xff]  ;;  %v2205_v52 = vld [vmem:[#allocation3 + $0x20] sm:$0xff] }
 0x318   :  { %1748 = vst.msk [vmem:[#allocation4 + $0x90] sm:$0xff] %vm36_vm2, %v1715_v26  ;;  %v1551_v48 = vmul.f32 1.442695, %v5507_v8  ;;  %v1591_v26 = vmul.f32 %v3031_v1, %v1463_v38 }
 0x319   :  { %v1660_v25 = vpop.xlane.xlu0 %1659 }
 0x31a   :  { %v1716_v22 = vadd.f32 %v1660_v25, %v1588_v37  ;;  %v5508_v37 = vsub.f32 %v4507_v47, %v4522_v32  ;;  %v853_v47 = vsel %vm36_vm2, %v5510_v14, 0.0 }
 0x31b   :  { %v2235_v5 = vld [vmem:[#allocation4 + $0x10] sm:$0xff] }
 0x31c   :  { %1749 = vst.msk [vmem:[#allocation4 + $0x98] sm:$0xff] %vm36_vm2, %v1716_v22  ;;  %3036 = vlog2.f32 %v2235_v5  ;;  %v1533_v59 = vmul.f32 1.442695, %v5508_v37  ;;  %v4910_v22 = vpop.xlane.xlu1 %792 }
 0x31d   :  { %v1615_v27 = vpop.xlane.xlu0 %1614  ;;  %3038 = vpow2.f32 %v1521_v36  ;;  %v2203_v36 = vld [vmem:[#allocation3 + $0x10] sm:$0xff] }
 0x31e   :  { %v1701_v51 = vadd.f32 %v1615_v27, %v1573_v20  ;;  %3040 = vpow2.f32 %v1525_v16  ;;  %v3033_v39 = vpop.eup %3032  ;;  %v2240_v20 = vld [vmem:[#allocation4 + $0x38] sm:$0xff]  ;;  %v856_v16 = vsel %vm36_vm2, %v5513_v60, 0.0 }
 0x31f   :  { %3042 = vlog2.f32 %v2236_v0  ;;  %v3035_v44 = vpop.eup %3034  ;;  %v2268_v29 = vmul.f32 0.6931472, %v3033_v39  ;;  %v5509_v27 = vld [vmem:[#allocation59_spill] sm:$0xff] }
 0x320   :  { %1734 = vst.msk [vmem:[#allocation4 + $0x20] sm:$0xff] %vm36_vm2, %v1701_v51  ;;  %v2266_v18 = vmul.f32 0.6931472, %v3035_v44  ;;  %v854_v61 = vsel %vm36_vm2, %v5509_v27, 0.0  ;;  %v2204_v44 = vld [vmem:[#allocation3 + $0x18] sm:$0xff] }
 0x321   :  { %v1663_v4 = vpop.xlane.xlu0 %1662  ;;  %v2330_v32 = vadd.f32 %v2268_v29, %v2202_v2 }
 0x322   :  { %v1717_v6 = vadd.f32 %v1663_v4, %v1589_v24  ;;  %v5511_v24 = vld [vmem:[#allocation57_spill] sm:$0xff]  ;;  %v2329_v50 = vadd.f32 %v2266_v18, %v2201_v13  ;;  %v5519_v18 = vld [vmem:[#allocation87_spill] sm:$0xff] }
 0x323   :  { %v5512_v7 = vsub.f32 %v4524_v31, %v5511_v24  ;;  %v4924_v31 = vpop.xlane.xlu1 %795  ;;  %v1455_v13 = vld [vmem:[#allocation4 + $0x70] sm:$0xff] }
 0x324   :  { %1750 = vst.msk [vmem:[#allocation4 + $0xa0] sm:$0xff] %vm36_vm2, %v1717_v6  ;;  %v855_v6 = vadd.f32 %v854_v61, %v853_v47  ;;  %v5521_v47 = vld [vmem:[#allocation45_spill] sm:$0xff] }
 0x325   :  { %v1666_v45 = vpop.xlane.xlu0 %1665  ;;  %v1535_v4 = vmul.f32 1.442695, %v5512_v7 }
 0x326   :  { %v1718_v53 = vadd.f32 %v1666_v45, %v1590_v41  ;;  %v3037_v11 = vpop.eup %3036  ;;  %v1453_v41 = vld [vmem:[#allocation4 + $0x60] sm:$0xff] }
 0x327   :  { %v2237_v56 = vld [vmem:[#allocation4 + $0x20] sm:$0xff]  ;;  %v3039_v23 = vpop.eup %3038  ;;  %v2270_v9 = vmul.f32 0.6931472, %v3037_v11 }
 0x328   :  { %3044 = vlog2.f32 %v2237_v56  ;;  %1751 = vst.msk [vmem:[#allocation4 + $0xa8] sm:$0xff] %vm36_vm2, %v1718_v53  ;;  %v3041_v30 = vpop.eup %3040  ;;  %v1577_v46 = vmul.f32 %v3039_v23, %v1449_v62  ;;  %v2363_v53 = vsel %vm36_vm2, %v2330_v32, 0.0  ;;  %v5515_v56 = vld [vmem:[#allocation84_spill] sm:$0xff]  ;;  %v860_v32 = vsel %vm36_vm2, %v5521_v47, 0.0 }
 0x329   :  { %v1621_v57 = vpop.xlane.xlu0 %1620  ;;  %3046 = vpow2.f32 %v1529_v34  ;;  %v3043_v28 = vpop.eup %3042  ;;  %v2331_v33 = vadd.f32 %v2270_v9, %v2203_v36  ;;  %v1579_v0 = vmul.f32 %v3041_v30, %v1451_v42  ;;  %v5514_v34 = vld [vmem:[#allocation83_spill] sm:$0xff] }
 0x32a   :  { %v1703_v35 = vadd.f32 %v1621_v57, %v1575_v63  ;;  %3048 = vlog2.f32 %v2238_v15  ;;  %v2272_v45 = vmul.f32 0.6931472, %v3043_v28  ;;  %v5516_v63 = vsub.f32 %v5514_v34, %v5515_v56  ;;  %v5517_v15 = vld [vmem:[#allocation27_spill] sm:$0xff] }
 0x32b   :  { %3050 = vpow2.f32 %v1551_v48  ;;  %v2362_v57 = vsel %vm36_vm2, %v2329_v50, 0.0  ;;  %v2365_v38 = vsel %vm36_vm2, %v2331_v33, 0.0  ;;  %v858_v11 = vsel %vm36_vm2, %v5517_v15, 0.0  ;;  %v2244_v62 = vld [vmem:[#allocation4 + $0x58] sm:$0xff] }
 0x32c   :  { %1736 = vst.msk [vmem:[#allocation4 + $0x30] sm:$0xff] %vm36_vm2, %v1703_v35  ;;  %3052 = vpow2.f32 %v1533_v59  ;;  %v1553_v1 = vmul.f32 1.442695, %v5516_v63  ;;  %v857_v35 = vadd.f32 %v856_v16, %v855_v6  ;;  %v2364_v19 = vadd.f32 %v2363_v53, %v2362_v57  ;;  %v5523_v50 = vld [vmem:[#allocation91_spill] sm:$0xff]  ;;  %v5525_v53 = vld [vmem:[#allocation46_spill] sm:$0xff] }
 0x32d   :  { %v1669_v40 = vpop.xlane.xlu0 %1668  ;;  %3054 = vlog2.f32 %v2240_v20  ;;  %v4937_v20 = vpop.xlane.xlu1 %798  ;;  %v1456_v63 = vld [vmem:[#allocation4 + $0x78] sm:$0xff]  ;;  %v2246_v57 = vld [vmem:[#allocation4 + $0x68] sm:$0xff] }
 0x32e   :  { %v1719_v25 = vadd.f32 %v1669_v40, %v1591_v26  ;;  %v2332_v26 = vadd.f32 %v2272_v45, %v2204_v44  ;;  %v1464_v40 = vld [vmem:[#allocation4 + $0xb8] sm:$0xff]  ;;  %v2366_v37 = vadd.f32 %v2365_v38, %v2364_v19  ;;  %v859_v27 = vadd.f32 %v858_v11, %v857_v35 }
 0x32f   :  { %v5527_v35 = vld [vmem:[#allocation95_spill] sm:$0xff] }
 0x330   :  { %1752 = vst.msk [vmem:[#allocation4 + $0xb0] sm:$0xff] %vm36_vm2, %v1719_v25  ;;  %v5518_v25 = vld [vmem:[#allocation85_spill] sm:$0xff]  ;;  %v2208_v11 = vld [vmem:[#allocation3 + $0x38] sm:$0xff] }
 0x331   :  { %v1627_v51 = vpop.xlane.xlu0 %1626  ;;  %v5520_v9 = vsub.f32 %v5518_v25, %v5519_v18  ;;  %v1465_v18 = vld [vmem:[#allocation4 + $0xc0] sm:$0xff] }
 0x332   :  { %v3045_v54 = vpop.eup %3044  ;;  %v1705_v5 = vadd.f32 %v1627_v51, %v1577_v46  ;;  %v2367_v51 = vsel %vm36_vm2, %v2332_v26, 0.0 }
 0x333   :  { %v2239_v3 = vld [vmem:[#allocation4 + $0x30] sm:$0xff]  ;;  %v3047_v55 = vpop.eup %3046  ;;  %v2274_v17 = vmul.f32 0.6931472, %v3045_v54  ;;  %v1555_v30 = vmul.f32 1.442695, %v5520_v9  ;;  %v2368_v24 = vadd.f32 %v2367_v51, %v2366_v37 }
 0x334   :  { %3056 = vlog2.f32 %v2239_v3  ;;  %1738 = vst.msk [vmem:[#allocation4 + $0x40] sm:$0xff] %vm36_vm2, %v1705_v5  ;;  %v3049_v39 = vpop.eup %3048  ;;  %v1581_v8 = vmul.f32 %v3047_v55, %v1453_v41  ;;  %v2206_v5 = vld [vmem:[#allocation3 + $0x28] sm:$0xff]  ;;  %v2207_v41 = vld [vmem:[#allocation3 + $0x30] sm:$0xff] }
 0x335   :  { %v1633_v43 = vpop.xlane.xlu0 %1632  ;;  %3058 = vpow2.f32 %v1535_v4  ;;  %v3051_v48 = vpop.eup %3050  ;;  %v2333_v23 = vadd.f32 %v2274_v17, %v2205_v52  ;;  %v2276_v2 = vmul.f32 0.6931472, %v3049_v39  ;;  %v5522_v4 = vld [vmem:[#allocation89_spill] sm:$0xff]  ;;  %v862_v17 = vsel %vm36_vm2, %v5525_v53, 0.0 }
 0x336   :  { %v1707_v49 = vadd.f32 %v1633_v43, %v1579_v0  ;;  %3060 = vlog2.f32 %v2242_v21  ;;  %v3053_v28 = vpop.eup %3052  ;;  %v1592_v61 = vmul.f32 %v3051_v48, %v1464_v40  ;;  %v5524_v33 = vsub.f32 %v5522_v4, %v5523_v50  ;;  %v5526_v39 = vld [vmem:[#allocation93_spill] sm:$0xff]  ;;  %v5534_v4 = vld [vmem:[#allocation100_spill] sm:$0xff] }
 0x337   :  { %3062 = vpow2.f32 %v1553_v1  ;;  %v3055_v14 = vpop.eup %3054  ;;  %v2369_v42 = vsel %vm36_vm2, %v2333_v23, 0.0  ;;  %v2334_v60 = vadd.f32 %v2276_v2, %v2206_v5  ;;  %v861_v0 = vadd.f32 %v860_v32, %v859_v27  ;;  %v5529_v40 = vld [vmem:[#allocation49_spill] sm:$0xff]  ;;  %v5531_v2 = vld [vmem:[#allocation99_spill] sm:$0xff] }
 0x338   :  { %1740 = vst.msk [vmem:[#allocation4 + $0x50] sm:$0xff] %vm36_vm2, %v1707_v49  ;;  %v1557_v3 = vmul.f32 1.442695, %v5524_v33  ;;  %v2370_v55 = vadd.f32 %v2369_v42, %v2368_v24  ;;  %v1583_v45 = vmul.f32 %v3053_v28, %v1455_v13  ;;  %v2280_v43 = vmul.f32 0.6931472, %v3055_v14  ;;  %v4950_v49 = vpop.xlane.xlu1 %801  ;;  %v5533_v42 = vld [vmem:[#allocation60_spill] sm:$0xff] }
 0x339   :  { %v1639_v29 = vpop.xlane.xlu0 %1638  ;;  %v5528_v44 = vsub.f32 %v5526_v39, %v5527_v35  ;;  %v2371_v19 = vsel %vm36_vm2, %v2334_v60, 0.0  ;;  %v863_v15 = vadd.f32 %v862_v17, %v861_v0  ;;  %v2209_v13 = vld [vmem:[#allocation3 + $0x40] sm:$0xff]  ;;  %v2250_v17 = vld [vmem:[#allocation4 + $0x88] sm:$0xff] }
 0x33a   :  { %v1709_v59 = vadd.f32 %v1639_v29, %v1581_v8  ;;  %v2372_v26 = vadd.f32 %v2371_v19, %v2370_v55  ;;  %v2336_v37 = vadd.f32 %v2280_v43, %v2208_v11  ;;  %v2249_v5 = vld [vmem:[#allocation4 + $0x80] sm:$0xff]  ;;  %v2212_v11 = vld [vmem:[#allocation3 + $0x58] sm:$0xff] }
 0x33b   :  { %v2241_v46 = vld [vmem:[#allocation4 + $0x40] sm:$0xff]  ;;  %v1559_v52 = vmul.f32 1.442695, %v5528_v44 }
 0x33c   :  { %3064 = vlog2.f32 %v2241_v46  ;;  %1742 = vst.msk [vmem:[#allocation4 + $0x60] sm:$0xff] %vm36_vm2, %v1709_v59  ;;  %v4963_v47 = vpop.xlane.xlu1 %804  ;;  %v5535_v50 = vld [vmem:[#allocation101_spill] sm:$0xff]  ;;  %v2375_v60 = vsel %vm36_vm2, %v2336_v37, 0.0 }
 0x33d   :  { %3066 = vlog2.f32 %v2244_v62  ;;  %v1672_v54 = vpop.xlane.xlu0 %1671  ;;  %v864_v62 = vsel %vm36_vm2, %v5529_v40, 0.0  ;;  %v5536_v33 = vsub.f32 %v5534_v4, %v5535_v50  ;;  %v5541_v4 = vld [vmem:[#allocation103_spill] sm:$0xff]  ;;  %v5542_v50 = vld [vmem:[#allocation104_spill] sm:$0xff] }
 0x33e   :  { %v3057_v36 = vpop.eup %3056  ;;  %v1720_v7 = vadd.f32 %v1672_v54, %v1592_v61  ;;  %3068 = vpow2.f32 %v1555_v30  ;;  %v5530_v30 = vld [vmem:[#allocation97_spill] sm:$0xff]  ;;  %v865_v51 = vadd.f32 %v864_v62, %v863_v15  ;;  %v866_v54 = vsel %vm36_vm2, %v5533_v42, 0.0 }
 0x33f   :  { %v2278_v16 = vmul.f32 0.6931472, %v3057_v36  ;;  %v2243_v6 = vld [vmem:[#allocation4 + $0x50] sm:$0xff]  ;;  %v3059_v21 = vpop.eup %3058  ;;  %v5532_v46 = vsub.f32 %v5530_v30, %v5531_v2  ;;  %v2210_v36 = vld [vmem:[#allocation3 + $0x48] sm:$0xff]  ;;  %v2252_v2 = vld [vmem:[#allocation4 + $0x98] sm:$0xff] }
 0x340   :  { %3070 = vlog2.f32 %v2243_v6  ;;  %1753 = vst.msk [vmem:[#allocation4 + $0xb8] sm:$0xff] %vm36_vm2, %v1720_v7  ;;  %v3061_v1 = vpop.eup %3060  ;;  %v1584_v23 = vmul.f32 %v3059_v21, %v1456_v63  ;;  %v2211_v63 = vld [vmem:[#allocation3 + $0x50] sm:$0xff]  ;;  %v867_v35 = vadd.f32 %v866_v54, %v865_v51  ;;  %v1468_v54 = vld [vmem:[#allocation4 + $0xd8] sm:$0xff] }
 0x341   :  { %v2335_v34 = vadd.f32 %v2278_v16, %v2207_v41  ;;  %v1645_v56 = vpop.xlane.xlu0 %1644  ;;  %3072 = vpow2.f32 %v1557_v3  ;;  %v3063_v29 = vpop.eup %3062  ;;  %v2284_v59 = vmul.f32 0.6931472, %v3061_v1  ;;  %v1561_v28 = vmul.f32 1.442695, %v5532_v46  ;;  %v1466_v41 = vld [vmem:[#allocation4 + $0xc8] sm:$0xff] }
 0x342   :  { %v1711_v38 = vadd.f32 %v1645_v56, %v1583_v45  ;;  %v1593_v24 = vmul.f32 %v3063_v29, %v1465_v18  ;;  %v1563_v3 = vmul.f32 1.442695, %v5536_v33  ;;  %v5540_v46 = vld [vmem:[#allocation62_spill] sm:$0xff]  ;;  %v5543_v33 = vsub.f32 %v5541_v4, %v5542_v50 }
 0x343   :  { %v2373_v8 = vsel %vm36_vm2, %v2335_v34, 0.0  ;;  %v2245_v48 = vld [vmem:[#allocation4 + $0x60] sm:$0xff]  ;;  %v2338_v16 = vadd.f32 %v2284_v59, %v2210_v36  ;;  %v870_v36 = vsel %vm36_vm2, %v4798_v58, 0.0 }
 0x344   :  { %3074 = vlog2.f32 %v2245_v48  ;;  %1744 = vst.msk [vmem:[#allocation4 + $0x70] sm:$0xff] %vm36_vm2, %v1711_v38  ;;  %v2374_v27 = vadd.f32 %v2373_v8, %v2372_v26  ;;  %v2251_v38 = vld [vmem:[#allocation4 + $0x90] sm:$0xff] }
 0x345   :  { %3076 = vlog2.f32 %v2246_v57  ;;  %v1648_v25 = vpop.xlane.xlu0 %1647  ;;  %v2379_v44 = vsel %vm36_vm2, %v2338_v16, 0.0  ;;  %v1467_v48 = vld [vmem:[#allocation4 + $0xd0] sm:$0xff]  ;;  %v2254_v16 = vld [vmem:[#allocation4 + $0xa8] sm:$0xff] }
 0x346   :  { %v3065_v9 = vpop.eup %3064  ;;  %v1712_v61 = vadd.f32 %v1648_v25, %v1584_v23  ;;  %3078 = vpow2.f32 %v1559_v52  ;;  %v2376_v21 = vadd.f32 %v2375_v60, %v2374_v27  ;;  %v4975_v52 = vpop.xlane.xlu1 %807  ;;  %v5537_v26 = vld [vmem:[#allocation102_spill] sm:$0xff]  ;;  %v2213_v27 = vld [vmem:[#allocation3 + $0x60] sm:$0xff] }
 0x347   :  { %v3067_v14 = vpop.eup %3066  ;;  %v2282_v32 = vmul.f32 0.6931472, %v3065_v9  ;;  %3080 = vpow2.f32 %v1561_v28  ;;  %v5538_v23 = vld [vmem:[#allocation58_spill] sm:$0xff]  ;;  %v868_v28 = vsel %vm36_vm2, %v5540_v46, 0.0 }
 0x348   :  { %1745 = vst.msk [vmem:[#allocation4 + $0x78] sm:$0xff] %vm36_vm2, %v1712_v61  ;;  %v3069_v7 = vpop.eup %3068  ;;  %v2288_v45 = vmul.f32 0.6931472, %v3067_v14  ;;  %3082 = vlog2.f32 %v2249_v5  ;;  %v5539_v29 = vsub.f32 %v5537_v26, %v5538_v23 }
 0x349   :  { %v2337_v6 = vadd.f32 %v2282_v32, %v2209_v13  ;;  %v1675_v0 = vpop.xlane.xlu0 %1674  ;;  %v1594_v57 = vmul.f32 %v3069_v7, %v1466_v41  ;;  %v2253_v13 = vld [vmem:[#allocation4 + $0xa0] sm:$0xff]  ;;  %v869_v7 = vadd.f32 %v868_v28, %v867_v35  ;;  %v872_v41 = vsel %vm36_vm2, %v4894_v10, 0.0 }
 0x34a   :  { %v3071_v55 = vpop.eup %3070  ;;  %v1721_v53 = vadd.f32 %v1675_v0, %v1593_v24  ;;  %v1565_v40 = vmul.f32 1.442695, %v5539_v29  ;;  %v2340_v25 = vadd.f32 %v2288_v45, %v2212_v11  ;;  %v4989_v60 = vpop.xlane.xlu1 %810 }
 0x34b   :  { %v2377_v43 = vsel %vm36_vm2, %v2337_v6, 0.0  ;;  %v2286_v34 = vmul.f32 0.6931472, %v3071_v55  ;;  %v2247_v56 = vld [vmem:[#allocation4 + $0x70] sm:$0xff]  ;;  %v3073_v39 = vpop.eup %3072 }
 0x34c   :  { %v2378_v1 = vadd.f32 %v2377_v43, %v2376_v21  ;;  %3084 = vlog2.f32 %v2247_v56  ;;  %1754 = vst.msk [vmem:[#allocation4 + $0xc0] sm:$0xff] %vm36_vm2, %v1721_v53  ;;  %v1595_v61 = vmul.f32 %v3073_v39, %v1467_v48  ;;  %v2383_v6 = vsel %vm36_vm2, %v2340_v25, 0.0  ;;  %v2214_v21 = vld [vmem:[#allocation3 + $0x68] sm:$0xff]  ;;  %v1469_v43 = vld [vmem:[#allocation4 + $0xe0] sm:$0xff] }
 0x34d   :  { %3086 = vpow2.f32 %v1563_v3  ;;  %v2339_v19 = vadd.f32 %v2286_v34, %v2211_v63  ;;  %v1678_v8 = vpop.xlane.xlu0 %1677  ;;  %v1567_v3 = vmul.f32 1.442695, %v5543_v33  ;;  %v871_v53 = vadd.f32 %v870_v36, %v869_v7  ;;  %v2255_v34 = vld [vmem:[#allocation4 + $0xb0] sm:$0xff] }
 0x34e   :  { %v3075_v15 = vpop.eup %3074  ;;  %v1722_v62 = vadd.f32 %v1678_v8, %v1594_v57  ;;  %3088 = vlog2.f32 %v2250_v17  ;;  %v2380_v37 = vadd.f32 %v2379_v44, %v2378_v1  ;;  %v874_v1 = vsel %vm36_vm2, %v4901_v12, 0.0  ;;  %v2256_v44 = vld [vmem:[#allocation4 + $0xb8] sm:$0xff]  ;;  %v2215_v8 = vld [vmem:[#allocation3 + $0x70] sm:$0xff]  ;;  %v5001_v23 = vpop.xlane.xlu1 %813 }
 0x34f   :  { %v3077_v59 = vpop.eup %3076  ;;  %v2381_v18 = vsel %vm36_vm2, %v2339_v19, 0.0  ;;  %v2290_v9 = vmul.f32 0.6931472, %v3075_v15  ;;  %v2248_v30 = vld [vmem:[#allocation4 + $0x78] sm:$0xff]  ;;  %3090 = vlog2.f32 %v2251_v38  ;;  %v873_v39 = vadd.f32 %v872_v41, %v871_v53 }
 0x350   :  { %3092 = vlog2.f32 %v2248_v30  ;;  %1755 = vst.msk [vmem:[#allocation4 + $0xc8] sm:$0xff] %vm36_vm2, %v1722_v62  ;;  %v2382_v14 = vadd.f32 %v2381_v18, %v2380_v37  ;;  %v3079_v32 = vpop.eup %3078  ;;  %v2292_v5 = vmul.f32 0.6931472, %v3077_v59  ;;  %v876_v48 = vsel %vm36_vm2, %v4910_v22, 0.0 }
 0x351   :  { %v2341_v51 = vadd.f32 %v2290_v9, %v2213_v27  ;;  %v1681_v42 = vpop.xlane.xlu0 %1680  ;;  %3094 = vlog2.f32 %v2252_v2  ;;  %v3081_v0 = vpop.eup %3080  ;;  %v1596_v58 = vmul.f32 %v3079_v32, %v1468_v54  ;;  %v875_v12 = vadd.f32 %v874_v1, %v873_v39 }
 0x352   :  { %v1723_v24 = vadd.f32 %v1681_v42, %v1595_v61  ;;  %3096 = vpow2.f32 %v1565_v40  ;;  %v2384_v55 = vadd.f32 %v2383_v6, %v2382_v14  ;;  %v3083_v45 = vpop.eup %3082  ;;  %v2342_v10 = vadd.f32 %v2292_v5, %v2214_v21  ;;  %v1470_v40 = vld [vmem:[#allocation4 + $0xe8] sm:$0xff]  ;;  %v2216_v14 = vld [vmem:[#allocation3 + $0x78] sm:$0xff]  ;;  %v2217_v42 = vld [vmem:[#allocation3 + $0x80] sm:$0xff] }
 0x353   :  { %3098 = vlog2.f32 %v2253_v13  ;;  %v2385_v56 = vsel %vm36_vm2, %v2341_v51, 0.0  ;;  %v1597_v15 = vmul.f32 %v3081_v0, %v1469_v43  ;;  %v2257_v62 = vld [vmem:[#allocation4 + $0xc0] sm:$0xff]  ;;  %v2298_v37 = vmul.f32 0.6931472, %v3083_v45  ;;  %v1471_v5 = vld [vmem:[#allocation4 + $0xf0] sm:$0xff]  ;;  %v2218_v6 = vld [vmem:[#allocation3 + $0x88] sm:$0xff] }
 0x354   :  { %1756 = vst.msk [vmem:[#allocation4 + $0xd0] sm:$0xff] %vm36_vm2, %v1723_v24  ;;  %3100 = vlog2.f32 %v2254_v16  ;;  %v2386_v11 = vadd.f32 %v2385_v56, %v2384_v55  ;;  %v878_v18 = vsel %vm36_vm2, %v4924_v31, 0.0  ;;  %v2387_v22 = vsel %vm36_vm2, %v2342_v10, 0.0  ;;  %v5010_v24 = vpop.xlane.xlu1 %819 }
 0x355   :  { %v1684_v17 = vpop.xlane.xlu0 %1683  ;;  %3102 = vpow2.f32 %v1567_v3  ;;  %v877_v30 = vadd.f32 %v876_v48, %v875_v12  ;;  %v880_v32 = vsel %vm36_vm2, %v4937_v20, 0.0  ;;  %v2345_v33 = vadd.f32 %v2298_v37, %v2217_v42 }
 0x356   :  { %v3085_v63 = vpop.eup %3084  ;;  %v1724_v57 = vadd.f32 %v1684_v17, %v1596_v58  ;;  %3104 = vlog2.f32 %v2255_v34  ;;  %v2388_v31 = vadd.f32 %v2387_v22, %v2386_v11  ;;  %v882_v20 = vsel %vm36_vm2, %v4950_v49, 0.0  ;;  %v2219_v34 = vld [vmem:[#allocation3 + $0x90] sm:$0xff] }
 0x357   :  { %v3087_v38 = vpop.eup %3086  ;;  %v2294_v35 = vmul.f32 0.6931472, %v3085_v63  ;;  %3106 = vlog2.f32 %v2256_v44  ;;  %v2258_v2 = vld [vmem:[#allocation4 + $0xc8] sm:$0xff]  ;;  %v879_v13 = vadd.f32 %v878_v18, %v877_v30  ;;  %v884_v17 = vsel %vm36_vm2, %v4963_v47, 0.0  ;;  %v2220_v47 = vld [vmem:[#allocation3 + $0x98] sm:$0xff] }
 0x358   :  { %v3089_v19 = vpop.eup %3088  ;;  %1757 = vst.msk [vmem:[#allocation4 + $0xd8] sm:$0xff] %vm36_vm2, %v1724_v57  ;;  %v1598_v51 = vmul.f32 %v3087_v38, %v1470_v40  ;;  %3108 = vlog2.f32 %v2257_v62  ;;  %v1472_v57 = vld [vmem:[#allocation4 + $0xf8] sm:$0xff]  ;;  %v2393_v39 = vsel %vm36_vm2, %v2345_v33, 0.0  ;;  %v886_v44 = vsel %vm36_vm2, %v4975_v52, 0.0  ;;  %v2442_v40 = vld [vmem:[#allocation6] sm:$0x3] }
 0x359   :  { %v3091_v26 = vpop.eup %3090  ;;  %v1687_v29 = vpop.xlane.xlu0 %1686  ;;  %v2343_v59 = vadd.f32 %v2294_v35, %v2215_v8  ;;  %v2300_v28 = vmul.f32 0.6931472, %v3089_v19  ;;  %3110 = vlog2.f32 %v2258_v2  ;;  %v881_v41 = vadd.f32 %v880_v32, %v879_v13  ;;  %v2221_v52 = vld [vmem:[#allocation3 + $0xa0] sm:$0xff]  ;;  %v2223_v13 = vld [vmem:[#allocation3 + $0xb0] sm:$0xff] }
 0x35a   :  { %v3093_v25 = vpop.eup %3092  ;;  %v1725_v9 = vadd.f32 %v1687_v29, %v1597_v15  ;;  %v2302_v4 = vmul.f32 0.6931472, %v3091_v26  ;;  %v826_v15 = vpop.xlane.xlu1 %825  ;;  %v888_v37 = vsel %vm36_vm2, %v4989_v60, 0.0 }
 0x35b   :  { %v2296_v46 = vmul.f32 0.6931472, %v3093_v25  ;;  %v2389_v27 = vsel %vm36_vm2, %v2343_v59, 0.0  ;;  %v3095_v61 = vpop.eup %3094  ;;  %v2259_v7 = vld [vmem:[#allocation4 + $0xd0] sm:$0xff]  ;;  %v2346_v45 = vadd.f32 %v2300_v28, %v2218_v6  ;;  %v883_v63 = vadd.f32 %v882_v20, %v881_v41  ;;  %v2224_v6 = vld [vmem:[#allocation3 + $0xb8] sm:$0xff] }
 0x35c   :  { %1758 = vst.msk [vmem:[#allocation4 + $0xe0] sm:$0xff] %vm36_vm2, %v1725_v9  ;;  %v3097_v54 = vpop.eup %3096  ;;  %v2390_v0 = vadd.f32 %v2389_v27, %v2388_v31  ;;  %v2304_v55 = vmul.f32 0.6931472, %v3095_v61  ;;  %3112 = vlog2.f32 %v2259_v7  ;;  %v2347_v38 = vadd.f32 %v2302_v4, %v2219_v34  ;;  %v2222_v61 = vld [vmem:[#allocation3 + $0xa8] sm:$0xff] }
 0x35d   :  { %v1690_v36 = vpop.xlane.xlu0 %1689  ;;  %v2344_v50 = vadd.f32 %v2296_v46, %v2216_v14  ;;  %v3099_v3 = vpop.eup %3098  ;;  %v1599_v43 = vmul.f32 %v3097_v54, %v1471_v5  ;;  %v885_v48 = vadd.f32 %v884_v17, %v883_v63  ;;  %v2395_v29 = vsel %vm36_vm2, %v2346_v45, 0.0  ;;  %v2225_v17 = vld [vmem:[#allocation3 + $0xc0] sm:$0xff] }
 0x35e   :  { %v1726_v16 = vadd.f32 %v1690_v36, %v1598_v51  ;;  %v3101_v53 = vpop.eup %3100  ;;  %v2306_v10 = vmul.f32 0.6931472, %v3099_v3  ;;  %v2348_v12 = vadd.f32 %v2304_v55, %v2220_v47  ;;  %v2397_v2 = vsel %vm36_vm2, %v2347_v38, 0.0  ;;  %v832_v4 = vpop.xlane.xlu1 %831  ;;  %v2226_v38 = vld [vmem:[#allocation3 + $0xc8] sm:$0xff] }
 0x35f   :  { %v2260_v58 = vld [vmem:[#allocation4 + $0xd8] sm:$0xff]  ;;  %v2391_v21 = vsel %vm36_vm2, %v2344_v50, 0.0  ;;  %v3103_v56 = vpop.eup %3102  ;;  %v2308_v26 = vmul.f32 0.6931472, %v3101_v53  ;;  %v887_v18 = vadd.f32 %v886_v44, %v885_v48  ;;  %v890_v28 = vsel %vm36_vm2, %v5001_v23, 0.0 }
 0x360   :  { %1759 = vst.msk [vmem:[#allocation4 + $0xe8] sm:$0xff] %vm36_vm2, %v1726_v16  ;;  %v2392_v49 = vadd.f32 %v2391_v21, %v2390_v0  ;;  %v3105_v35 = vpop.eup %3104  ;;  %3114 = vlog2.f32 %v2260_v58  ;;  %v1600_v59 = vmul.f32 %v3103_v56, %v1472_v57  ;;  %v2349_v30 = vadd.f32 %v2306_v10, %v2221_v52 }
 0x361   :  { %v1693_v1 = vpop.xlane.xlu0 %1692  ;;  %v3107_v62 = vpop.eup %3106  ;;  %v2310_v22 = vmul.f32 0.6931472, %v3105_v35  ;;  %v889_v60 = vadd.f32 %v888_v37, %v887_v18  ;;  %v2350_v42 = vadd.f32 %v2308_v26, %v2222_v61  ;;  %v2399_v31 = vsel %vm36_vm2, %v2348_v12, 0.0  ;;  %v2227_v26 = vld [vmem:[#allocation3 + $0xd0] sm:$0xff]  ;;  %v2228_v18 = vld [vmem:[#allocation3 + $0xd8] sm:$0xff] }
 0x362   :  { %v1727_v19 = vadd.f32 %v1693_v1, %v1599_v43  ;;  %v2394_v8 = vadd.f32 %v2393_v39, %v2392_v49  ;;  %v3109_v46 = vpop.eup %3108  ;;  %v2312_v51 = vmul.f32 0.6931472, %v3107_v62  ;;  %v2401_v33 = vsel %vm36_vm2, %v2349_v30, 0.0  ;;  %v838_v44 = vpop.xlane.xlu1 %837 }
 0x363   :  { %v2261_v11 = vld [vmem:[#allocation4 + $0xe0] sm:$0xff]  ;;  %v3111_v54 = vpop.eup %3110  ;;  %v891_v5 = vadd.f32 %v890_v28, %v889_v60  ;;  %v2314_v23 = vmul.f32 0.6931472, %v3109_v46  ;;  %v2351_v50 = vadd.f32 %v2310_v22, %v2223_v13  ;;  %v894_v16 = vsel %vm36_vm2, %v5010_v24, 0.0 }
 0x364   :  { %1760 = vst.msk [vmem:[#allocation4 + $0xf0] sm:$0xff] %vm36_vm2, %v1727_v19  ;;  %3116 = vlog2.f32 %v2261_v11  ;;  %v2396_v25 = vadd.f32 %v2395_v29, %v2394_v8  ;;  %v2316_v55 = vmul.f32 0.6931472, %v3111_v54  ;;  %v2352_v45 = vadd.f32 %v2312_v51, %v2224_v6  ;;  %v2229_v28 = vld [vmem:[#allocation3 + $0xe0] sm:$0xff] }
 0x365   :  { %v1696_v9 = vpop.xlane.xlu0 %1695  ;;  %3118 = vlog2.f32 %v2442_v40  ;;  %v2403_v21 = vsel %vm36_vm2, %v2350_v42, 0.0  ;;  %v2353_v63 = vadd.f32 %v2314_v23, %v2225_v17  ;;  %v2405_v1 = vsel %vm36_vm2, %v2351_v50, 0.0 }
 0x366   :  { %v1728_v27 = vadd.f32 %v1696_v9, %v1600_v59  ;;  %v2398_v14 = vadd.f32 %v2397_v2, %v2396_v25  ;;  %v3113_v3 = vpop.eup %3112  ;;  %v898_v10 = vsel %vm36_vm2, %v826_v15, 0.0  ;;  %v2354_v8 = vadd.f32 %v2316_v55, %v2226_v38  ;;  %v844_v60 = vpop.xlane.xlu1 %843  ;;  %v5544_v38 = vld [vmem:[#allocation55_spill] sm:$0xff] }
 0x367   :  { %v2262_v32 = vld [vmem:[#allocation4 + $0xe8] sm:$0xff]  ;;  %v2318_v56 = vmul.f32 0.6931472, %v3113_v3  ;;  %v2407_v48 = vsel %vm36_vm2, %v2352_v45, 0.0  ;;  %v2409_v59 = vsel %vm36_vm2, %v2353_v63, 0.0  ;;  %v902_v25 = vsel %vm36_vm2, %v832_v4, 0.0 }
 0x368   :  { %1761 = vst.msk [vmem:[#allocation4 + $0xf8] sm:$0xff] %vm36_vm2, %v1728_v27  ;;  %3120 = vlog2.f32 %v2262_v32  ;;  %v2400_v36 = vadd.f32 %v2399_v31, %v2398_v14  ;;  %v2411_v46 = vsel %vm36_vm2, %v2354_v8, 0.0  ;;  %v906_v13 = vsel %vm36_vm2, %v838_v44, 0.0 }
 0x369   :  { %v817_v7 = vpop.xlane.xlu0 %816  ;;  %v2355_v37 = vadd.f32 %v2318_v56, %v2227_v26  ;;  %v2232_v56 = vld [vmem:[#allocation3 + $0xf8] sm:$0xff]  ;;  %v5546_v8 = vsub.s32 1, %v5544_v38 }
 0x36a   :  { %v892_v20 = vsel %vm36_vm2, %v817_v7, 0.0  ;;  %v2402_v0 = vadd.f32 %v2401_v33, %v2400_v36  ;;  %v3115_v53 = vpop.eup %3114  ;;  %v2230_v36 = vld [vmem:[#allocation3 + $0xe8] sm:$0xff]  ;;  %v2231_v33 = vld [vmem:[#allocation3 + $0xf0] sm:$0xff] }
 0x36b   :  { %v893_v41 = vadd.f32 %v892_v20, %v891_v5  ;;  %v2263_v58 = vld [vmem:[#allocation4 + $0xf0] sm:$0xff]  ;;  %v2320_v47 = vmul.f32 0.6931472, %v3115_v53  ;;  %v2413_v51 = vsel %vm36_vm2, %v2355_v37, 0.0  ;;  %v2441_v20 = vld [vmem:[#allocation5] sm:$0x3] }
 0x36c   :  { %3122 = vlog2.f32 %v2263_v58  ;;  %v2404_v43 = vadd.f32 %v2403_v21, %v2402_v0  ;;  %v910_v21 = vsel %vm36_vm2, %v844_v60, 0.0 }
 0x36d   :  { %v895_v34 = vadd.f32 %v894_v16, %v893_v41  ;;  %v823_v49 = vpop.xlane.xlu0 %822  ;;  %v2356_v2 = vadd.f32 %v2320_v47, %v2228_v18 }
 0x36e   :  { %v3117_v57 = vpop.eup %3116  ;;  %v896_v24 = vsel %vm36_vm2, %v823_v49, 0.0  ;;  %v2406_v39 = vadd.f32 %v2405_v1, %v2404_v43  ;;  %v850_v43 = vpop.xlane.xlu1 %849 }
 0x36f   :  { %v897_v35 = vadd.f32 %v896_v24, %v895_v34  ;;  %v2264_v19 = vld [vmem:[#allocation4 + $0xf8] sm:$0xff]  ;;  %v3119_v11 = vpop.eup %3118  ;;  %v2322_v62 = vmul.f32 0.6931472, %v3117_v57  ;;  %v2415_v50 = vsel %vm36_vm2, %v2356_v2, 0.0 }
 0x370   :  { %3124 = vlog2.f32 %v2264_v19  ;;  %v2408_v12 = vadd.f32 %v2407_v48, %v2406_v39  ;;  %v2444_v42 = vmul.f32 0.6931472, %v3119_v11  ;;  %v5545_v39 = vsub.s32 0, %v5544_v38 }
 0x371   :  { %v899_v29 = vadd.f32 %v898_v10, %v897_v35  ;;  %v829_v40 = vpop.xlane.xlu0 %828  ;;  %v2357_v32 = vadd.f32 %v2322_v62, %v2229_v28  ;;  %v914_v19 = vsel %vm36_vm2, %v850_v43, 0.0 }
 0x372   :  { %v3121_v15 = vpop.eup %3120  ;;  %v900_v52 = vsel %vm36_vm2, %v829_v40, 0.0  ;;  %v2410_v9 = vadd.f32 %v2409_v59, %v2408_v12  ;;  %v2445_v58 = vadd.f32 %v2444_v42, %v2441_v20  ;;  %v5547_v59 = vmov 0.0  }
 0x373   :  { %v901_v22 = vadd.f32 %v900_v52, %v899_v29  ;;  %v2324_v30 = vmul.f32 0.6931472, %v3121_v15  ;;  %v2417_v41 = vsel %vm36_vm2, %v2357_v32, 0.0  ;;  %24 = vst.msk [vmem:[#allocation7] sm:$0x1] %vm23_vm4, %v5547_v59 }
 0x374   :  { %v2412_v27 = vadd.f32 %v2411_v46, %v2410_v9  ;;  %v2451_v35 = vrot.slane %v2445_v58, %v5545_v39  ;;  %v2455_v48 = vrot.slane %v2445_v58, %v5546_v8  ;;  %25 = vst.msk [vmem:[#allocation8] sm:$0x1] %vm23_vm4, %v5547_v59  ;;  %26 = vst.msk [vmem:[#allocation9] sm:$0x1] %vm23_vm4, %v5547_v59 }
 0x375   :  { %v903_v61 = vadd.f32 %v902_v25, %v901_v22  ;;  %v835_v14 = vpop.xlane.xlu0 %834  ;;  %v2358_v23 = vadd.f32 %v2324_v30, %v2230_v36 }
 0x376   :  { %v3123_v31 = vpop.eup %3122  ;;  %v904_v54 = vsel %vm36_vm2, %v835_v14, 0.0  ;;  %v2414_v5 = vadd.f32 %v2413_v51, %v2412_v27  ;;  %v2459_v40 = vsel %vm2458_vm3, %v2451_v35, 0.0  ;;  %v2460_v62 = vsel %vm2458_vm3, %v2455_v48, 0.0 }
 0x377   :  { %v905_v7 = vadd.f32 %v904_v54, %v903_v61  ;;  %v2326_v4 = vmul.f32 0.6931472, %v3123_v31  ;;  %v2419_v49 = vsel %vm36_vm2, %v2358_v23, 0.0  ;;  %v2461_v37 = vadd.f32 %v2460_v62, %v2459_v40 }
 0x378   :  { %v2416_v3 = vadd.f32 %v2415_v50, %v2414_v5 }
 0x379   :  { %v907_v16 = vadd.f32 %v906_v13, %v905_v7  ;;  %v841_v6 = vpop.xlane.xlu0 %840  ;;  %v2359_v0 = vadd.f32 %v2326_v4, %v2231_v33 }
 0x37a   :  { %v3125_v55 = vpop.eup %3124  ;;  %v908_v45 = vsel %vm36_vm2, %v841_v6, 0.0  ;;  %v2418_v53 = vadd.f32 %v2417_v41, %v2416_v3  ;;  %v851_v5 = vld [vmem:[#allocation7] sm:$0x1] }
 0x37b   :  { %v909_v17 = vadd.f32 %v908_v45, %v907_v16  ;;  %v2328_v34 = vmul.f32 0.6931472, %v3125_v55  ;;  %v2421_v10 = vsel %vm36_vm2, %v2359_v0, 0.0  ;;  %v2361_v7 = vld [vmem:[#allocation8] sm:$0x1] }
 0x37c   :  { %v2420_v63 = vadd.f32 %v2419_v49, %v2418_v53  ;;  %v2446_v3 = vld [vmem:[#allocation9] sm:$0x1] }
 0x37d   :  { %v911_v1 = vadd.f32 %v910_v21, %v909_v17  ;;  %v847_v57 = vpop.xlane.xlu0 %846  ;;  %v2360_v24 = vadd.f32 %v2328_v34, %v2232_v56 }
 0x37e   :  { %v912_v44 = vsel %vm36_vm2, %v847_v57, 0.0  ;;  %v2422_v47 = vadd.f32 %v2421_v10, %v2420_v63 }
 0x37f   :  { %v913_v11 = vadd.f32 %v912_v44, %v911_v1  ;;  %v2423_v26 = vsel %vm36_vm2, %v2360_v24, 0.0 }
 0x380   :  { %v2424_v12 = vadd.f32 %v2423_v26, %v2422_v47 }
 0x381   :  { %v915_v29 = vadd.f32 %v914_v19, %v913_v11 }
 0x382   :  { %2425 = vadd.xlane.f32.xlu1 %v2424_v12 }
 0x383   :  { %916 = vadd.xlane.f32.xlu0 %v915_v29 }
 0x387   :  { %2462 = vadd.xlane.f32.xlu0 %v2461_v37 }
 0x40f   :  { %v2426_v15 = vpop.xlane.xlu1 %2425 }
 0x410   :  { %v2427_v52 = vrot.slane %v2426_v15, 4  ;;  %v917_v25 = vpop.xlane.xlu0 %916 }
 0x411   :  { %v918_v18 = vrot.slane %v917_v25, 4 }
 0x412   :  { %v2428_v9 = vadd.f32 %v2427_v52, %v2426_v15 }
 0x413   :  { %v919_v22 = vadd.f32 %v918_v18, %v917_v25 }
 0x414   :  { %v2429_v30 = vrot.slane %v2428_v9, 2  ;;  %v2463_v2 = vpop.xlane.xlu0 %2462 }
 0x415   :  { %v920_v46 = vrot.slane %v919_v22, 2  ;;  %v2464_v28 = vrot.slane %v2463_v2, 4 }
 0x416   :  { %v2430_v27 = vadd.f32 %v2429_v30, %v2428_v9 }
 0x417   :  { %v2465_v61 = vadd.f32 %v2464_v28, %v2463_v2  ;;  %v921_v14 = vadd.f32 %v920_v46, %v919_v22 }
 0x418   :  { %v2431_v60 = vrot.slane %v2430_v27, 1 }
 0x419   :  { %v2466_v32 = vrot.slane %v2465_v61, 2  ;;  %v922_v51 = vrot.slane %v921_v14, 1 }
 0x41a   :  { %v2432_v42 = vadd.f32 %v2431_v60, %v2430_v27 }
 0x41b   :  { %v2467_v31 = vadd.f32 %v2466_v32, %v2465_v61  ;;  %v923_v54 = vadd.f32 %v922_v51, %v921_v14 }
 0x41d   :  { %2693 = vpush %v923_v54  ;;  %v2468_v13 = vrot.slane %v2467_v31, 1 }
 0x41e   :  { %2695 = vpush %v2432_v42 }
 0x41f   :  { %v2469_v36 = vadd.f32 %v2468_v13, %v2467_v31 }
 0x421   :  { %2697 = vpush %v2469_v36 }
 0x44e   :  { %s2694_s2 = spop %2693 }
 0x44f   :  { %v925_v4 = vstv %s2694_s2  ;;  %s2696_s16 = spop %2695 }
 0x450   :  { %v926_v23 = vadd.f32 %v925_v4, %v851_v5  ;;  %v2434_v50 = vstv %s2696_s16 }
 0x451   :  { %v2435_v33 = vadd.f32 %v2434_v50, %v2361_v7 }
 0x452   :  { %928 = vst.msk [vmem:[#allocation7] sm:$0x1] %vm23_vm4, %v926_v23  ;;  %s2698_s17 = spop %2697 }
 0x453   :  { %2437 = vst.msk [vmem:[#allocation8] sm:$0x1] %vm23_vm4, %v2435_v33  ;;  %v2471_v20 = vstv %s2698_s17 }
 0x454   :  { %v2472_v16 = vadd.f32 %v2471_v20, %v2446_v3 }
 0x456   :  { %2474 = vst.msk [vmem:[#allocation9] sm:$0x1] %vm23_vm4, %v2472_v16 }
 0x459   :  { %v2481_v55 = vld [vmem:[#allocation7] sm:$0x1] }
 0x45a   :  { %v2477_v6 = vld [vmem:[#allocation8] sm:$0x1] }
 0x45d   :  { %v2478_v0 = vld [vmem:[#allocation9] sm:$0x1] }
 0x45e   :  { %v2479_v41 = vadd.f32 %v2478_v0, %v2477_v6 }
 0x460   :  { %v2480_v58 = vmul.f32 0.5, %v2479_v41 }
 0x462   :  { %v2482_v45 = vsub.f32 %v2480_v58, %v2481_v55 }
 0x464   :  { %v2483_v21 = vmul.f32 0.00390625, %v2482_v45 }
 0x466   :  { %2485 = vst.msk [vmem:[#allocation11] sm:$0x1] %vm23_vm4, %v2483_v21 }
 0x467   :  { %3161 = shalt.err (!%p3158_p4)
}
 0x468   :  { %s3162_s24 = scalar_lea.hbm %s5084_s3, 16 }
 0x469   :  { %p3163_p5 = scmp.ne.s32.totalorder %s5084_s3, %s3162_s24  ;;  %p3166_p6 = scmp.lt.u32.totalorder %s3162_s24, %s5084_s3 }
 0x46b   :  { %p3168_p7 = pnand %p3166_p6, %p3163_p5 }
 0x46d   :  { %3171 = shalt.err (!%p3168_p7)
}
 0x46e   :  { %2495 = dma.vmem_to_hbm [thread:$0]  %s2493_s19, 16, %s5084_s3, [#allocation12]  }
 0x46f   :  { %3172 = dma.done.wait [#allocation12], 16  }
 0x470   :  { %3173 = vsyncadd [#allocation12], 4294967280 }
 0x471   :  { %2499 = vsyncpa [#allocation12], 1 }

</bundles_post_ra>
